<compile_context>
chip_gen: v6e
topology: v6e:2x2x1
jax: 0.10.0
libtpu: 0.0.40
codegen_flags: <defaults>
</compile_context>

<pallas_src>
import functools

import numpy as np
import jax
import jax.numpy as jnp
from jax.experimental import pallas as pl
from jax.experimental.pallas import tpu as pltpu


# Phase decomposition of ConvTranspose2d(k=4, s=2, p=1):
#   output row p = 2U + a gets (input-row offset du, kernel row kh):
#     a = 0 : (0, 1), (-1, 3)      a = 1 : (0, 2), (+1, 0)   (same for columns)
_UP_OFFS = {0: (0, -1), 1: (0, 1)}
_UP_KIDX = {0: (1, 3), 1: (2, 0)}


def _rup(n, m):
    return ((n + m - 1) // m) * m


# ----------------------------------------------------------------------------
# In-kernel helpers (activations are (Cpad, L) f32, L = lane axis)
# ----------------------------------------------------------------------------
def _tap(x, dh, dw, w_img, mask_ref, t):
    """Column p of the result holds x[:, p + dh*w_img + dw], zeroed where that
    neighbour falls outside the image (masks are precomputed constants)."""
    L = x.shape[-1]
    s = dh * w_img + dw
    if s == 0:
        return x
    return pltpu.roll(x, (-s) % L, axis=1) * mask_ref[t]


def _conv3x3(x, w2d, bias, mask9_ref, w_img):
    """'Same' 3x3 convolution as ONE MXU dot: stack the 9 shifted+masked taps
    into a (9*Cin_pad, L) patch (8-row aligned sublane concat)."""
    taps = []
    t = 0
    for dh in (-1, 0, 1):
        for dw in (-1, 0, 1):
            taps.append(_tap(x, dh, dw, w_img, mask9_ref, t))
            t += 1
    patch = jnp.concatenate(taps, axis=0)                     # (9*Cin_pad, L)
    return jnp.dot(w2d, patch, preferred_element_type=jnp.float32) + bias


def _ln_lrelu(c, g, b, n_real):
    """LayerNorm over the real (C,H,W) elements (single pass, biased var,
    eps=1e-5), affine, LeakyReLU(0.01).  Zero-padded channel rows stay zero
    because g/b are zero there and they do not perturb the sums."""
    inv_n = 1.0 / n_real
    s1 = jnp.sum(c, axis=(0, 1), keepdims=True)
    s2 = jnp.sum(c * c, axis=(0, 1), keepdims=True)
    mean = s1 * inv_n
    var = s2 * inv_n - mean * mean
    y = (c - mean) * jax.lax.rsqrt(var + 1e-5) * g + b
    return jnp.where(y >= 0.0, y, 0.01 * y)


def _adain(z, ys, yb, hw):
    """AdaIN: per-channel mean / unbiased std (+1e-9 added to std, matching
    torch.std), then style scale + shift."""
    mean = jnp.mean(z, axis=1, keepdims=True)
    d = z - mean
    var = jnp.sum(d * d, axis=1, keepdims=True) * (1.0 / (hw - 1))
    return ys * (d / (jnp.sqrt(var) + 1e-9)) + yb


# ----------------------------------------------------------------------------
# The single fused kernel (grid = (batch,))
# ----------------------------------------------------------------------------
def _make_fused_kernel(*, first_block, n_layers, c_real, ws, w_img, hw):
    def kernel(*refs):
        it = iter(refs)
        x_ref = next(it); n1_ref = next(it); n2_ref = next(it)
        y1s_ref = next(it); y1b_ref = next(it)
        y2s_ref = next(it); y2b_ref = next(it)
        if not first_block:
            upw_ref = next(it); upb_ref = next(it)
            spr_ref = next(it); m16_ref = next(it)
            cw_ref = next(it); cb_ref = next(it)
            cg_ref = next(it); cbt_ref = next(it)
        m9_ref = next(it)
        b1w_ref = next(it); b1b_ref = next(it)
        b2w_ref = next(it); b2b_ref = next(it)
        if n_layers > 0:
            lw_ref = next(it); lb_ref = next(it)
            lg_ref = next(it); lbt_ref = next(it)
        o_ref = next(it)

        n_real = c_real * hw

        # ----- head: ConvTranspose2d(4,2,1) -> Conv3x3 -> LayerNorm -> LeakyReLU
        if not first_block:
            xs = x_ref[0]                                     # (cin_pad, lp) f32
            paccs = []
            for a in (0, 1):
                for bph in (0, 1):
                    ph = 2 * a + bph
                    taps = []
                    for ti, dh in enumerate(_UP_OFFS[a]):
                        for tj, dw in enumerate(_UP_OFFS[bph]):
                            idx = ph * 4 + ti * 2 + tj
                            taps.append(_tap(xs, dh, dw, ws, m16_ref, idx))
                    patch = jnp.concatenate(taps, axis=0)     # (4*cin_pad, lp)
                    paccs.append(jnp.dot(upw_ref[ph], patch,
                                         preferred_element_type=jnp.float32))
            # Interleave the 4 phases onto the full-res lane grid with a single
            # matmul against a precomputed 0/1 spread matrix.
            pcat = jnp.concatenate(paccs, axis=1)             # (Cpad, 4*lp)
            x_up = jnp.dot(pcat, spr_ref[...],
                           preferred_element_type=jnp.float32) + upb_ref[...]
            # TODO(synk): nn.Dropout before every conv is identity (eval / p=0).
            c = _conv3x3(x_up, cw_ref[...], cb_ref[...], m9_ref, w_img)
            x = _ln_lrelu(c, cg_ref[...], cbt_ref[...], n_real)
        else:
            x = x_ref[0]

        # ----- noise conv + add + AdaIN (stage 1)
        z = x + _conv3x3(n1_ref[0], b1w_ref[...], b1b_ref[...], m9_ref, w_img)
        x = _adain(z, y1s_ref[0], y1b_ref[0], hw)

        # ----- residual layers (statically unrolled; weights stacked on axis 0)
        for i in range(n_layers):
            c = _conv3x3(x, lw_ref[i], lb_ref[i], m9_ref, w_img)
            x = x + _ln_lrelu(c, lg_ref[i], lbt_ref[i], n_real)

        # ----- noise conv + add + AdaIN (stage 2)
        z = x + _conv3x3(n2_ref[0], b2w_ref[...], b2b_ref[...], m9_ref, w_img)
        o_ref[0] = _adain(z, y2s_ref[0], y2b_ref[0], hw)

    return kernel


# ----------------------------------------------------------------------------
# Parameters (PyTorch layout) + one-time kernel-layout precompute
# ----------------------------------------------------------------------------
def init_params(key, n_channels, dim, n_noise, dim_style, n_layers):
    C, D = n_channels, dim
    keys = iter(jax.random.split(key, 64))

    def nrm(shape, scale=0.1):
        return scale * jax.random.normal(next(keys), shape, jnp.float32)

    p = {
        "up_w": nrm((2 * C, C, 4, 4)),      # ConvTranspose2d weight [Cin, Cout, kh, kw]
        "up_b": nrm((C,)),
        "conv_w": nrm((C, C, 3, 3)), "conv_b": nrm((C,)),
        "conv_g": 1.0 + nrm((C, D, D)), "conv_beta": nrm((C, D, D)),
        "A1_w": nrm((dim_style, 2 * C)), "A1_b": nrm((2 * C,)),
        "A2_w": nrm((dim_style, 2 * C)), "A2_b": nrm((2 * C,)),
        "B1_w": nrm((C, n_noise, 3, 3)), "B1_b": nrm((C,)),
        "B2_w": nrm((C, n_noise, 3, 3)), "B2_b": nrm((C,)),
        "layers": [],
    }
    for _ in range(n_layers):
        p["layers"].append({
            "w": nrm((C, C, 3, 3)), "b": nrm((C,)),
            "g": 1.0 + nrm((C, D, D)), "beta": nrm((C, D, D)),
        })
    return p


def _conv_flat(w_oihw, cout_p, cin_p):
    """(Cout, Cin, 3, 3) -> (cout_p, 9*cin_p) f32 with K layout [tap, cin],
    zero-padded so every tap block fills whole 8-sublane groups."""
    w = np.asarray(w_oihw, np.float32)
    co, ci = w.shape[:2]
    out = np.zeros((cout_p, 9 * cin_p), np.float32)
    for kh in range(3):
        for kw in range(3):
            t = kh * 3 + kw
            out[:co, t * cin_p:t * cin_p + ci] = w[:, :, kh, kw]
    return jnp.asarray(out)


def _col(b, cp):
    out = np.zeros((cp, 1), np.float32)
    out[:np.asarray(b).shape[0], 0] = np.asarray(b, np.float32)
    return jnp.asarray(out)


def _affine(a_cdd, cp, hw):
    a = np.asarray(a_cdd, np.float32).reshape(np.asarray(a_cdd).shape[0], hw)
    out = np.zeros((cp, hw), np.float32)
    out[:a.shape[0]] = a
    return jnp.asarray(out)


def _mask3x3(h, w, L):
    lane = np.arange(L)
    hh, ww = lane // w, lane % w
    inb = lane < h * w
    m = np.zeros((9, 1, L), np.float32)
    t = 0
    for dh in (-1, 0, 1):
        for dw in (-1, 0, 1):
            m[t, 0] = (inb & (hh + dh >= 0) & (hh + dh < h)
                       & (ww + dw >= 0) & (ww + dw < w))
            t += 1
    return jnp.asarray(m)


def _mask_up(hs, ws, lp):
    lane = np.arange(lp)
    hh, ww = lane // ws, lane % ws
    inb = lane < hs * ws
    m = np.zeros((16, 1, lp), np.float32)
    for a in (0, 1):
        for b in (0, 1):
            ph = 2 * a + b
            for ti, dh in enumerate(_UP_OFFS[a]):
                for tj, dw in enumerate(_UP_OFFS[b]):
                    m[ph * 4 + ti * 2 + tj, 0] = (
                        inb & (hh + dh >= 0) & (hh + dh < hs)
                        & (ww + dw >= 0) & (ww + dw < ws))
    return jnp.asarray(m)


def precompute_kernel_params(params, *, n_channels, dim, first_block):
    """Hoist all parameter-side transposes / reshapes / paddings and the
    constant boundary masks out of the forward pass."""
    C, D = n_channels, dim
    HW = D * D
    CP = _rup(C, 8)                       # channel dim padded to full sublanes
    Cn = np.asarray(params["B1_w"]).shape[1]
    CnP = _rup(Cn, 8)
    n_layers = len(params["layers"])

    prep = {
        "A1_w": params["A1_w"].astype(jnp.float32),
        "A1_b": params["A1_b"].astype(jnp.float32),
        "A2_w": params["A2_w"].astype(jnp.float32),
        "A2_b": params["A2_b"].astype(jnp.float32),
        "B1_w": _conv_flat(params["B1_w"], CP, CnP), "B1_b": _col(params["B1_b"], CP),
        "B2_w": _conv_flat(params["B2_w"], CP, CnP), "B2_b": _col(params["B2_b"], CP),
        "mask9": _mask3x3(D, D, HW),
    }
    if n_layers > 0:
        prep["lw"] = jnp.stack([_conv_flat(l["w"], CP, CP) for l in params["layers"]])
        prep["lb"] = jnp.stack([_col(l["b"], CP) for l in params["layers"]])
        prep["lg"] = jnp.stack([_affine(l["g"], CP, HW) for l in params["layers"]])
        prep["lbeta"] = jnp.stack([_affine(l["beta"], CP, HW) for l in params["layers"]])
    if not first_block:
        hs = ws = D // 2
        small = hs * ws
        lp = _rup(small, 128)
        cin = 2 * C
        cin_p = _rup(cin, 8)
        wt = np.asarray(params["up_w"], np.float32)           # (2C, C, 4, 4)
        upw = np.zeros((4, CP, 4 * cin_p), np.float32)
        for a in (0, 1):
            for b in (0, 1):
                ph = 2 * a + b
                for ti in (0, 1):
                    for tj in (0, 1):
                        kh, kw = _UP_KIDX[a][ti], _UP_KIDX[b][tj]
                        t = ti * 2 + tj
                        upw[ph, :C, t * cin_p:t * cin_p + cin] = wt[:, :, kh, kw].T
        prep["up_w"] = jnp.asarray(upw)
        prep["up_b"] = _col(params["up_b"], CP)
        # 0/1 spread: phase-local lane (u*ws+v) -> full-res lane (2u+a)*D + 2v+b.
        spr = np.zeros((4, lp, HW), np.float32)
        for a in (0, 1):
            for b in (0, 1):
                ph = 2 * a + b
                for u in range(hs):
                    for v in range(ws):
                        spr[ph, u * ws + v, (2 * u + a) * D + (2 * v + b)] = 1.0
        prep["spread"] = jnp.asarray(spr.reshape(4 * lp, HW))
        prep["mask16"] = _mask_up(hs, ws, lp)
        prep["conv_w"] = _conv_flat(params["conv_w"], CP, CP)
        prep["conv_b"] = _col(params["conv_b"], CP)
        prep["conv_g"] = _affine(params["conv_g"], CP, HW)
        prep["conv_beta"] = _affine(params["conv_beta"], CP, HW)
    return prep


# ----------------------------------------------------------------------------
# Full forward (one pallas_call)
# ----------------------------------------------------------------------------
def synthesis_block_forward(prep, x_nchw, w_style, n1_nchw, n2_nchw, *, first_block):
    B = x_nchw.shape[0]
    D = n1_nchw.shape[-1]
    HW = D * D
    C = prep["A1_b"].shape[0] // 2          # real channel count (static)
    CP = prep["B1_b"].shape[0]              # sublane-padded channel count
    CnP = prep["B1_w"].shape[1] // 9        # padded noise channels
    n_layers = prep["lw"].shape[0] if "lw" in prep else 0
    Cn = n1_nchw.shape[1]

    w_style = w_style.astype(jnp.float32)

    def _pad_ch(a, cpad):
        return jnp.pad(a, ((0, 0), (0, cpad - a.shape[1]), (0, 0)))

    n1 = _pad_ch(n1_nchw.reshape(B, Cn, HW).astype(jnp.float32), CnP)
    n2 = _pad_ch(n2_nchw.reshape(B, Cn, HW).astype(jnp.float32), CnP)

    # Tiny style projections: plain XLA dot (a Pallas call here is pure overhead).
    y1 = w_style @ prep["A1_w"] + prep["A1_b"]
    y2 = w_style @ prep["A2_w"] + prep["A2_b"]

    def _style(y):
        ys = jnp.pad(y[:, :C], ((0, 0), (0, CP - C)))[:, :, None]
        yb = jnp.pad(y[:, C:], ((0, 0), (0, CP - C)))[:, :, None]
        return ys, yb

    y1s, y1b = _style(y1)
    y2s, y2b = _style(y2)

    if first_block:
        x = _pad_ch(x_nchw.reshape(B, C, HW).astype(jnp.float32), CP)
        ws = D
    else:
        ws = D // 2
        small = ws * ws
        lp_small = _rup(small, 128)
        cin_p = prep["up_w"].shape[2] // 4
        x = x_nchw.reshape(B, x_nchw.shape[1], small).astype(jnp.float32)
        x = jnp.pad(x, ((0, 0), (0, cin_p - x.shape[1]), (0, lp_small - small)))

    batched = [x, n1, n2, y1s, y1b, y2s, y2b]
    consts = []
    if not first_block:
        consts += [prep["up_w"], prep["up_b"], prep["spread"], prep["mask16"],
                   prep["conv_w"], prep["conv_b"], prep["conv_g"], prep["conv_beta"]]
    consts += [prep["mask9"], prep["B1_w"], prep["B1_b"], prep["B2_w"], prep["B2_b"]]
    if n_layers > 0:
        consts += [prep["lw"], prep["lb"], prep["lg"], prep["lbeta"]]

    kern = _make_fused_kernel(first_block=first_block, n_layers=n_layers,
                              c_real=C, ws=ws, w_img=D, hw=HW)

    def _bspec(a):
        nd = a.ndim

        def imap(b):
            return (b,) + (0,) * (nd - 1)

        return pl.BlockSpec((1,) + a.shape[1:], imap)

    def _cspec(a):
        nd = a.ndim

        def imap(b):
            return (0,) * nd

        return pl.BlockSpec(a.shape, imap)

    out = pl.pallas_call(
        kern,
        out_shape=jax.ShapeDtypeStruct((B, CP, HW), jnp.float32),
        grid=(B,),
        in_specs=[_bspec(a) for a in batched] + [_cspec(a) for a in consts],
        out_specs=pl.BlockSpec((1, CP, HW), lambda b: (b, 0, 0)),
        compiler_params=pltpu.CompilerParams(
            dimension_semantics=("parallel",)),
    )(*batched, *consts)
    return out[:, :C].reshape(B, C, D, D)


if __name__ == "__main__":
    # Module-consistent small shapes: dim=16, n_channels=4, n_layers=2,
    # n_noise=4, dim_style=32, first_block=False (input has 2C channels, dim//2 spatial).
    B, C, D, NN, S, L = 2, 4, 16, 4, 32, 2

    key = jax.random.PRNGKey(0)
    kx, kw, kn1, kn2, kp = jax.random.split(key, 5)
    x = jax.random.normal(kx, (B, 2 * C, D // 2, D // 2), jnp.float32)
    w = jax.random.normal(kw, (B, S), jnp.float32)
    n1 = jax.random.normal(kn1, (B, NN, D, D), jnp.float32)
    n2 = jax.random.normal(kn2, (B, NN, D, D), jnp.float32)

    params = init_params(kp, C, D, NN, S, L)
    prep = precompute_kernel_params(params, n_channels=C, dim=D, first_block=False)

    fwd = jax.jit(functools.partial(synthesis_block_forward, first_block=False))
    out = jax.block_until_ready(fwd(prep, x, w, n1, n2))

    assert out.shape == (B, C, D, D), out.shape
    assert bool(jnp.all(jnp.isfinite(out)))
    print("KERNEL_OK")
</pallas_src>

<mosaic_0001>
module attributes {stable_mosaic.version = 11 : i64} {
  func.func @kernel(%arg0: i32, %arg1: memref<1x8x128xf32, #tpu.memory_space<vmem>>, %arg2: memref<1x8x256xf32, #tpu.memory_space<vmem>>, %arg3: memref<1x8x256xf32, #tpu.memory_space<vmem>>, %arg4: memref<1x8x1xf32, #tpu.memory_space<vmem>>, %arg5: memref<1x8x1xf32, #tpu.memory_space<vmem>>, %arg6: memref<1x8x1xf32, #tpu.memory_space<vmem>>, %arg7: memref<1x8x1xf32, #tpu.memory_space<vmem>>, %arg8: memref<4x8x32xf32, #tpu.memory_space<vmem>>, %arg9: memref<8x1xf32, #tpu.memory_space<vmem>>, %arg10: memref<512x256xf32, #tpu.memory_space<vmem>>, %arg11: memref<16x1x128xf32, #tpu.memory_space<vmem>>, %arg12: memref<8x72xf32, #tpu.memory_space<vmem>>, %arg13: memref<8x1xf32, #tpu.memory_space<vmem>>, %arg14: memref<8x256xf32, #tpu.memory_space<vmem>>, %arg15: memref<8x256xf32, #tpu.memory_space<vmem>>, %arg16: memref<9x1x256xf32, #tpu.memory_space<vmem>>, %arg17: memref<8x72xf32, #tpu.memory_space<vmem>>, %arg18: memref<8x1xf32, #tpu.memory_space<vmem>>, %arg19: memref<8x72xf32, #tpu.memory_space<vmem>>, %arg20: memref<8x1xf32, #tpu.memory_space<vmem>>, %arg21: memref<2x8x72xf32, #tpu.memory_space<vmem>>, %arg22: memref<2x8x1xf32, #tpu.memory_space<vmem>>, %arg23: memref<2x8x256xf32, #tpu.memory_space<vmem>>, %arg24: memref<2x8x256xf32, #tpu.memory_space<vmem>>, %arg25: memref<1x8x256xf32, #tpu.memory_space<vmem>>) attributes {dimension_semantics = [#tpu.dimension_semantics<parallel>], iteration_bounds = array<i64: 2>, scalar_prefetch = 0 : i64, scratch_operands = 0 : i64, tpu.core_type = #tpu.core_type<tc>, window_params = [{transform_indices = @transform_0, window_bounds = array<i64: 1, 8, 128>}, {transform_indices = @transform_1, window_bounds = array<i64: 1, 8, 256>}, {transform_indices = @transform_2, window_bounds = array<i64: 1, 8, 256>}, {transform_indices = @transform_3, window_bounds = array<i64: 1, 8, 1>}, {transform_indices = @transform_4, window_bounds = array<i64: 1, 8, 1>}, {transform_indices = @transform_5, window_bounds = array<i64: 1, 8, 1>}, {transform_indices = @transform_6, window_bounds = array<i64: 1, 8, 1>}, {pipeline_mode = #tpu.pipeline_mode<synchronous>, transform_indices = @transform_7, window_bounds = array<i64: 4, 8, 32>}, {pipeline_mode = #tpu.pipeline_mode<synchronous>, transform_indices = @transform_8, window_bounds = array<i64: 8, 1>}, {pipeline_mode = #tpu.pipeline_mode<synchronous>, transform_indices = @transform_9, window_bounds = array<i64: 512, 256>}, {pipeline_mode = #tpu.pipeline_mode<synchronous>, transform_indices = @transform_10, window_bounds = array<i64: 16, 1, 128>}, {pipeline_mode = #tpu.pipeline_mode<synchronous>, transform_indices = @transform_11, window_bounds = array<i64: 8, 72>}, {pipeline_mode = #tpu.pipeline_mode<synchronous>, transform_indices = @transform_12, window_bounds = array<i64: 8, 1>}, {pipeline_mode = #tpu.pipeline_mode<synchronous>, transform_indices = @transform_13, window_bounds = array<i64: 8, 256>}, {pipeline_mode = #tpu.pipeline_mode<synchronous>, transform_indices = @transform_14, window_bounds = array<i64: 8, 256>}, {pipeline_mode = #tpu.pipeline_mode<synchronous>, transform_indices = @transform_15, window_bounds = array<i64: 9, 1, 256>}, {pipeline_mode = #tpu.pipeline_mode<synchronous>, transform_indices = @transform_16, window_bounds = array<i64: 8, 72>}, {pipeline_mode = #tpu.pipeline_mode<synchronous>, transform_indices = @transform_17, window_bounds = array<i64: 8, 1>}, {pipeline_mode = #tpu.pipeline_mode<synchronous>, transform_indices = @transform_18, window_bounds = array<i64: 8, 72>}, {pipeline_mode = #tpu.pipeline_mode<synchronous>, transform_indices = @transform_19, window_bounds = array<i64: 8, 1>}, {pipeline_mode = #tpu.pipeline_mode<synchronous>, transform_indices = @transform_20, window_bounds = array<i64: 2, 8, 72>}, {pipeline_mode = #tpu.pipeline_mode<synchronous>, transform_indices = @transform_21, window_bounds = array<i64: 2, 8, 1>}, {pipeline_mode = #tpu.pipeline_mode<synchronous>, transform_indices = @transform_22, window_bounds = array<i64: 2, 8, 256>}, {pipeline_mode = #tpu.pipeline_mode<synchronous>, transform_indices = @transform_23, window_bounds = array<i64: 2, 8, 256>}, {transform_indices = @transform_24, window_bounds = array<i64: 1, 8, 256>}]} {
    %c0 = arith.constant 0 : index
    %c0_0 = arith.constant 0 : index
    %c0_1 = arith.constant 0 : index
    %0 = vector.load %arg1[%c0, %c0_0, %c0_1] : memref<1x8x128xf32, #tpu.memory_space<vmem>>, vector<1x8x128xf32>
    %1 = vector.shape_cast %0 : vector<1x8x128xf32> to vector<8x128xf32>
    %c1_i32 = arith.constant 1 : i32
    %2 = tpu.dynamic_rotate %1 by %c1_i32 dim 1 : vector<8x128xf32>, i32 -> vector<8x128xf32>
    %c1 = arith.constant 1 : index
    %c0_2 = arith.constant 0 : index
    %c0_3 = arith.constant 0 : index
    %3 = vector.load %arg11[%c1, %c0_2, %c0_3] : memref<16x1x128xf32, #tpu.memory_space<vmem>>, vector<1x1x128xf32>
    %4 = vector.shape_cast %3 : vector<1x1x128xf32> to vector<1x128xf32>
    %5 = vector.broadcast %4 : vector<1x128xf32> to vector<8x128xf32>
    %6 = arith.mulf %2, %5 : vector<8x128xf32>
    %c8_i32 = arith.constant 8 : i32
    %7 = tpu.dynamic_rotate %1 by %c8_i32 dim 1 : vector<8x128xf32>, i32 -> vector<8x128xf32>
    %c2 = arith.constant 2 : index
    %c0_4 = arith.constant 0 : index
    %c0_5 = arith.constant 0 : index
    %8 = vector.load %arg11[%c2, %c0_4, %c0_5] : memref<16x1x128xf32, #tpu.memory_space<vmem>>, vector<1x1x128xf32>
    %9 = vector.shape_cast %8 : vector<1x1x128xf32> to vector<1x128xf32>
    %10 = vector.broadcast %9 : vector<1x128xf32> to vector<8x128xf32>
    %11 = arith.mulf %7, %10 : vector<8x128xf32>
    %c9_i32 = arith.constant 9 : i32
    %12 = tpu.dynamic_rotate %1 by %c9_i32 dim 1 : vector<8x128xf32>, i32 -> vector<8x128xf32>
    %c3 = arith.constant 3 : index
    %c0_6 = arith.constant 0 : index
    %c0_7 = arith.constant 0 : index
    %13 = vector.load %arg11[%c3, %c0_6, %c0_7] : memref<16x1x128xf32, #tpu.memory_space<vmem>>, vector<1x1x128xf32>
    %14 = vector.shape_cast %13 : vector<1x1x128xf32> to vector<1x128xf32>
    %15 = vector.broadcast %14 : vector<1x128xf32> to vector<8x128xf32>
    %16 = arith.mulf %12, %15 : vector<8x128xf32>
    %17 = tpu.concatenate %1, %6, %11, %16 in 0 : vector<8x128xf32>, vector<8x128xf32>, vector<8x128xf32>, vector<8x128xf32> -> vector<32x128xf32>
    %c0_8 = arith.constant 0 : index
    %c0_9 = arith.constant 0 : index
    %c0_10 = arith.constant 0 : index
    %18 = vector.load %arg8[%c0_8, %c0_9, %c0_10] : memref<4x8x32xf32, #tpu.memory_space<vmem>>, vector<1x8x32xf32>
    %19 = vector.shape_cast %18 : vector<1x8x32xf32> to vector<8x32xf32>
    %cst = arith.constant dense<0.000000e+00> : vector<8x128xf32>
    %20 = tpu.matmul %19, %17, %cst {dimension_numbers = #tpu.dot_dimension_numbers<[1], [0], [0], [1], [0, 0, 1, 1], [], []>} : vector<8x32xf32>, vector<32x128xf32>, vector<8x128xf32> -> vector<8x128xf32>
    %c127_i32 = arith.constant 127 : i32
    %21 = tpu.dynamic_rotate %1 by %c127_i32 dim 1 : vector<8x128xf32>, i32 -> vector<8x128xf32>
    %c5 = arith.constant 5 : index
    %c0_11 = arith.constant 0 : index
    %c0_12 = arith.constant 0 : index
    %22 = vector.load %arg11[%c5, %c0_11, %c0_12] : memref<16x1x128xf32, #tpu.memory_space<vmem>>, vector<1x1x128xf32>
    %23 = vector.shape_cast %22 : vector<1x1x128xf32> to vector<1x128xf32>
    %24 = vector.broadcast %23 : vector<1x128xf32> to vector<8x128xf32>
    %25 = arith.mulf %21, %24 : vector<8x128xf32>
    %c8_i32_13 = arith.constant 8 : i32
    %26 = tpu.dynamic_rotate %1 by %c8_i32_13 dim 1 : vector<8x128xf32>, i32 -> vector<8x128xf32>
    %c6 = arith.constant 6 : index
    %c0_14 = arith.constant 0 : index
    %c0_15 = arith.constant 0 : index
    %27 = vector.load %arg11[%c6, %c0_14, %c0_15] : memref<16x1x128xf32, #tpu.memory_space<vmem>>, vector<1x1x128xf32>
    %28 = vector.shape_cast %27 : vector<1x1x128xf32> to vector<1x128xf32>
    %29 = vector.broadcast %28 : vector<1x128xf32> to vector<8x128xf32>
    %30 = arith.mulf %26, %29 : vector<8x128xf32>
    %c7_i32 = arith.constant 7 : i32
    %31 = tpu.dynamic_rotate %1 by %c7_i32 dim 1 : vector<8x128xf32>, i32 -> vector<8x128xf32>
    %c7 = arith.constant 7 : index
    %c0_16 = arith.constant 0 : index
    %c0_17 = arith.constant 0 : index
    %32 = vector.load %arg11[%c7, %c0_16, %c0_17] : memref<16x1x128xf32, #tpu.memory_space<vmem>>, vector<1x1x128xf32>
    %33 = vector.shape_cast %32 : vector<1x1x128xf32> to vector<1x128xf32>
    %34 = vector.broadcast %33 : vector<1x128xf32> to vector<8x128xf32>
    %35 = arith.mulf %31, %34 : vector<8x128xf32>
    %36 = tpu.concatenate %1, %25, %30, %35 in 0 : vector<8x128xf32>, vector<8x128xf32>, vector<8x128xf32>, vector<8x128xf32> -> vector<32x128xf32>
    %c1_18 = arith.constant 1 : index
    %c0_19 = arith.constant 0 : index
    %c0_20 = arith.constant 0 : index
    %37 = vector.load %arg8[%c1_18, %c0_19, %c0_20] : memref<4x8x32xf32, #tpu.memory_space<vmem>>, vector<1x8x32xf32>
    %38 = vector.shape_cast %37 : vector<1x8x32xf32> to vector<8x32xf32>
    %cst_21 = arith.constant dense<0.000000e+00> : vector<8x128xf32>
    %39 = tpu.matmul %38, %36, %cst_21 {dimension_numbers = #tpu.dot_dimension_numbers<[1], [0], [0], [1], [0, 0, 1, 1], [], []>} : vector<8x32xf32>, vector<32x128xf32>, vector<8x128xf32> -> vector<8x128xf32>
    %c1_i32_22 = arith.constant 1 : i32
    %40 = tpu.dynamic_rotate %1 by %c1_i32_22 dim 1 : vector<8x128xf32>, i32 -> vector<8x128xf32>
    %c9 = arith.constant 9 : index
    %c0_23 = arith.constant 0 : index
    %c0_24 = arith.constant 0 : index
    %41 = vector.load %arg11[%c9, %c0_23, %c0_24] : memref<16x1x128xf32, #tpu.memory_space<vmem>>, vector<1x1x128xf32>
    %42 = vector.shape_cast %41 : vector<1x1x128xf32> to vector<1x128xf32>
    %43 = vector.broadcast %42 : vector<1x128xf32> to vector<8x128xf32>
    %44 = arith.mulf %40, %43 : vector<8x128xf32>
    %c120_i32 = arith.constant 120 : i32
    %45 = tpu.dynamic_rotate %1 by %c120_i32 dim 1 : vector<8x128xf32>, i32 -> vector<8x128xf32>
    %c10 = arith.constant 10 : index
    %c0_25 = arith.constant 0 : index
    %c0_26 = arith.constant 0 : index
    %46 = vector.load %arg11[%c10, %c0_25, %c0_26] : memref<16x1x128xf32, #tpu.memory_space<vmem>>, vector<1x1x128xf32>
    %47 = vector.shape_cast %46 : vector<1x1x128xf32> to vector<1x128xf32>
    %48 = vector.broadcast %47 : vector<1x128xf32> to vector<8x128xf32>
    %49 = arith.mulf %45, %48 : vector<8x128xf32>
    %c121_i32 = arith.constant 121 : i32
    %50 = tpu.dynamic_rotate %1 by %c121_i32 dim 1 : vector<8x128xf32>, i32 -> vector<8x128xf32>
    %c11 = arith.constant 11 : index
    %c0_27 = arith.constant 0 : index
    %c0_28 = arith.constant 0 : index
    %51 = vector.load %arg11[%c11, %c0_27, %c0_28] : memref<16x1x128xf32, #tpu.memory_space<vmem>>, vector<1x1x128xf32>
    %52 = vector.shape_cast %51 : vector<1x1x128xf32> to vector<1x128xf32>
    %53 = vector.broadcast %52 : vector<1x128xf32> to vector<8x128xf32>
    %54 = arith.mulf %50, %53 : vector<8x128xf32>
    %55 = tpu.concatenate %1, %44, %49, %54 in 0 : vector<8x128xf32>, vector<8x128xf32>, vector<8x128xf32>, vector<8x128xf32> -> vector<32x128xf32>
    %c2_29 = arith.constant 2 : index
    %c0_30 = arith.constant 0 : index
    %c0_31 = arith.constant 0 : index
    %56 = vector.load %arg8[%c2_29, %c0_30, %c0_31] : memref<4x8x32xf32, #tpu.memory_space<vmem>>, vector<1x8x32xf32>
    %57 = vector.shape_cast %56 : vector<1x8x32xf32> to vector<8x32xf32>
    %cst_32 = arith.constant dense<0.000000e+00> : vector<8x128xf32>
    %58 = tpu.matmul %57, %55, %cst_32 {dimension_numbers = #tpu.dot_dimension_numbers<[1], [0], [0], [1], [0, 0, 1, 1], [], []>} : vector<8x32xf32>, vector<32x128xf32>, vector<8x128xf32> -> vector<8x128xf32>
    %c127_i32_33 = arith.constant 127 : i32
    %59 = tpu.dynamic_rotate %1 by %c127_i32_33 dim 1 : vector<8x128xf32>, i32 -> vector<8x128xf32>
    %c13 = arith.constant 13 : index
    %c0_34 = arith.constant 0 : index
    %c0_35 = arith.constant 0 : index
    %60 = vector.load %arg11[%c13, %c0_34, %c0_35] : memref<16x1x128xf32, #tpu.memory_space<vmem>>, vector<1x1x128xf32>
    %61 = vector.shape_cast %60 : vector<1x1x128xf32> to vector<1x128xf32>
    %62 = vector.broadcast %61 : vector<1x128xf32> to vector<8x128xf32>
    %63 = arith.mulf %59, %62 : vector<8x128xf32>
    %c120_i32_36 = arith.constant 120 : i32
    %64 = tpu.dynamic_rotate %1 by %c120_i32_36 dim 1 : vector<8x128xf32>, i32 -> vector<8x128xf32>
    %c14 = arith.constant 14 : index
    %c0_37 = arith.constant 0 : index
    %c0_38 = arith.constant 0 : index
    %65 = vector.load %arg11[%c14, %c0_37, %c0_38] : memref<16x1x128xf32, #tpu.memory_space<vmem>>, vector<1x1x128xf32>
    %66 = vector.shape_cast %65 : vector<1x1x128xf32> to vector<1x128xf32>
    %67 = vector.broadcast %66 : vector<1x128xf32> to vector<8x128xf32>
    %68 = arith.mulf %64, %67 : vector<8x128xf32>
    %c119_i32 = arith.constant 119 : i32
    %69 = tpu.dynamic_rotate %1 by %c119_i32 dim 1 : vector<8x128xf32>, i32 -> vector<8x128xf32>
    %c15 = arith.constant 15 : index
    %c0_39 = arith.constant 0 : index
    %c0_40 = arith.constant 0 : index
    %70 = vector.load %arg11[%c15, %c0_39, %c0_40] : memref<16x1x128xf32, #tpu.memory_space<vmem>>, vector<1x1x128xf32>
    %71 = vector.shape_cast %70 : vector<1x1x128xf32> to vector<1x128xf32>
    %72 = vector.broadcast %71 : vector<1x128xf32> to vector<8x128xf32>
    %73 = arith.mulf %69, %72 : vector<8x128xf32>
    %74 = tpu.concatenate %1, %63, %68, %73 in 0 : vector<8x128xf32>, vector<8x128xf32>, vector<8x128xf32>, vector<8x128xf32> -> vector<32x128xf32>
    %c3_41 = arith.constant 3 : index
    %c0_42 = arith.constant 0 : index
    %c0_43 = arith.constant 0 : index
    %75 = vector.load %arg8[%c3_41, %c0_42, %c0_43] : memref<4x8x32xf32, #tpu.memory_space<vmem>>, vector<1x8x32xf32>
    %76 = vector.shape_cast %75 : vector<1x8x32xf32> to vector<8x32xf32>
    %cst_44 = arith.constant dense<0.000000e+00> : vector<8x128xf32>
    %77 = tpu.matmul %76, %74, %cst_44 {dimension_numbers = #tpu.dot_dimension_numbers<[1], [0], [0], [1], [0, 0, 1, 1], [], []>} : vector<8x32xf32>, vector<32x128xf32>, vector<8x128xf32> -> vector<8x128xf32>
    %78 = tpu.concatenate %20, %39, %58, %77 in 1 : vector<8x128xf32>, vector<8x128xf32>, vector<8x128xf32>, vector<8x128xf32> -> vector<8x512xf32>
    %c0_45 = arith.constant 0 : index
    %c0_46 = arith.constant 0 : index
    %79 = vector.load %arg10[%c0_45, %c0_46] : memref<512x256xf32, #tpu.memory_space<vmem>>, vector<512x256xf32>
    %cst_47 = arith.constant dense<0.000000e+00> : vector<8x256xf32>
    %80 = tpu.matmul %78, %79, %cst_47 {dimension_numbers = #tpu.dot_dimension_numbers<[1], [0], [0], [1], [0, 0, 1, 1], [], []>} : vector<8x512xf32>, vector<512x256xf32>, vector<8x256xf32> -> vector<8x256xf32>
    %c0_48 = arith.constant 0 : index
    %c0_49 = arith.constant 0 : index
    %81 = vector.load %arg9[%c0_48, %c0_49] : memref<8x1xf32, #tpu.memory_space<vmem>>, vector<8x1xf32>
    %82 = vector.broadcast %81 : vector<8x1xf32> to vector<8x256xf32>
    %83 = arith.addf %80, %82 : vector<8x256xf32>
    %c0_50 = arith.constant 0 : index
    %c0_51 = arith.constant 0 : index
    %84 = vector.load %arg12[%c0_50, %c0_51] : memref<8x72xf32, #tpu.memory_space<vmem>>, vector<8x72xf32>
    %c0_52 = arith.constant 0 : index
    %c0_53 = arith.constant 0 : index
    %85 = vector.load %arg13[%c0_52, %c0_53] : memref<8x1xf32, #tpu.memory_space<vmem>>, vector<8x1xf32>
    %c17_i32 = arith.constant 17 : i32
    %86 = tpu.dynamic_rotate %83 by %c17_i32 dim 1 : vector<8x256xf32>, i32 -> vector<8x256xf32>
    %c0_54 = arith.constant 0 : index
    %c0_55 = arith.constant 0 : index
    %c0_56 = arith.constant 0 : index
    %87 = vector.load %arg16[%c0_54, %c0_55, %c0_56] : memref<9x1x256xf32, #tpu.memory_space<vmem>>, vector<1x1x256xf32>
    %88 = vector.shape_cast %87 : vector<1x1x256xf32> to vector<1x256xf32>
    %89 = vector.broadcast %88 : vector<1x256xf32> to vector<8x256xf32>
    %90 = arith.mulf %86, %89 : vector<8x256xf32>
    %c16_i32 = arith.constant 16 : i32
    %91 = tpu.dynamic_rotate %83 by %c16_i32 dim 1 : vector<8x256xf32>, i32 -> vector<8x256xf32>
    %c1_57 = arith.constant 1 : index
    %c0_58 = arith.constant 0 : index
    %c0_59 = arith.constant 0 : index
    %92 = vector.load %arg16[%c1_57, %c0_58, %c0_59] : memref<9x1x256xf32, #tpu.memory_space<vmem>>, vector<1x1x256xf32>
    %93 = vector.shape_cast %92 : vector<1x1x256xf32> to vector<1x256xf32>
    %94 = vector.broadcast %93 : vector<1x256xf32> to vector<8x256xf32>
    %95 = arith.mulf %91, %94 : vector<8x256xf32>
    %c15_i32 = arith.constant 15 : i32
    %96 = tpu.dynamic_rotate %83 by %c15_i32 dim 1 : vector<8x256xf32>, i32 -> vector<8x256xf32>
    %c2_60 = arith.constant 2 : index
    %c0_61 = arith.constant 0 : index
    %c0_62 = arith.constant 0 : index
    %97 = vector.load %arg16[%c2_60, %c0_61, %c0_62] : memref<9x1x256xf32, #tpu.memory_space<vmem>>, vector<1x1x256xf32>
    %98 = vector.shape_cast %97 : vector<1x1x256xf32> to vector<1x256xf32>
    %99 = vector.broadcast %98 : vector<1x256xf32> to vector<8x256xf32>
    %100 = arith.mulf %96, %99 : vector<8x256xf32>
    %c1_i32_63 = arith.constant 1 : i32
    %101 = tpu.dynamic_rotate %83 by %c1_i32_63 dim 1 : vector<8x256xf32>, i32 -> vector<8x256xf32>
    %c3_64 = arith.constant 3 : index
    %c0_65 = arith.constant 0 : index
    %c0_66 = arith.constant 0 : index
    %102 = vector.load %arg16[%c3_64, %c0_65, %c0_66] : memref<9x1x256xf32, #tpu.memory_space<vmem>>, vector<1x1x256xf32>
    %103 = vector.shape_cast %102 : vector<1x1x256xf32> to vector<1x256xf32>
    %104 = vector.broadcast %103 : vector<1x256xf32> to vector<8x256xf32>
    %105 = arith.mulf %101, %104 : vector<8x256xf32>
    %c255_i32 = arith.constant 255 : i32
    %106 = tpu.dynamic_rotate %83 by %c255_i32 dim 1 : vector<8x256xf32>, i32 -> vector<8x256xf32>
    %c5_67 = arith.constant 5 : index
    %c0_68 = arith.constant 0 : index
    %c0_69 = arith.constant 0 : index
    %107 = vector.load %arg16[%c5_67, %c0_68, %c0_69] : memref<9x1x256xf32, #tpu.memory_space<vmem>>, vector<1x1x256xf32>
    %108 = vector.shape_cast %107 : vector<1x1x256xf32> to vector<1x256xf32>
    %109 = vector.broadcast %108 : vector<1x256xf32> to vector<8x256xf32>
    %110 = arith.mulf %106, %109 : vector<8x256xf32>
    %c241_i32 = arith.constant 241 : i32
    %111 = tpu.dynamic_rotate %83 by %c241_i32 dim 1 : vector<8x256xf32>, i32 -> vector<8x256xf32>
    %c6_70 = arith.constant 6 : index
    %c0_71 = arith.constant 0 : index
    %c0_72 = arith.constant 0 : index
    %112 = vector.load %arg16[%c6_70, %c0_71, %c0_72] : memref<9x1x256xf32, #tpu.memory_space<vmem>>, vector<1x1x256xf32>
    %113 = vector.shape_cast %112 : vector<1x1x256xf32> to vector<1x256xf32>
    %114 = vector.broadcast %113 : vector<1x256xf32> to vector<8x256xf32>
    %115 = arith.mulf %111, %114 : vector<8x256xf32>
    %c240_i32 = arith.constant 240 : i32
    %116 = tpu.dynamic_rotate %83 by %c240_i32 dim 1 : vector<8x256xf32>, i32 -> vector<8x256xf32>
    %c7_73 = arith.constant 7 : index
    %c0_74 = arith.constant 0 : index
    %c0_75 = arith.constant 0 : index
    %117 = vector.load %arg16[%c7_73, %c0_74, %c0_75] : memref<9x1x256xf32, #tpu.memory_space<vmem>>, vector<1x1x256xf32>
    %118 = vector.shape_cast %117 : vector<1x1x256xf32> to vector<1x256xf32>
    %119 = vector.broadcast %118 : vector<1x256xf32> to vector<8x256xf32>
    %120 = arith.mulf %116, %119 : vector<8x256xf32>
    %c239_i32 = arith.constant 239 : i32
    %121 = tpu.dynamic_rotate %83 by %c239_i32 dim 1 : vector<8x256xf32>, i32 -> vector<8x256xf32>
    %c8 = arith.constant 8 : index
    %c0_76 = arith.constant 0 : index
    %c0_77 = arith.constant 0 : index
    %122 = vector.load %arg16[%c8, %c0_76, %c0_77] : memref<9x1x256xf32, #tpu.memory_space<vmem>>, vector<1x1x256xf32>
    %123 = vector.shape_cast %122 : vector<1x1x256xf32> to vector<1x256xf32>
    %124 = vector.broadcast %123 : vector<1x256xf32> to vector<8x256xf32>
    %125 = arith.mulf %121, %124 : vector<8x256xf32>
    %126 = tpu.concatenate %90, %95, %100, %105, %83, %110, %115, %120, %125 in 0 : vector<8x256xf32>, vector<8x256xf32>, vector<8x256xf32>, vector<8x256xf32>, vector<8x256xf32>, vector<8x256xf32>, vector<8x256xf32>, vector<8x256xf32>, vector<8x256xf32> -> vector<72x256xf32>
    %cst_78 = arith.constant dense<0.000000e+00> : vector<8x256xf32>
    %127 = tpu.matmul %84, %126, %cst_78 {dimension_numbers = #tpu.dot_dimension_numbers<[1], [0], [0], [1], [0, 0, 1, 1], [], []>} : vector<8x72xf32>, vector<72x256xf32>, vector<8x256xf32> -> vector<8x256xf32>
    %128 = vector.broadcast %85 : vector<8x1xf32> to vector<8x256xf32>
    %129 = arith.addf %127, %128 : vector<8x256xf32>
    %c0_79 = arith.constant 0 : index
    %c0_80 = arith.constant 0 : index
    %130 = vector.load %arg14[%c0_79, %c0_80] : memref<8x256xf32, #tpu.memory_space<vmem>>, vector<8x256xf32>
    %c0_81 = arith.constant 0 : index
    %c0_82 = arith.constant 0 : index
    %131 = vector.load %arg15[%c0_81, %c0_82] : memref<8x256xf32, #tpu.memory_space<vmem>>, vector<8x256xf32>
    %132 = vector.shape_cast %129 : vector<8x256xf32> to vector<1x8x256xf32>
    %cst_83 = arith.constant dense<0.000000e+00> : vector<1xf32>
    %133 = vector.multi_reduction <add>, %132, %cst_83 [1, 2] : vector<1x8x256xf32> to vector<1xf32>
    %134 = vector.shape_cast %133 : vector<1xf32> to vector<1x1x1xf32>
    %135 = vector.extract %134[0, 0, 0] : f32 from vector<1x1x1xf32>
    %136 = vector.broadcast %135 : f32 to vector<1x1xf32>
    %137 = arith.mulf %129, %129 : vector<8x256xf32>
    %138 = vector.shape_cast %137 : vector<8x256xf32> to vector<1x8x256xf32>
    %cst_84 = arith.constant dense<0.000000e+00> : vector<1xf32>
    %139 = vector.multi_reduction <add>, %138, %cst_84 [1, 2] : vector<1x8x256xf32> to vector<1xf32>
    %140 = vector.shape_cast %139 : vector<1xf32> to vector<1x1x1xf32>
    %141 = vector.extract %140[0, 0, 0] : f32 from vector<1x1x1xf32>
    %142 = vector.broadcast %141 : f32 to vector<1x1xf32>
    %cst_85 = arith.constant 9.765625E-4 : f32
    %143 = vector.broadcast %cst_85 : f32 to vector<1x1xf32>
    %144 = arith.mulf %136, %143 : vector<1x1xf32>
    %cst_86 = arith.constant 9.765625E-4 : f32
    %145 = vector.broadcast %cst_86 : f32 to vector<1x1xf32>
    %146 = arith.mulf %142, %145 : vector<1x1xf32>
    %147 = arith.mulf %144, %144 : vector<1x1xf32>
    %148 = arith.subf %146, %147 : vector<1x1xf32>
    %149 = vector.broadcast %144 : vector<1x1xf32> to vector<8x256xf32>
    %150 = arith.subf %129, %149 : vector<8x256xf32>
    %cst_87 = arith.constant 9.99999974E-6 : f32
    %151 = vector.broadcast %cst_87 : f32 to vector<1x1xf32>
    %152 = arith.addf %148, %151 : vector<1x1xf32>
    %153 = math.rsqrt %152 : vector<1x1xf32>
    %154 = vector.broadcast %153 : vector<1x1xf32> to vector<8x256xf32>
    %155 = arith.mulf %150, %154 : vector<8x256xf32>
    %156 = arith.mulf %155, %130 : vector<8x256xf32>
    %157 = arith.addf %156, %131 : vector<8x256xf32>
    %cst_88 = arith.constant 0.000000e+00 : f32
    %158 = vector.broadcast %cst_88 : f32 to vector<8x256xf32>
    %159 = arith.cmpf oge, %157, %158 : vector<8x256xf32>
    %cst_89 = arith.constant 0.00999999977 : f32
    %160 = vector.broadcast %cst_89 : f32 to vector<8x256xf32>
    %161 = arith.mulf %160, %157 : vector<8x256xf32>
    %162 = arith.select %159, %157, %161 : vector<8x256xi1>, vector<8x256xf32>
    %c0_90 = arith.constant 0 : index
    %c0_91 = arith.constant 0 : index
    %c0_92 = arith.constant 0 : index
    %163 = vector.load %arg2[%c0_90, %c0_91, %c0_92] : memref<1x8x256xf32, #tpu.memory_space<vmem>>, vector<1x8x256xf32>
    %164 = vector.shape_cast %163 : vector<1x8x256xf32> to vector<8x256xf32>
    %c0_93 = arith.constant 0 : index
    %c0_94 = arith.constant 0 : index
    %165 = vector.load %arg17[%c0_93, %c0_94] : memref<8x72xf32, #tpu.memory_space<vmem>>, vector<8x72xf32>
    %c0_95 = arith.constant 0 : index
    %c0_96 = arith.constant 0 : index
    %166 = vector.load %arg18[%c0_95, %c0_96] : memref<8x1xf32, #tpu.memory_space<vmem>>, vector<8x1xf32>
    %c17_i32_97 = arith.constant 17 : i32
    %167 = tpu.dynamic_rotate %164 by %c17_i32_97 dim 1 : vector<8x256xf32>, i32 -> vector<8x256xf32>
    %c0_98 = arith.constant 0 : index
    %c0_99 = arith.constant 0 : index
    %c0_100 = arith.constant 0 : index
    %168 = vector.load %arg16[%c0_98, %c0_99, %c0_100] : memref<9x1x256xf32, #tpu.memory_space<vmem>>, vector<1x1x256xf32>
    %169 = vector.shape_cast %168 : vector<1x1x256xf32> to vector<1x256xf32>
    %170 = vector.broadcast %169 : vector<1x256xf32> to vector<8x256xf32>
    %171 = arith.mulf %167, %170 : vector<8x256xf32>
    %c16_i32_101 = arith.constant 16 : i32
    %172 = tpu.dynamic_rotate %164 by %c16_i32_101 dim 1 : vector<8x256xf32>, i32 -> vector<8x256xf32>
    %c1_102 = arith.constant 1 : index
    %c0_103 = arith.constant 0 : index
    %c0_104 = arith.constant 0 : index
    %173 = vector.load %arg16[%c1_102, %c0_103, %c0_104] : memref<9x1x256xf32, #tpu.memory_space<vmem>>, vector<1x1x256xf32>
    %174 = vector.shape_cast %173 : vector<1x1x256xf32> to vector<1x256xf32>
    %175 = vector.broadcast %174 : vector<1x256xf32> to vector<8x256xf32>
    %176 = arith.mulf %172, %175 : vector<8x256xf32>
    %c15_i32_105 = arith.constant 15 : i32
    %177 = tpu.dynamic_rotate %164 by %c15_i32_105 dim 1 : vector<8x256xf32>, i32 -> vector<8x256xf32>
    %c2_106 = arith.constant 2 : index
    %c0_107 = arith.constant 0 : index
    %c0_108 = arith.constant 0 : index
    %178 = vector.load %arg16[%c2_106, %c0_107, %c0_108] : memref<9x1x256xf32, #tpu.memory_space<vmem>>, vector<1x1x256xf32>
    %179 = vector.shape_cast %178 : vector<1x1x256xf32> to vector<1x256xf32>
    %180 = vector.broadcast %179 : vector<1x256xf32> to vector<8x256xf32>
    %181 = arith.mulf %177, %180 : vector<8x256xf32>
    %c1_i32_109 = arith.constant 1 : i32
    %182 = tpu.dynamic_rotate %164 by %c1_i32_109 dim 1 : vector<8x256xf32>, i32 -> vector<8x256xf32>
    %c3_110 = arith.constant 3 : index
    %c0_111 = arith.constant 0 : index
    %c0_112 = arith.constant 0 : index
    %183 = vector.load %arg16[%c3_110, %c0_111, %c0_112] : memref<9x1x256xf32, #tpu.memory_space<vmem>>, vector<1x1x256xf32>
    %184 = vector.shape_cast %183 : vector<1x1x256xf32> to vector<1x256xf32>
    %185 = vector.broadcast %184 : vector<1x256xf32> to vector<8x256xf32>
    %186 = arith.mulf %182, %185 : vector<8x256xf32>
    %c255_i32_113 = arith.constant 255 : i32
    %187 = tpu.dynamic_rotate %164 by %c255_i32_113 dim 1 : vector<8x256xf32>, i32 -> vector<8x256xf32>
    %c5_114 = arith.constant 5 : index
    %c0_115 = arith.constant 0 : index
    %c0_116 = arith.constant 0 : index
    %188 = vector.load %arg16[%c5_114, %c0_115, %c0_116] : memref<9x1x256xf32, #tpu.memory_space<vmem>>, vector<1x1x256xf32>
    %189 = vector.shape_cast %188 : vector<1x1x256xf32> to vector<1x256xf32>
    %190 = vector.broadcast %189 : vector<1x256xf32> to vector<8x256xf32>
    %191 = arith.mulf %187, %190 : vector<8x256xf32>
    %c241_i32_117 = arith.constant 241 : i32
    %192 = tpu.dynamic_rotate %164 by %c241_i32_117 dim 1 : vector<8x256xf32>, i32 -> vector<8x256xf32>
    %c6_118 = arith.constant 6 : index
    %c0_119 = arith.constant 0 : index
    %c0_120 = arith.constant 0 : index
    %193 = vector.load %arg16[%c6_118, %c0_119, %c0_120] : memref<9x1x256xf32, #tpu.memory_space<vmem>>, vector<1x1x256xf32>
    %194 = vector.shape_cast %193 : vector<1x1x256xf32> to vector<1x256xf32>
    %195 = vector.broadcast %194 : vector<1x256xf32> to vector<8x256xf32>
    %196 = arith.mulf %192, %195 : vector<8x256xf32>
    %c240_i32_121 = arith.constant 240 : i32
    %197 = tpu.dynamic_rotate %164 by %c240_i32_121 dim 1 : vector<8x256xf32>, i32 -> vector<8x256xf32>
    %c7_122 = arith.constant 7 : index
    %c0_123 = arith.constant 0 : index
    %c0_124 = arith.constant 0 : index
    %198 = vector.load %arg16[%c7_122, %c0_123, %c0_124] : memref<9x1x256xf32, #tpu.memory_space<vmem>>, vector<1x1x256xf32>
    %199 = vector.shape_cast %198 : vector<1x1x256xf32> to vector<1x256xf32>
    %200 = vector.broadcast %199 : vector<1x256xf32> to vector<8x256xf32>
    %201 = arith.mulf %197, %200 : vector<8x256xf32>
    %c239_i32_125 = arith.constant 239 : i32
    %202 = tpu.dynamic_rotate %164 by %c239_i32_125 dim 1 : vector<8x256xf32>, i32 -> vector<8x256xf32>
    %c8_126 = arith.constant 8 : index
    %c0_127 = arith.constant 0 : index
    %c0_128 = arith.constant 0 : index
    %203 = vector.load %arg16[%c8_126, %c0_127, %c0_128] : memref<9x1x256xf32, #tpu.memory_space<vmem>>, vector<1x1x256xf32>
    %204 = vector.shape_cast %203 : vector<1x1x256xf32> to vector<1x256xf32>
    %205 = vector.broadcast %204 : vector<1x256xf32> to vector<8x256xf32>
    %206 = arith.mulf %202, %205 : vector<8x256xf32>
    %207 = tpu.concatenate %171, %176, %181, %186, %164, %191, %196, %201, %206 in 0 : vector<8x256xf32>, vector<8x256xf32>, vector<8x256xf32>, vector<8x256xf32>, vector<8x256xf32>, vector<8x256xf32>, vector<8x256xf32>, vector<8x256xf32>, vector<8x256xf32> -> vector<72x256xf32>
    %cst_129 = arith.constant dense<0.000000e+00> : vector<8x256xf32>
    %208 = tpu.matmul %165, %207, %cst_129 {dimension_numbers = #tpu.dot_dimension_numbers<[1], [0], [0], [1], [0, 0, 1, 1], [], []>} : vector<8x72xf32>, vector<72x256xf32>, vector<8x256xf32> -> vector<8x256xf32>
    %209 = vector.broadcast %166 : vector<8x1xf32> to vector<8x256xf32>
    %210 = arith.addf %208, %209 : vector<8x256xf32>
    %211 = arith.addf %162, %210 : vector<8x256xf32>
    %c0_130 = arith.constant 0 : index
    %c0_131 = arith.constant 0 : index
    %c0_132 = arith.constant 0 : index
    %212 = vector.load %arg4[%c0_130, %c0_131, %c0_132] : memref<1x8x1xf32, #tpu.memory_space<vmem>>, vector<1x8x1xf32>
    %213 = vector.shape_cast %212 : vector<1x8x1xf32> to vector<8x1xf32>
    %c0_133 = arith.constant 0 : index
    %c0_134 = arith.constant 0 : index
    %c0_135 = arith.constant 0 : index
    %214 = vector.load %arg5[%c0_133, %c0_134, %c0_135] : memref<1x8x1xf32, #tpu.memory_space<vmem>>, vector<1x8x1xf32>
    %215 = vector.shape_cast %214 : vector<1x8x1xf32> to vector<8x1xf32>
    %cst_136 = arith.constant dense<0.000000e+00> : vector<8xf32>
    %216 = vector.multi_reduction <add>, %211, %cst_136 [1] : vector<8x256xf32> to vector<8xf32>
    %217 = vector.shape_cast %216 : vector<8xf32> to vector<8x1xf32>
    %cst_137 = arith.constant 2.560000e+02 : f32
    %218 = vector.broadcast %cst_137 : f32 to vector<8x1xf32>
    %219 = arith.divf %217, %218 : vector<8x1xf32>
    %220 = vector.broadcast %219 : vector<8x1xf32> to vector<8x256xf32>
    %221 = arith.subf %211, %220 : vector<8x256xf32>
    %222 = arith.mulf %221, %221 : vector<8x256xf32>
    %cst_138 = arith.constant dense<0.000000e+00> : vector<8xf32>
    %223 = vector.multi_reduction <add>, %222, %cst_138 [1] : vector<8x256xf32> to vector<8xf32>
    %224 = vector.shape_cast %223 : vector<8xf32> to vector<8x1xf32>
    %cst_139 = arith.constant 0.00392156886 : f32
    %225 = vector.broadcast %cst_139 : f32 to vector<8x1xf32>
    %226 = arith.mulf %224, %225 : vector<8x1xf32>
    %227 = math.sqrt %226 : vector<8x1xf32>
    %cst_140 = arith.constant 9.99999971E-10 : f32
    %228 = vector.broadcast %cst_140 : f32 to vector<8x1xf32>
    %229 = arith.addf %227, %228 : vector<8x1xf32>
    %230 = vector.broadcast %229 : vector<8x1xf32> to vector<8x256xf32>
    %231 = arith.divf %221, %230 : vector<8x256xf32>
    %232 = vector.broadcast %213 : vector<8x1xf32> to vector<8x256xf32>
    %233 = arith.mulf %232, %231 : vector<8x256xf32>
    %234 = vector.broadcast %215 : vector<8x1xf32> to vector<8x256xf32>
    %235 = arith.addf %233, %234 : vector<8x256xf32>
    %c0_141 = arith.constant 0 : index
    %c0_142 = arith.constant 0 : index
    %c0_143 = arith.constant 0 : index
    %236 = vector.load %arg21[%c0_141, %c0_142, %c0_143] : memref<2x8x72xf32, #tpu.memory_space<vmem>>, vector<1x8x72xf32>
    %237 = vector.shape_cast %236 : vector<1x8x72xf32> to vector<8x72xf32>
    %c0_144 = arith.constant 0 : index
    %c0_145 = arith.constant 0 : index
    %c0_146 = arith.constant 0 : index
    %238 = vector.load %arg22[%c0_144, %c0_145, %c0_146] : memref<2x8x1xf32, #tpu.memory_space<vmem>>, vector<1x8x1xf32>
    %239 = vector.shape_cast %238 : vector<1x8x1xf32> to vector<8x1xf32>
    %c17_i32_147 = arith.constant 17 : i32
    %240 = tpu.dynamic_rotate %235 by %c17_i32_147 dim 1 : vector<8x256xf32>, i32 -> vector<8x256xf32>
    %c0_148 = arith.constant 0 : index
    %c0_149 = arith.constant 0 : index
    %c0_150 = arith.constant 0 : index
    %241 = vector.load %arg16[%c0_148, %c0_149, %c0_150] : memref<9x1x256xf32, #tpu.memory_space<vmem>>, vector<1x1x256xf32>
    %242 = vector.shape_cast %241 : vector<1x1x256xf32> to vector<1x256xf32>
    %243 = vector.broadcast %242 : vector<1x256xf32> to vector<8x256xf32>
    %244 = arith.mulf %240, %243 : vector<8x256xf32>
    %c16_i32_151 = arith.constant 16 : i32
    %245 = tpu.dynamic_rotate %235 by %c16_i32_151 dim 1 : vector<8x256xf32>, i32 -> vector<8x256xf32>
    %c1_152 = arith.constant 1 : index
    %c0_153 = arith.constant 0 : index
    %c0_154 = arith.constant 0 : index
    %246 = vector.load %arg16[%c1_152, %c0_153, %c0_154] : memref<9x1x256xf32, #tpu.memory_space<vmem>>, vector<1x1x256xf32>
    %247 = vector.shape_cast %246 : vector<1x1x256xf32> to vector<1x256xf32>
    %248 = vector.broadcast %247 : vector<1x256xf32> to vector<8x256xf32>
    %249 = arith.mulf %245, %248 : vector<8x256xf32>
    %c15_i32_155 = arith.constant 15 : i32
    %250 = tpu.dynamic_rotate %235 by %c15_i32_155 dim 1 : vector<8x256xf32>, i32 -> vector<8x256xf32>
    %c2_156 = arith.constant 2 : index
    %c0_157 = arith.constant 0 : index
    %c0_158 = arith.constant 0 : index
    %251 = vector.load %arg16[%c2_156, %c0_157, %c0_158] : memref<9x1x256xf32, #tpu.memory_space<vmem>>, vector<1x1x256xf32>
    %252 = vector.shape_cast %251 : vector<1x1x256xf32> to vector<1x256xf32>
    %253 = vector.broadcast %252 : vector<1x256xf32> to vector<8x256xf32>
    %254 = arith.mulf %250, %253 : vector<8x256xf32>
    %c1_i32_159 = arith.constant 1 : i32
    %255 = tpu.dynamic_rotate %235 by %c1_i32_159 dim 1 : vector<8x256xf32>, i32 -> vector<8x256xf32>
    %c3_160 = arith.constant 3 : index
    %c0_161 = arith.constant 0 : index
    %c0_162 = arith.constant 0 : index
    %256 = vector.load %arg16[%c3_160, %c0_161, %c0_162] : memref<9x1x256xf32, #tpu.memory_space<vmem>>, vector<1x1x256xf32>
    %257 = vector.shape_cast %256 : vector<1x1x256xf32> to vector<1x256xf32>
    %258 = vector.broadcast %257 : vector<1x256xf32> to vector<8x256xf32>
    %259 = arith.mulf %255, %258 : vector<8x256xf32>
    %c255_i32_163 = arith.constant 255 : i32
    %260 = tpu.dynamic_rotate %235 by %c255_i32_163 dim 1 : vector<8x256xf32>, i32 -> vector<8x256xf32>
    %c5_164 = arith.constant 5 : index
    %c0_165 = arith.constant 0 : index
    %c0_166 = arith.constant 0 : index
    %261 = vector.load %arg16[%c5_164, %c0_165, %c0_166] : memref<9x1x256xf32, #tpu.memory_space<vmem>>, vector<1x1x256xf32>
    %262 = vector.shape_cast %261 : vector<1x1x256xf32> to vector<1x256xf32>
    %263 = vector.broadcast %262 : vector<1x256xf32> to vector<8x256xf32>
    %264 = arith.mulf %260, %263 : vector<8x256xf32>
    %c241_i32_167 = arith.constant 241 : i32
    %265 = tpu.dynamic_rotate %235 by %c241_i32_167 dim 1 : vector<8x256xf32>, i32 -> vector<8x256xf32>
    %c6_168 = arith.constant 6 : index
    %c0_169 = arith.constant 0 : index
    %c0_170 = arith.constant 0 : index
    %266 = vector.load %arg16[%c6_168, %c0_169, %c0_170] : memref<9x1x256xf32, #tpu.memory_space<vmem>>, vector<1x1x256xf32>
    %267 = vector.shape_cast %266 : vector<1x1x256xf32> to vector<1x256xf32>
    %268 = vector.broadcast %267 : vector<1x256xf32> to vector<8x256xf32>
    %269 = arith.mulf %265, %268 : vector<8x256xf32>
    %c240_i32_171 = arith.constant 240 : i32
    %270 = tpu.dynamic_rotate %235 by %c240_i32_171 dim 1 : vector<8x256xf32>, i32 -> vector<8x256xf32>
    %c7_172 = arith.constant 7 : index
    %c0_173 = arith.constant 0 : index
    %c0_174 = arith.constant 0 : index
    %271 = vector.load %arg16[%c7_172, %c0_173, %c0_174] : memref<9x1x256xf32, #tpu.memory_space<vmem>>, vector<1x1x256xf32>
    %272 = vector.shape_cast %271 : vector<1x1x256xf32> to vector<1x256xf32>
    %273 = vector.broadcast %272 : vector<1x256xf32> to vector<8x256xf32>
    %274 = arith.mulf %270, %273 : vector<8x256xf32>
    %c239_i32_175 = arith.constant 239 : i32
    %275 = tpu.dynamic_rotate %235 by %c239_i32_175 dim 1 : vector<8x256xf32>, i32 -> vector<8x256xf32>
    %c8_176 = arith.constant 8 : index
    %c0_177 = arith.constant 0 : index
    %c0_178 = arith.constant 0 : index
    %276 = vector.load %arg16[%c8_176, %c0_177, %c0_178] : memref<9x1x256xf32, #tpu.memory_space<vmem>>, vector<1x1x256xf32>
    %277 = vector.shape_cast %276 : vector<1x1x256xf32> to vector<1x256xf32>
    %278 = vector.broadcast %277 : vector<1x256xf32> to vector<8x256xf32>
    %279 = arith.mulf %275, %278 : vector<8x256xf32>
    %280 = tpu.concatenate %244, %249, %254, %259, %235, %264, %269, %274, %279 in 0 : vector<8x256xf32>, vector<8x256xf32>, vector<8x256xf32>, vector<8x256xf32>, vector<8x256xf32>, vector<8x256xf32>, vector<8x256xf32>, vector<8x256xf32>, vector<8x256xf32> -> vector<72x256xf32>
    %cst_179 = arith.constant dense<0.000000e+00> : vector<8x256xf32>
    %281 = tpu.matmul %237, %280, %cst_179 {dimension_numbers = #tpu.dot_dimension_numbers<[1], [0], [0], [1], [0, 0, 1, 1], [], []>} : vector<8x72xf32>, vector<72x256xf32>, vector<8x256xf32> -> vector<8x256xf32>
    %282 = vector.broadcast %239 : vector<8x1xf32> to vector<8x256xf32>
    %283 = arith.addf %281, %282 : vector<8x256xf32>
    %c0_180 = arith.constant 0 : index
    %c0_181 = arith.constant 0 : index
    %c0_182 = arith.constant 0 : index
    %284 = vector.load %arg23[%c0_180, %c0_181, %c0_182] : memref<2x8x256xf32, #tpu.memory_space<vmem>>, vector<1x8x256xf32>
    %285 = vector.shape_cast %284 : vector<1x8x256xf32> to vector<8x256xf32>
    %c0_183 = arith.constant 0 : index
    %c0_184 = arith.constant 0 : index
    %c0_185 = arith.constant 0 : index
    %286 = vector.load %arg24[%c0_183, %c0_184, %c0_185] : memref<2x8x256xf32, #tpu.memory_space<vmem>>, vector<1x8x256xf32>
    %287 = vector.shape_cast %286 : vector<1x8x256xf32> to vector<8x256xf32>
    %288 = vector.shape_cast %283 : vector<8x256xf32> to vector<1x8x256xf32>
    %cst_186 = arith.constant dense<0.000000e+00> : vector<1xf32>
    %289 = vector.multi_reduction <add>, %288, %cst_186 [1, 2] : vector<1x8x256xf32> to vector<1xf32>
    %290 = vector.shape_cast %289 : vector<1xf32> to vector<1x1x1xf32>
    %291 = vector.extract %290[0, 0, 0] : f32 from vector<1x1x1xf32>
    %292 = vector.broadcast %291 : f32 to vector<1x1xf32>
    %293 = arith.mulf %283, %283 : vector<8x256xf32>
    %294 = vector.shape_cast %293 : vector<8x256xf32> to vector<1x8x256xf32>
    %cst_187 = arith.constant dense<0.000000e+00> : vector<1xf32>
    %295 = vector.multi_reduction <add>, %294, %cst_187 [1, 2] : vector<1x8x256xf32> to vector<1xf32>
    %296 = vector.shape_cast %295 : vector<1xf32> to vector<1x1x1xf32>
    %297 = vector.extract %296[0, 0, 0] : f32 from vector<1x1x1xf32>
    %298 = vector.broadcast %297 : f32 to vector<1x1xf32>
    %cst_188 = arith.constant 9.765625E-4 : f32
    %299 = vector.broadcast %cst_188 : f32 to vector<1x1xf32>
    %300 = arith.mulf %292, %299 : vector<1x1xf32>
    %cst_189 = arith.constant 9.765625E-4 : f32
    %301 = vector.broadcast %cst_189 : f32 to vector<1x1xf32>
    %302 = arith.mulf %298, %301 : vector<1x1xf32>
    %303 = arith.mulf %300, %300 : vector<1x1xf32>
    %304 = arith.subf %302, %303 : vector<1x1xf32>
    %305 = vector.broadcast %300 : vector<1x1xf32> to vector<8x256xf32>
    %306 = arith.subf %283, %305 : vector<8x256xf32>
    %cst_190 = arith.constant 9.99999974E-6 : f32
    %307 = vector.broadcast %cst_190 : f32 to vector<1x1xf32>
    %308 = arith.addf %304, %307 : vector<1x1xf32>
    %309 = math.rsqrt %308 : vector<1x1xf32>
    %310 = vector.broadcast %309 : vector<1x1xf32> to vector<8x256xf32>
    %311 = arith.mulf %306, %310 : vector<8x256xf32>
    %312 = arith.mulf %311, %285 : vector<8x256xf32>
    %313 = arith.addf %312, %287 : vector<8x256xf32>
    %cst_191 = arith.constant 0.000000e+00 : f32
    %314 = vector.broadcast %cst_191 : f32 to vector<8x256xf32>
    %315 = arith.cmpf oge, %313, %314 : vector<8x256xf32>
    %cst_192 = arith.constant 0.00999999977 : f32
    %316 = vector.broadcast %cst_192 : f32 to vector<8x256xf32>
    %317 = arith.mulf %316, %313 : vector<8x256xf32>
    %318 = arith.select %315, %313, %317 : vector<8x256xi1>, vector<8x256xf32>
    %319 = arith.addf %235, %318 : vector<8x256xf32>
    %c1_193 = arith.constant 1 : index
    %c0_194 = arith.constant 0 : index
    %c0_195 = arith.constant 0 : index
    %320 = vector.load %arg21[%c1_193, %c0_194, %c0_195] : memref<2x8x72xf32, #tpu.memory_space<vmem>>, vector<1x8x72xf32>
    %321 = vector.shape_cast %320 : vector<1x8x72xf32> to vector<8x72xf32>
    %c1_196 = arith.constant 1 : index
    %c0_197 = arith.constant 0 : index
    %c0_198 = arith.constant 0 : index
    %322 = vector.load %arg22[%c1_196, %c0_197, %c0_198] : memref<2x8x1xf32, #tpu.memory_space<vmem>>, vector<1x8x1xf32>
    %323 = vector.shape_cast %322 : vector<1x8x1xf32> to vector<8x1xf32>
    %c17_i32_199 = arith.constant 17 : i32
    %324 = tpu.dynamic_rotate %319 by %c17_i32_199 dim 1 : vector<8x256xf32>, i32 -> vector<8x256xf32>
    %c0_200 = arith.constant 0 : index
    %c0_201 = arith.constant 0 : index
    %c0_202 = arith.constant 0 : index
    %325 = vector.load %arg16[%c0_200, %c0_201, %c0_202] : memref<9x1x256xf32, #tpu.memory_space<vmem>>, vector<1x1x256xf32>
    %326 = vector.shape_cast %325 : vector<1x1x256xf32> to vector<1x256xf32>
    %327 = vector.broadcast %326 : vector<1x256xf32> to vector<8x256xf32>
    %328 = arith.mulf %324, %327 : vector<8x256xf32>
    %c16_i32_203 = arith.constant 16 : i32
    %329 = tpu.dynamic_rotate %319 by %c16_i32_203 dim 1 : vector<8x256xf32>, i32 -> vector<8x256xf32>
    %c1_204 = arith.constant 1 : index
    %c0_205 = arith.constant 0 : index
    %c0_206 = arith.constant 0 : index
    %330 = vector.load %arg16[%c1_204, %c0_205, %c0_206] : memref<9x1x256xf32, #tpu.memory_space<vmem>>, vector<1x1x256xf32>
    %331 = vector.shape_cast %330 : vector<1x1x256xf32> to vector<1x256xf32>
    %332 = vector.broadcast %331 : vector<1x256xf32> to vector<8x256xf32>
    %333 = arith.mulf %329, %332 : vector<8x256xf32>
    %c15_i32_207 = arith.constant 15 : i32
    %334 = tpu.dynamic_rotate %319 by %c15_i32_207 dim 1 : vector<8x256xf32>, i32 -> vector<8x256xf32>
    %c2_208 = arith.constant 2 : index
    %c0_209 = arith.constant 0 : index
    %c0_210 = arith.constant 0 : index
    %335 = vector.load %arg16[%c2_208, %c0_209, %c0_210] : memref<9x1x256xf32, #tpu.memory_space<vmem>>, vector<1x1x256xf32>
    %336 = vector.shape_cast %335 : vector<1x1x256xf32> to vector<1x256xf32>
    %337 = vector.broadcast %336 : vector<1x256xf32> to vector<8x256xf32>
    %338 = arith.mulf %334, %337 : vector<8x256xf32>
    %c1_i32_211 = arith.constant 1 : i32
    %339 = tpu.dynamic_rotate %319 by %c1_i32_211 dim 1 : vector<8x256xf32>, i32 -> vector<8x256xf32>
    %c3_212 = arith.constant 3 : index
    %c0_213 = arith.constant 0 : index
    %c0_214 = arith.constant 0 : index
    %340 = vector.load %arg16[%c3_212, %c0_213, %c0_214] : memref<9x1x256xf32, #tpu.memory_space<vmem>>, vector<1x1x256xf32>
    %341 = vector.shape_cast %340 : vector<1x1x256xf32> to vector<1x256xf32>
    %342 = vector.broadcast %341 : vector<1x256xf32> to vector<8x256xf32>
    %343 = arith.mulf %339, %342 : vector<8x256xf32>
    %c255_i32_215 = arith.constant 255 : i32
    %344 = tpu.dynamic_rotate %319 by %c255_i32_215 dim 1 : vector<8x256xf32>, i32 -> vector<8x256xf32>
    %c5_216 = arith.constant 5 : index
    %c0_217 = arith.constant 0 : index
    %c0_218 = arith.constant 0 : index
    %345 = vector.load %arg16[%c5_216, %c0_217, %c0_218] : memref<9x1x256xf32, #tpu.memory_space<vmem>>, vector<1x1x256xf32>
    %346 = vector.shape_cast %345 : vector<1x1x256xf32> to vector<1x256xf32>
    %347 = vector.broadcast %346 : vector<1x256xf32> to vector<8x256xf32>
    %348 = arith.mulf %344, %347 : vector<8x256xf32>
    %c241_i32_219 = arith.constant 241 : i32
    %349 = tpu.dynamic_rotate %319 by %c241_i32_219 dim 1 : vector<8x256xf32>, i32 -> vector<8x256xf32>
    %c6_220 = arith.constant 6 : index
    %c0_221 = arith.constant 0 : index
    %c0_222 = arith.constant 0 : index
    %350 = vector.load %arg16[%c6_220, %c0_221, %c0_222] : memref<9x1x256xf32, #tpu.memory_space<vmem>>, vector<1x1x256xf32>
    %351 = vector.shape_cast %350 : vector<1x1x256xf32> to vector<1x256xf32>
    %352 = vector.broadcast %351 : vector<1x256xf32> to vector<8x256xf32>
    %353 = arith.mulf %349, %352 : vector<8x256xf32>
    %c240_i32_223 = arith.constant 240 : i32
    %354 = tpu.dynamic_rotate %319 by %c240_i32_223 dim 1 : vector<8x256xf32>, i32 -> vector<8x256xf32>
    %c7_224 = arith.constant 7 : index
    %c0_225 = arith.constant 0 : index
    %c0_226 = arith.constant 0 : index
    %355 = vector.load %arg16[%c7_224, %c0_225, %c0_226] : memref<9x1x256xf32, #tpu.memory_space<vmem>>, vector<1x1x256xf32>
    %356 = vector.shape_cast %355 : vector<1x1x256xf32> to vector<1x256xf32>
    %357 = vector.broadcast %356 : vector<1x256xf32> to vector<8x256xf32>
    %358 = arith.mulf %354, %357 : vector<8x256xf32>
    %c239_i32_227 = arith.constant 239 : i32
    %359 = tpu.dynamic_rotate %319 by %c239_i32_227 dim 1 : vector<8x256xf32>, i32 -> vector<8x256xf32>
    %c8_228 = arith.constant 8 : index
    %c0_229 = arith.constant 0 : index
    %c0_230 = arith.constant 0 : index
    %360 = vector.load %arg16[%c8_228, %c0_229, %c0_230] : memref<9x1x256xf32, #tpu.memory_space<vmem>>, vector<1x1x256xf32>
    %361 = vector.shape_cast %360 : vector<1x1x256xf32> to vector<1x256xf32>
    %362 = vector.broadcast %361 : vector<1x256xf32> to vector<8x256xf32>
    %363 = arith.mulf %359, %362 : vector<8x256xf32>
    %364 = tpu.concatenate %328, %333, %338, %343, %319, %348, %353, %358, %363 in 0 : vector<8x256xf32>, vector<8x256xf32>, vector<8x256xf32>, vector<8x256xf32>, vector<8x256xf32>, vector<8x256xf32>, vector<8x256xf32>, vector<8x256xf32>, vector<8x256xf32> -> vector<72x256xf32>
    %cst_231 = arith.constant dense<0.000000e+00> : vector<8x256xf32>
    %365 = tpu.matmul %321, %364, %cst_231 {dimension_numbers = #tpu.dot_dimension_numbers<[1], [0], [0], [1], [0, 0, 1, 1], [], []>} : vector<8x72xf32>, vector<72x256xf32>, vector<8x256xf32> -> vector<8x256xf32>
    %366 = vector.broadcast %323 : vector<8x1xf32> to vector<8x256xf32>
    %367 = arith.addf %365, %366 : vector<8x256xf32>
    %c1_232 = arith.constant 1 : index
    %c0_233 = arith.constant 0 : index
    %c0_234 = arith.constant 0 : index
    %368 = vector.load %arg23[%c1_232, %c0_233, %c0_234] : memref<2x8x256xf32, #tpu.memory_space<vmem>>, vector<1x8x256xf32>
    %369 = vector.shape_cast %368 : vector<1x8x256xf32> to vector<8x256xf32>
    %c1_235 = arith.constant 1 : index
    %c0_236 = arith.constant 0 : index
    %c0_237 = arith.constant 0 : index
    %370 = vector.load %arg24[%c1_235, %c0_236, %c0_237] : memref<2x8x256xf32, #tpu.memory_space<vmem>>, vector<1x8x256xf32>
    %371 = vector.shape_cast %370 : vector<1x8x256xf32> to vector<8x256xf32>
    %372 = vector.shape_cast %367 : vector<8x256xf32> to vector<1x8x256xf32>
    %cst_238 = arith.constant dense<0.000000e+00> : vector<1xf32>
    %373 = vector.multi_reduction <add>, %372, %cst_238 [1, 2] : vector<1x8x256xf32> to vector<1xf32>
    %374 = vector.shape_cast %373 : vector<1xf32> to vector<1x1x1xf32>
    %375 = vector.extract %374[0, 0, 0] : f32 from vector<1x1x1xf32>
    %376 = vector.broadcast %375 : f32 to vector<1x1xf32>
    %377 = arith.mulf %367, %367 : vector<8x256xf32>
    %378 = vector.shape_cast %377 : vector<8x256xf32> to vector<1x8x256xf32>
    %cst_239 = arith.constant dense<0.000000e+00> : vector<1xf32>
    %379 = vector.multi_reduction <add>, %378, %cst_239 [1, 2] : vector<1x8x256xf32> to vector<1xf32>
    %380 = vector.shape_cast %379 : vector<1xf32> to vector<1x1x1xf32>
    %381 = vector.extract %380[0, 0, 0] : f32 from vector<1x1x1xf32>
    %382 = vector.broadcast %381 : f32 to vector<1x1xf32>
    %cst_240 = arith.constant 9.765625E-4 : f32
    %383 = vector.broadcast %cst_240 : f32 to vector<1x1xf32>
    %384 = arith.mulf %376, %383 : vector<1x1xf32>
    %cst_241 = arith.constant 9.765625E-4 : f32
    %385 = vector.broadcast %cst_241 : f32 to vector<1x1xf32>
    %386 = arith.mulf %382, %385 : vector<1x1xf32>
    %387 = arith.mulf %384, %384 : vector<1x1xf32>
    %388 = arith.subf %386, %387 : vector<1x1xf32>
    %389 = vector.broadcast %384 : vector<1x1xf32> to vector<8x256xf32>
    %390 = arith.subf %367, %389 : vector<8x256xf32>
    %cst_242 = arith.constant 9.99999974E-6 : f32
    %391 = vector.broadcast %cst_242 : f32 to vector<1x1xf32>
    %392 = arith.addf %388, %391 : vector<1x1xf32>
    %393 = math.rsqrt %392 : vector<1x1xf32>
    %394 = vector.broadcast %393 : vector<1x1xf32> to vector<8x256xf32>
    %395 = arith.mulf %390, %394 : vector<8x256xf32>
    %396 = arith.mulf %395, %369 : vector<8x256xf32>
    %397 = arith.addf %396, %371 : vector<8x256xf32>
    %cst_243 = arith.constant 0.000000e+00 : f32
    %398 = vector.broadcast %cst_243 : f32 to vector<8x256xf32>
    %399 = arith.cmpf oge, %397, %398 : vector<8x256xf32>
    %cst_244 = arith.constant 0.00999999977 : f32
    %400 = vector.broadcast %cst_244 : f32 to vector<8x256xf32>
    %401 = arith.mulf %400, %397 : vector<8x256xf32>
    %402 = arith.select %399, %397, %401 : vector<8x256xi1>, vector<8x256xf32>
    %403 = arith.addf %319, %402 : vector<8x256xf32>
    %c0_245 = arith.constant 0 : index
    %c0_246 = arith.constant 0 : index
    %c0_247 = arith.constant 0 : index
    %404 = vector.load %arg3[%c0_245, %c0_246, %c0_247] : memref<1x8x256xf32, #tpu.memory_space<vmem>>, vector<1x8x256xf32>
    %405 = vector.shape_cast %404 : vector<1x8x256xf32> to vector<8x256xf32>
    %c0_248 = arith.constant 0 : index
    %c0_249 = arith.constant 0 : index
    %406 = vector.load %arg19[%c0_248, %c0_249] : memref<8x72xf32, #tpu.memory_space<vmem>>, vector<8x72xf32>
    %c0_250 = arith.constant 0 : index
    %c0_251 = arith.constant 0 : index
    %407 = vector.load %arg20[%c0_250, %c0_251] : memref<8x1xf32, #tpu.memory_space<vmem>>, vector<8x1xf32>
    %c17_i32_252 = arith.constant 17 : i32
    %408 = tpu.dynamic_rotate %405 by %c17_i32_252 dim 1 : vector<8x256xf32>, i32 -> vector<8x256xf32>
    %c0_253 = arith.constant 0 : index
    %c0_254 = arith.constant 0 : index
    %c0_255 = arith.constant 0 : index
    %409 = vector.load %arg16[%c0_253, %c0_254, %c0_255] : memref<9x1x256xf32, #tpu.memory_space<vmem>>, vector<1x1x256xf32>
    %410 = vector.shape_cast %409 : vector<1x1x256xf32> to vector<1x256xf32>
    %411 = vector.broadcast %410 : vector<1x256xf32> to vector<8x256xf32>
    %412 = arith.mulf %408, %411 : vector<8x256xf32>
    %c16_i32_256 = arith.constant 16 : i32
    %413 = tpu.dynamic_rotate %405 by %c16_i32_256 dim 1 : vector<8x256xf32>, i32 -> vector<8x256xf32>
    %c1_257 = arith.constant 1 : index
    %c0_258 = arith.constant 0 : index
    %c0_259 = arith.constant 0 : index
    %414 = vector.load %arg16[%c1_257, %c0_258, %c0_259] : memref<9x1x256xf32, #tpu.memory_space<vmem>>, vector<1x1x256xf32>
    %415 = vector.shape_cast %414 : vector<1x1x256xf32> to vector<1x256xf32>
    %416 = vector.broadcast %415 : vector<1x256xf32> to vector<8x256xf32>
    %417 = arith.mulf %413, %416 : vector<8x256xf32>
    %c15_i32_260 = arith.constant 15 : i32
    %418 = tpu.dynamic_rotate %405 by %c15_i32_260 dim 1 : vector<8x256xf32>, i32 -> vector<8x256xf32>
    %c2_261 = arith.constant 2 : index
    %c0_262 = arith.constant 0 : index
    %c0_263 = arith.constant 0 : index
    %419 = vector.load %arg16[%c2_261, %c0_262, %c0_263] : memref<9x1x256xf32, #tpu.memory_space<vmem>>, vector<1x1x256xf32>
    %420 = vector.shape_cast %419 : vector<1x1x256xf32> to vector<1x256xf32>
    %421 = vector.broadcast %420 : vector<1x256xf32> to vector<8x256xf32>
    %422 = arith.mulf %418, %421 : vector<8x256xf32>
    %c1_i32_264 = arith.constant 1 : i32
    %423 = tpu.dynamic_rotate %405 by %c1_i32_264 dim 1 : vector<8x256xf32>, i32 -> vector<8x256xf32>
    %c3_265 = arith.constant 3 : index
    %c0_266 = arith.constant 0 : index
    %c0_267 = arith.constant 0 : index
    %424 = vector.load %arg16[%c3_265, %c0_266, %c0_267] : memref<9x1x256xf32, #tpu.memory_space<vmem>>, vector<1x1x256xf32>
    %425 = vector.shape_cast %424 : vector<1x1x256xf32> to vector<1x256xf32>
    %426 = vector.broadcast %425 : vector<1x256xf32> to vector<8x256xf32>
    %427 = arith.mulf %423, %426 : vector<8x256xf32>
    %c255_i32_268 = arith.constant 255 : i32
    %428 = tpu.dynamic_rotate %405 by %c255_i32_268 dim 1 : vector<8x256xf32>, i32 -> vector<8x256xf32>
    %c5_269 = arith.constant 5 : index
    %c0_270 = arith.constant 0 : index
    %c0_271 = arith.constant 0 : index
    %429 = vector.load %arg16[%c5_269, %c0_270, %c0_271] : memref<9x1x256xf32, #tpu.memory_space<vmem>>, vector<1x1x256xf32>
    %430 = vector.shape_cast %429 : vector<1x1x256xf32> to vector<1x256xf32>
    %431 = vector.broadcast %430 : vector<1x256xf32> to vector<8x256xf32>
    %432 = arith.mulf %428, %431 : vector<8x256xf32>
    %c241_i32_272 = arith.constant 241 : i32
    %433 = tpu.dynamic_rotate %405 by %c241_i32_272 dim 1 : vector<8x256xf32>, i32 -> vector<8x256xf32>
    %c6_273 = arith.constant 6 : index
    %c0_274 = arith.constant 0 : index
    %c0_275 = arith.constant 0 : index
    %434 = vector.load %arg16[%c6_273, %c0_274, %c0_275] : memref<9x1x256xf32, #tpu.memory_space<vmem>>, vector<1x1x256xf32>
    %435 = vector.shape_cast %434 : vector<1x1x256xf32> to vector<1x256xf32>
    %436 = vector.broadcast %435 : vector<1x256xf32> to vector<8x256xf32>
    %437 = arith.mulf %433, %436 : vector<8x256xf32>
    %c240_i32_276 = arith.constant 240 : i32
    %438 = tpu.dynamic_rotate %405 by %c240_i32_276 dim 1 : vector<8x256xf32>, i32 -> vector<8x256xf32>
    %c7_277 = arith.constant 7 : index
    %c0_278 = arith.constant 0 : index
    %c0_279 = arith.constant 0 : index
    %439 = vector.load %arg16[%c7_277, %c0_278, %c0_279] : memref<9x1x256xf32, #tpu.memory_space<vmem>>, vector<1x1x256xf32>
    %440 = vector.shape_cast %439 : vector<1x1x256xf32> to vector<1x256xf32>
    %441 = vector.broadcast %440 : vector<1x256xf32> to vector<8x256xf32>
    %442 = arith.mulf %438, %441 : vector<8x256xf32>
    %c239_i32_280 = arith.constant 239 : i32
    %443 = tpu.dynamic_rotate %405 by %c239_i32_280 dim 1 : vector<8x256xf32>, i32 -> vector<8x256xf32>
    %c8_281 = arith.constant 8 : index
    %c0_282 = arith.constant 0 : index
    %c0_283 = arith.constant 0 : index
    %444 = vector.load %arg16[%c8_281, %c0_282, %c0_283] : memref<9x1x256xf32, #tpu.memory_space<vmem>>, vector<1x1x256xf32>
    %445 = vector.shape_cast %444 : vector<1x1x256xf32> to vector<1x256xf32>
    %446 = vector.broadcast %445 : vector<1x256xf32> to vector<8x256xf32>
    %447 = arith.mulf %443, %446 : vector<8x256xf32>
    %448 = tpu.concatenate %412, %417, %422, %427, %405, %432, %437, %442, %447 in 0 : vector<8x256xf32>, vector<8x256xf32>, vector<8x256xf32>, vector<8x256xf32>, vector<8x256xf32>, vector<8x256xf32>, vector<8x256xf32>, vector<8x256xf32>, vector<8x256xf32> -> vector<72x256xf32>
    %cst_284 = arith.constant dense<0.000000e+00> : vector<8x256xf32>
    %449 = tpu.matmul %406, %448, %cst_284 {dimension_numbers = #tpu.dot_dimension_numbers<[1], [0], [0], [1], [0, 0, 1, 1], [], []>} : vector<8x72xf32>, vector<72x256xf32>, vector<8x256xf32> -> vector<8x256xf32>
    %450 = vector.broadcast %407 : vector<8x1xf32> to vector<8x256xf32>
    %451 = arith.addf %449, %450 : vector<8x256xf32>
    %452 = arith.addf %403, %451 : vector<8x256xf32>
    %c0_285 = arith.constant 0 : index
    %c0_286 = arith.constant 0 : index
    %c0_287 = arith.constant 0 : index
    %453 = vector.load %arg6[%c0_285, %c0_286, %c0_287] : memref<1x8x1xf32, #tpu.memory_space<vmem>>, vector<1x8x1xf32>
    %454 = vector.shape_cast %453 : vector<1x8x1xf32> to vector<8x1xf32>
    %c0_288 = arith.constant 0 : index
    %c0_289 = arith.constant 0 : index
    %c0_290 = arith.constant 0 : index
    %455 = vector.load %arg7[%c0_288, %c0_289, %c0_290] : memref<1x8x1xf32, #tpu.memory_space<vmem>>, vector<1x8x1xf32>
    %456 = vector.shape_cast %455 : vector<1x8x1xf32> to vector<8x1xf32>
    %cst_291 = arith.constant dense<0.000000e+00> : vector<8xf32>
    %457 = vector.multi_reduction <add>, %452, %cst_291 [1] : vector<8x256xf32> to vector<8xf32>
    %458 = vector.shape_cast %457 : vector<8xf32> to vector<8x1xf32>
    %cst_292 = arith.constant 2.560000e+02 : f32
    %459 = vector.broadcast %cst_292 : f32 to vector<8x1xf32>
    %460 = arith.divf %458, %459 : vector<8x1xf32>
    %461 = vector.broadcast %460 : vector<8x1xf32> to vector<8x256xf32>
    %462 = arith.subf %452, %461 : vector<8x256xf32>
    %463 = arith.mulf %462, %462 : vector<8x256xf32>
    %cst_293 = arith.constant dense<0.000000e+00> : vector<8xf32>
    %464 = vector.multi_reduction <add>, %463, %cst_293 [1] : vector<8x256xf32> to vector<8xf32>
    %465 = vector.shape_cast %464 : vector<8xf32> to vector<8x1xf32>
    %cst_294 = arith.constant 0.00392156886 : f32
    %466 = vector.broadcast %cst_294 : f32 to vector<8x1xf32>
    %467 = arith.mulf %465, %466 : vector<8x1xf32>
    %468 = math.sqrt %467 : vector<8x1xf32>
    %cst_295 = arith.constant 9.99999971E-10 : f32
    %469 = vector.broadcast %cst_295 : f32 to vector<8x1xf32>
    %470 = arith.addf %468, %469 : vector<8x1xf32>
    %471 = vector.broadcast %470 : vector<8x1xf32> to vector<8x256xf32>
    %472 = arith.divf %462, %471 : vector<8x256xf32>
    %473 = vector.broadcast %454 : vector<8x1xf32> to vector<8x256xf32>
    %474 = arith.mulf %473, %472 : vector<8x256xf32>
    %475 = vector.broadcast %456 : vector<8x1xf32> to vector<8x256xf32>
    %476 = arith.addf %474, %475 : vector<8x256xf32>
    %c0_296 = arith.constant 0 : index
    %c0_297 = arith.constant 0 : index
    %c0_298 = arith.constant 0 : index
    %477 = vector.load %arg25[%c0_296, %c0_297, %c0_298] : memref<1x8x256xf32, #tpu.memory_space<vmem>>, vector<1x8x256xf32>
    %478 = vector.shape_cast %477 : vector<1x8x256xf32> to vector<8x256xf32>
    %479 = vector.shape_cast %476 : vector<8x256xf32> to vector<1x8x256xf32>
    tpu.vector_store %arg25[%c0_296, %c0_297, %c0_298], %479 {strides = array<i32>} : memref<1x8x256xf32, #tpu.memory_space<vmem>>, vector<1x8x256xf32>,
    return
  }
  func.func @transform_0(%arg0: i32) -> (i32, i32, i32) {
    %c0_i32 = arith.constant 0 : i32
    %c0_i32_0 = arith.constant 0 : i32
    %c0_i32_1 = arith.constant 0 : i32
    return %arg0, %c0_i32, %c0_i32_0 : i32, i32, i32
  }
  func.func @transform_1(%arg0: i32) -> (i32, i32, i32) {
    %c0_i32 = arith.constant 0 : i32
    %c0_i32_0 = arith.constant 0 : i32
    %c0_i32_1 = arith.constant 0 : i32
    return %arg0, %c0_i32, %c0_i32_0 : i32, i32, i32
  }
  func.func @transform_2(%arg0: i32) -> (i32, i32, i32) {
    %c0_i32 = arith.constant 0 : i32
    %c0_i32_0 = arith.constant 0 : i32
    %c0_i32_1 = arith.constant 0 : i32
    return %arg0, %c0_i32, %c0_i32_0 : i32, i32, i32
  }
  func.func @transform_3(%arg0: i32) -> (i32, i32, i32) {
    %c0_i32 = arith.constant 0 : i32
    %c0_i32_0 = arith.constant 0 : i32
    %c0_i32_1 = arith.constant 0 : i32
    return %arg0, %c0_i32, %c0_i32_0 : i32, i32, i32
  }
  func.func @transform_4(%arg0: i32) -> (i32, i32, i32) {
    %c0_i32 = arith.constant 0 : i32
    %c0_i32_0 = arith.constant 0 : i32
    %c0_i32_1 = arith.constant 0 : i32
    return %arg0, %c0_i32, %c0_i32_0 : i32, i32, i32
  }
  func.func @transform_5(%arg0: i32) -> (i32, i32, i32) {
    %c0_i32 = arith.constant 0 : i32
    %c0_i32_0 = arith.constant 0 : i32
    %c0_i32_1 = arith.constant 0 : i32
    return %arg0, %c0_i32, %c0_i32_0 : i32, i32, i32
  }
  func.func @transform_6(%arg0: i32) -> (i32, i32, i32) {
    %c0_i32 = arith.constant 0 : i32
    %c0_i32_0 = arith.constant 0 : i32
    %c0_i32_1 = arith.constant 0 : i32
    return %arg0, %c0_i32, %c0_i32_0 : i32, i32, i32
  }
  func.func @transform_7(%arg0: i32) -> (i32, i32, i32) {
    %c0_i32 = arith.constant 0 : i32
    %c0_i32_0 = arith.constant 0 : i32
    %c0_i32_1 = arith.constant 0 : i32
    %c0_i32_2 = arith.constant 0 : i32
    return %c0_i32, %c0_i32_0, %c0_i32_1 : i32, i32, i32
  }
  func.func @transform_8(%arg0: i32) -> (i32, i32) {
    %c0_i32 = arith.constant 0 : i32
    %c0_i32_0 = arith.constant 0 : i32
    %c0_i32_1 = arith.constant 0 : i32
    return %c0_i32, %c0_i32_0 : i32, i32
  }
  func.func @transform_9(%arg0: i32) -> (i32, i32) {
    %c0_i32 = arith.constant 0 : i32
    %c0_i32_0 = arith.constant 0 : i32
    %c0_i32_1 = arith.constant 0 : i32
    return %c0_i32, %c0_i32_0 : i32, i32
  }
  func.func @transform_10(%arg0: i32) -> (i32, i32, i32) {
    %c0_i32 = arith.constant 0 : i32
    %c0_i32_0 = arith.constant 0 : i32
    %c0_i32_1 = arith.constant 0 : i32
    %c0_i32_2 = arith.constant 0 : i32
    return %c0_i32, %c0_i32_0, %c0_i32_1 : i32, i32, i32
  }
  func.func @transform_11(%arg0: i32) -> (i32, i32) {
    %c0_i32 = arith.constant 0 : i32
    %c0_i32_0 = arith.constant 0 : i32
    %c0_i32_1 = arith.constant 0 : i32
    return %c0_i32, %c0_i32_0 : i32, i32
  }
  func.func @transform_12(%arg0: i32) -> (i32, i32) {
    %c0_i32 = arith.constant 0 : i32
    %c0_i32_0 = arith.constant 0 : i32
    %c0_i32_1 = arith.constant 0 : i32
    return %c0_i32, %c0_i32_0 : i32, i32
  }
  func.func @transform_13(%arg0: i32) -> (i32, i32) {
    %c0_i32 = arith.constant 0 : i32
    %c0_i32_0 = arith.constant 0 : i32
    %c0_i32_1 = arith.constant 0 : i32
    return %c0_i32, %c0_i32_0 : i32, i32
  }
  func.func @transform_14(%arg0: i32) -> (i32, i32) {
    %c0_i32 = arith.constant 0 : i32
    %c0_i32_0 = arith.constant 0 : i32
    %c0_i32_1 = arith.constant 0 : i32
    return %c0_i32, %c0_i32_0 : i32, i32
  }
  func.func @transform_15(%arg0: i32) -> (i32, i32, i32) {
    %c0_i32 = arith.constant 0 : i32
    %c0_i32_0 = arith.constant 0 : i32
    %c0_i32_1 = arith.constant 0 : i32
    %c0_i32_2 = arith.constant 0 : i32
    return %c0_i32, %c0_i32_0, %c0_i32_1 : i32, i32, i32
  }
  func.func @transform_16(%arg0: i32) -> (i32, i32) {
    %c0_i32 = arith.constant 0 : i32
    %c0_i32_0 = arith.constant 0 : i32
    %c0_i32_1 = arith.constant 0 : i32
    return %c0_i32, %c0_i32_0 : i32, i32
  }
  func.func @transform_17(%arg0: i32) -> (i32, i32) {
    %c0_i32 = arith.constant 0 : i32
    %c0_i32_0 = arith.constant 0 : i32
    %c0_i32_1 = arith.constant 0 : i32
    return %c0_i32, %c0_i32_0 : i32, i32
  }
  func.func @transform_18(%arg0: i32) -> (i32, i32) {
    %c0_i32 = arith.constant 0 : i32
    %c0_i32_0 = arith.constant 0 : i32
    %c0_i32_1 = arith.constant 0 : i32
    return %c0_i32, %c0_i32_0 : i32, i32
  }
  func.func @transform_19(%arg0: i32) -> (i32, i32) {
    %c0_i32 = arith.constant 0 : i32
    %c0_i32_0 = arith.constant 0 : i32
    %c0_i32_1 = arith.constant 0 : i32
    return %c0_i32, %c0_i32_0 : i32, i32
  }
  func.func @transform_20(%arg0: i32) -> (i32, i32, i32) {
    %c0_i32 = arith.constant 0 : i32
    %c0_i32_0 = arith.constant 0 : i32
    %c0_i32_1 = arith.constant 0 : i32
    %c0_i32_2 = arith.constant 0 : i32
    return %c0_i32, %c0_i32_0, %c0_i32_1 : i32, i32, i32
  }
  func.func @transform_21(%arg0: i32) -> (i32, i32, i32) {
    %c0_i32 = arith.constant 0 : i32
    %c0_i32_0 = arith.constant 0 : i32
    %c0_i32_1 = arith.constant 0 : i32
    %c0_i32_2 = arith.constant 0 : i32
    return %c0_i32, %c0_i32_0, %c0_i32_1 : i32, i32, i32
  }
  func.func @transform_22(%arg0: i32) -> (i32, i32, i32) {
    %c0_i32 = arith.constant 0 : i32
    %c0_i32_0 = arith.constant 0 : i32
    %c0_i32_1 = arith.constant 0 : i32
    %c0_i32_2 = arith.constant 0 : i32
    return %c0_i32, %c0_i32_0, %c0_i32_1 : i32, i32, i32
  }
  func.func @transform_23(%arg0: i32) -> (i32, i32, i32) {
    %c0_i32 = arith.constant 0 : i32
    %c0_i32_0 = arith.constant 0 : i32
    %c0_i32_1 = arith.constant 0 : i32
    %c0_i32_2 = arith.constant 0 : i32
    return %c0_i32, %c0_i32_0, %c0_i32_1 : i32, i32, i32
  }
  func.func @transform_24(%arg0: i32) -> (i32, i32, i32) {
    %c0_i32 = arith.constant 0 : i32
    %c0_i32_0 = arith.constant 0 : i32
    %c0_i32_1 = arith.constant 0 : i32
    return %arg0, %c0_i32, %c0_i32_0 : i32, i32, i32
  }
}

</mosaic_0001>

<bundles_post_ra>
// kernel: synthesis_block_forward.1
= control target key start
LH: loop header
LB: loop body
LE: loop exit
PB: predicated region body
PF: predicated region fallthrough
CT: control target
= control target key end

     0   :  { %s3927_s0 = inlined_call_operand.vmem [shape: f32[2,8,128], index: 0, kind: input, shape index: {}]   ;;  %s3928_s1 = inlined_call_operand.vmem [shape: f32[2,8,256], index: 1, kind: input, shape index: {}]   ;;  %s3929_s2 = inlined_call_operand.vmem [shape: f32[2,8,256], index: 2, kind: input, shape index: {}]   ;;  %s3930_s3 = inlined_call_operand.vmem [shape: f32[2,8,1], index: 3, kind: input, shape index: {}]   ;;  %s3931_s4 = inlined_call_operand.vmem [shape: f32[2,8,1], index: 4, kind: input, shape index: {}]   ;;  %s3932_s5 = inlined_call_operand.vmem [shape: f32[2,8,1], index: 5, kind: input, shape index: {}]   ;;  %s3933_s6 = inlined_call_operand.vmem [shape: f32[2,8,1], index: 6, kind: input, shape index: {}]   ;;  %s3934_s7 = inlined_call_operand.vmem [shape: f32[4,8,32], index: 7, kind: input, shape index: {}]   ;;  %s3935_s8 = inlined_call_operand.vmem [shape: f32[8,1], index: 8, kind: input, shape index: {}]   ;;  %s3936_s9 = inlined_call_operand.hbm [shape: f32[512,256], index: 9, kind: input, shape index: {}]   ;;  %s3937_s10 = inlined_call_operand.vmem [shape: f32[16,1,128], index: 10, kind: input, shape index: {}]   ;;  %s3938_s11 = inlined_call_operand.vmem [shape: f32[8,72], index: 11, kind: input, shape index: {}]   ;;  %s3939_s12 = inlined_call_operand.vmem [shape: f32[8,1], index: 12, kind: input, shape index: {}]   ;;  %s3940_s13 = inlined_call_operand.vmem [shape: f32[8,256], index: 13, kind: input, shape index: {}]   ;;  %s3941_s14 = inlined_call_operand.vmem [shape: f32[8,256], index: 14, kind: input, shape index: {}]   ;;  %s3942_s15 = inlined_call_operand.vmem [shape: f32[9,1,256], index: 15, kind: input, shape index: {}]   ;;  %s3943_s16 = inlined_call_operand.vmem [shape: f32[8,72], index: 16, kind: input, shape index: {}]   ;;  %s3944_s17 = inlined_call_operand.vmem [shape: f32[8,1], index: 17, kind: input, shape index: {}]   ;;  %s3945_s18 = inlined_call_operand.vmem [shape: f32[8,72], index: 18, kind: input, shape index: {}]   ;;  %s3946_s19 = inlined_call_operand.vmem [shape: f32[8,1], index: 19, kind: input, shape index: {}]   ;;  %s3947_s20 = inlined_call_operand.vmem [shape: f32[2,8,72], index: 20, kind: input, shape index: {}]   ;;  %s3948_s21 = inlined_call_operand.vmem [shape: f32[2,8,1], index: 21, kind: input, shape index: {}]   ;;  %s3949_s22 = inlined_call_operand.vmem [shape: f32[2,8,256], index: 22, kind: input, shape index: {}]   ;;  %s3950_s23 = inlined_call_operand.vmem [shape: f32[2,8,256], index: 23, kind: input, shape index: {}]   ;;  %s3951_s24 = inlined_call_operand.vmem [shape: f32[2,8,256], index: 24, kind: output, shape index: {}]  }
   0x1   :  { %3970 = sst [smem:[#allocation5_spill]] %s3927_s0 }
   0x2   :  { %3971 = sst [smem:[#allocation6_spill]] %s3928_s1 }
   0x3   :  { %3972 = sst [smem:[#allocation7_spill]] %s3929_s2 }
   0x4   :  { %3973 = sst [smem:[#allocation8_spill]] %s3930_s3 }
   0x5   :  { %3974 = sst [smem:[#allocation9_spill]] %s3931_s4 }
   0x6   :  { %3975 = sst [smem:[#allocation10_spill]] %s3932_s5 }
   0x7   :  { %3976 = sst [smem:[#allocation11_spill]] %s3933_s6 }
   0x8   :  { %3977 = sst [smem:[#allocation12_spill]] %s3934_s7 }
   0x9   :  { %3978 = sst [smem:[#allocation13_spill]] %s3935_s8 }
   0xa   :  { %3979 = sst [smem:[#allocation14_spill]] %s3936_s9 }
   0xb   :  { %3980 = sst [smem:[#allocation15_spill]] %s3937_s10 }
   0xc   :  { %3981 = sst [smem:[#allocation16_spill]] %s3938_s11 }
   0xd   :  { %29 = vsyncpa [#allocation3], 0  ;;  %s3163_s5 = smov 0  }
   0xe LB: > { %s3169_s26 = sadd.s32 4294967295, %s3016_s5   ;;  %p2780_p0 = scmp.ge.s32.totalorder %s3016_s5, 1  ;;  %s3016_s5 = sphi %s3163_s5, %s35_s5  }
   0xf   : > { %p605_p1 = scmp.lt.s32.totalorder %s3016_s5, 3  ;;  %s3018_s27 = smov [#allocation2]  }
  0x10   : > { %s623_s28 = sshll.u32 %s3018_s27, 4  ;;  %p2934_p3 = scmp.eq.s32.totalorder %s3169_s26, 0  ;;  %s624_s28 = int_to_ptr.vmem [resolvable:$true] %s623_s28 }
  0x11   : > { %p3173_p2 = pnand %p2780_p0, %p605_p1  ;;  %s2991_s2 = scalar_lea.vmem %s624_s28, 16384 }
  0x12   : > { %p2992_p7 = scmp.ne.s32.totalorder %s624_s28, %s2991_s2  ;;  %p2999_p10 = scmp.lt.s32.totalorder %s624_s28, %s624_s28 }
  0x13   : > { %p2930_p4 = pneg %p3173_p2  ;;  %p3000_p11 = scmp.lt.s32.totalorder %s2991_s2, %s2991_s2 }
  0x15   : > { %p2931_p5 = pnand %p2934_p3, %p2930_p4  ;;  %p3001_p12 = por %p3000_p11, %p2999_p10 }
  0x17   : > { %p2982_p6 = pneg %p2931_p5 }
  0x19   : > { %p2994_p8 = pnand %p2992_p7, %p2982_p6 }
  0x1b   : > { %p2995_p9 = pneg %p2994_p8 }
  0x1d   : > { %p3002_p13 = pnand %p3001_p12, %p2995_p9 }
  0x1f   : > { %3005 = shalt.err (!%p3002_p13)
}
  0x20   : > { %s3019_s29 = smov 256   ;;  %s3020_s0 = smov 16  }
  0x21   : > { %s3983_s9 = sld [smem:[#allocation14_spill]] }
  0x23   : > { %732 = sbr.rel (%p3173_p2) target bundleno = 2986 (0xbaa), region = 116 }
  0x27   : > { %2933 = dma.hbm_to_vmem [thread:$0]  (!%p2931_p5), %s3983_s9, 16384, %s624_s28, [#allocation3], %s3019_s29, %s3019_s29, %s3020_s0  }
  0x28   : > { %3011 = dma.done.wait (%p2934_p3), [#allocation3], 16384  }
  0x29   : > { %3013 = vsyncadd (%p2934_p3), [#allocation3], 4294950912  ;;  %p823_p0 = scmp.lt.s32.totalorder %s3169_s26, 1  ;;  %v3021_v0 = vmov 0.0   ;;  %s3984_s4 = sld [smem:[#allocation5_spill]]  ;;  %vm3022_vm0 = vmmov 0  }
  0x2a   : > { %2870 = vmatprep.subr.mxu1 %v3021_v0  ;;  %2892 = vmatprep.subr.mxu0 %v3021_v0  ;;  %s3023_s27 = smov 9   ;;  %s3963_s28 = smov 1   ;;  %vm893_vm1 = vcmask 261120   ;;  %v1314_v36 = vld [vmem:[#allocation2 + $0xf8] sm:$0xff]  ;;  %v1313_v38 = vld [vmem:[#allocation2 + $0xf0] sm:$0xff]  ;;  %v1312_v39 = vld [vmem:[#allocation2 + $0xe8] sm:$0xff] }
  0x2b   : > { %s4004_s26 = smov (!%p823_p0, %s3169_s26), 1  ;;  %2878 = vmatprep.mubr.msk.f32.mxu1 %vm3022_vm0, %v3021_v0  ;;  %2900 = vmatprep.mubr.msk.f32.mxu0 %vm3022_vm0, %v3021_v0  ;;  %s3025_s6 = smov 8   ;;  %v1311_v41 = vld [vmem:[#allocation2 + $0xe0] sm:$0xff]  ;;  %v1310_v42 = vld [vmem:[#allocation2 + $0xd8] sm:$0xff]  ;;  %v1309_v44 = vld [vmem:[#allocation2 + $0xd0] sm:$0xff]  ;;  %vm1743_vm10 = vcmask 588800  }
  0x2c   : > { %s3198_s3 = sshll.u32 %s4004_s26, 3  ;;  %s3026_s2 = smov 7   ;;  %v1378_v43 = vld [vmem:[#allocation2 + $0x2f8] sm:$0xff]  ;;  %v1377_v45 = vld [vmem:[#allocation2 + $0x2f0] sm:$0xff]  ;;  %v1308_v46 = vld [vmem:[#allocation2 + $0xc8] sm:$0xff] }
  0x2d   : > { %s3965_s29 = smov 127   ;;  %s3028_s0 = smov 119   ;;  %v1376_v47 = vld [vmem:[#allocation2 + $0x2e8] sm:$0xff]  ;;  %v1307_v48 = vld [vmem:[#allocation2 + $0xc0] sm:$0xff]  ;;  %v1306_v50 = vld [vmem:[#allocation2 + $0xb8] sm:$0xff] }
  0x2e   : > { %s3029_s7 = smov 121   ;;  %s3030_s30 = smov 120   ;;  %v1375_v49 = vld [vmem:[#allocation2 + $0x2e0] sm:$0xff]  ;;  %v1374_v51 = vld [vmem:[#allocation2 + $0x2d8] sm:$0xff]  ;;  %v1305_v52 = vld [vmem:[#allocation2 + $0xb0] sm:$0xff] }
  0x2f   : > { %s826_s1 = scalar_lea.vmem %s3984_s4, %s3198_s3  ;;  %s3985_s10 = sld [smem:[#allocation15_spill]]  ;;  %v1373_v53 = vld [vmem:[#allocation2 + $0x2d0] sm:$0xff]  ;;  %v1304_v54 = vld [vmem:[#allocation2 + $0xa8] sm:$0xff]  ;;  %v1303_v56 = vld [vmem:[#allocation2 + $0xa0] sm:$0xff] }
  0x30   : > { %v3208_v1 = vld [vmem:[%s826_s1] sm:$0xff]  ;;  %s3986_s4 = sld [smem:[#allocation12_spill]]  ;;  %v1372_v55 = vld [vmem:[#allocation2 + $0x2c8] sm:$0xff]  ;;  %v1302_v58 = vld [vmem:[#allocation2 + $0x98] sm:$0xff]  ;;  %s3953_s25 = smov 113  }
  0x31   : > { %881 = vrot.lane.b32.xlu0 %v3208_v1, %s3023_s27  ;;  %859 = vrot.lane.b32.xlu1 %v3208_v1, %s3963_s28  ;;  %v1371_v57 = vld [vmem:[#allocation2 + $0x2c0] sm:$0xff]  ;;  %v1370_v59 = vld [vmem:[#allocation2 + $0x2b8] sm:$0xff]  ;;  %v1301_v60 = vld [vmem:[#allocation2 + $0x90] sm:$0xff]  ;;  %s3957_s8 = smov 15   ;;  %s3324_s1 = sshll.u32 %s4004_s26, 4 }
  0x32   : > { %v1369_v61 = vld [vmem:[#allocation2 + $0x2b0] sm:$0xff]  ;;  %v1300_v62 = vld [vmem:[#allocation2 + $0x88] sm:$0xff]  ;;  %s3961_s27 = smov 16   ;;  %s3989_s26 = smov 112  }
  0x33   : > { %v1368_v63 = vld [vmem:[#allocation2 + $0x2a8] sm:$0xff]  ;;  %s3991_s11 = sld [smem:[#allocation16_spill]]  ;;  %s3999_s9 = smov 111  }
  0x35   : > { %870 = vrot.lane.b32.xlu0 %v3208_v1, %s3025_s6  ;;  %987 = vrot.lane.b32.xlu1 %v3208_v1, %s3026_s2  ;;  %v2801_v2 = vld [vmem:[%s3985_s10 + $0x3] ss:$0 sm:$0xff]  ;;  %v2797_v6 = vld [vmem:[%s3985_s10 + $0x1] ss:$0 sm:$0xff]  ;;  %s3990_s6 = smov 113   ;;  %s3995_s2 = smov 1  }
  0x36   : > { %v2799_v7 = vld [vmem:[%s3985_s10 + $0x2] ss:$0 sm:$0xff]  ;;  %v2808_v12 = vld [vmem:[%s3985_s10 + $0x7] ss:$0 sm:$0xff]  ;;  %v2806_v15 = vld [vmem:[%s3985_s10 + $0x6] ss:$0 sm:$0xff] }
  0x37   : > { %v892_v17 = vld [vmem:[%s3986_s4] sm:$0xff]  ;;  %v2814_v19 = vld [vmem:[%s3985_s10 + $0xa] ss:$0 sm:$0xff]  ;;  %v2816_v20 = vld [vmem:[%s3985_s10 + $0xb] ss:$0 sm:$0xff] }
  0x38   : > { %v2804_v18 = vld [vmem:[%s3985_s10 + $0x5] ss:$0 sm:$0xff]  ;;  %v2812_v27 = vld [vmem:[%s3985_s10 + $0x9] ss:$0 sm:$0xff]  ;;  %v2824_v28 = vld [vmem:[%s3985_s10 + $0xf] ss:$0 sm:$0xff] }
  0x39   : > { %967 = vrot.lane.b32.xlu0 %v3208_v1, %s3965_s29  ;;  %1197 = vrot.lane.b32.xlu1 %v3208_v1, %s3028_s0  ;;  %v2822_v29 = vld [vmem:[%s3985_s10 + $0xe] ss:$0 sm:$0xff]  ;;  %v2820_v34 = vld [vmem:[%s3985_s10 + $0xd] ss:$0 sm:$0xff]  ;;  %s3987_s0 = sld [smem:[#allocation13_spill]] }
  0x3a   : > { %v2809_v31 = vld [vmem:[%s3986_s4 + $0x8] sm:$0xff]  ;;  %v2817_v35 = vld [vmem:[%s3986_s4 + $0x10] sm:$0xff]  ;;  %v2825_v40 = vld [vmem:[%s3986_s4 + $0x18] sm:$0xff]  ;;  %s4000_s4 = sld [smem:[#allocation7_spill]] }
  0x3d   : > { %1093 = vrot.lane.b32.xlu0 %v3208_v1, %s3029_s7  ;;  %1082 = vrot.lane.b32.xlu1 %v3208_v1, %s3030_s30  ;;  %s3955_s7 = smov 112   ;;  %s3967_s30 = smov 111  }
  0xa3   : > { %v882_v3 = vpop.permute.xlu0 %881  ;;  %v860_v4 = vpop.permute.xlu1 %859 }
  0xa4   : > { %v891_v5 = vmul.f32 %v2801_v2, %v882_v3  ;;  %v869_v10 = vmul.f32 %v2797_v6, %v860_v4  ;;  %v1081_v30 = vmul.f32 %v2812_v27, %v860_v4  ;;  %v1367_v2 = vld [vmem:[#allocation2 + $0x2a0] sm:$0xff]  ;;  %v1298_v3 = vld [vmem:[#allocation2 + $0x78] sm:$0xff]  ;;  %v1365_v6 = vld [vmem:[#allocation2 + $0x290] sm:$0xff] }
  0xa5   : > { %v1366_v4 = vld [vmem:[#allocation2 + $0x298] sm:$0xff] }
  0xa6   : > { %2871 = vmatpush3.msra.mxu1 %v891_v5  ;;  %v1297_v5 = vld [vmem:[#allocation2 + $0x70] sm:$0xff]  ;;  %v1286_v27 = vld [vmem:[#allocation2 + $0x18] sm:$0xff] }
  0xa7   : > { %v871_v8 = vpop.permute.xlu0 %870  ;;  %v988_v9 = vpop.permute.xlu1 %987  ;;  %2872 = vmatprep.subr.mxu1 %v3021_v0 }
  0xa8   : > { %v880_v11 = vmul.f32 %v2799_v7, %v871_v8  ;;  %v997_v16 = vmul.f32 %v2808_v12, %v988_v9  ;;  %v986_v21 = vmul.f32 %v2806_v15, %v871_v8  ;;  %v1296_v7 = vld [vmem:[#allocation2 + $0x68] sm:$0xff]  ;;  %v1295_v9 = vld [vmem:[#allocation2 + $0x60] sm:$0xff]  ;;  %v1362_v12 = vld [vmem:[#allocation2 + $0x278] sm:$0xff] }
  0xa9   : > { %v1364_v8 = vld [vmem:[#allocation2 + $0x288] sm:$0xff] }
  0xaa   : > { %2873 = vmatpush3.msra.mxu1 %v880_v11  ;;  %v1294_v11 = vld [vmem:[#allocation2 + $0x58] sm:$0xff]  ;;  %v1292_v15 = vld [vmem:[#allocation2 + $0x48] sm:$0xff] }
  0xab   : > { %2874 = vmatprep.subr.mxu1 %v3021_v0  ;;  %v968_v13 = vpop.permute.xlu0 %967  ;;  %v1198_v14 = vpop.permute.xlu1 %1197 }
  0xac   : > { %2875 = vmatpush3.msra.mxu1 %v869_v10  ;;  %v977_v24 = vmul.f32 %v2804_v18, %v968_v13  ;;  %v1207_v32 = vmul.f32 %v2824_v28, %v1198_v14  ;;  %v1187_v37 = vmul.f32 %v2820_v34, %v968_v13  ;;  %v1363_v10 = vld [vmem:[#allocation2 + $0x280] sm:$0xff]  ;;  %v1293_v13 = vld [vmem:[#allocation2 + $0x50] sm:$0xff]  ;;  %v1354_v28 = vld [vmem:[#allocation2 + $0x238] sm:$0xff] }
  0xad   : > { %2876 = vmatprep.subr.mxu1 %v3021_v0  ;;  %v1361_v14 = vld [vmem:[#allocation2 + $0x270] sm:$0xff]  ;;  %v1359_v18 = vld [vmem:[#allocation2 + $0x260] sm:$0xff] }
  0xae   : > { %2877 = vmatpush3.msra.mxu1 %v3208_v1  ;;  %v1351_v34 = vld [vmem:[#allocation2 + $0x220] sm:$0xff] }
  0xaf   : > { %2879 = vmatmul.mubr.msk.f32.vlgmr.msra.gmra.mxu1 %vm893_vm1, %v892_v17  ;;  %2881 = vmatprep.subr.mxu1 %v3021_v0  ;;  %v1094_v22 = vpop.permute.xlu0 %1093  ;;  %v1083_v23 = vpop.permute.xlu1 %1082  ;;  %v1291_v17 = vld [vmem:[#allocation2 + $0x40] sm:$0xff] }
  0xb0   : > { %2882 = vmatpush3.msra.mxu1 %v997_v16  ;;  %v1092_v25 = vmul.f32 %v2814_v19, %v1083_v23  ;;  %v1103_v26 = vmul.f32 %v2816_v20, %v1094_v22  ;;  %2889 = vmatprep.mubr.msk.f32.mxu1 %vm3022_vm0, %v3021_v0  ;;  %v1196_v33 = vmul.f32 %v2822_v29, %v1083_v23  ;;  %v1360_v16 = vld [vmem:[#allocation2 + $0x268] sm:$0xff]  ;;  %v1290_v19 = vld [vmem:[#allocation2 + $0x38] sm:$0xff]  ;;  %v1357_v22 = vld [vmem:[#allocation2 + $0x250] sm:$0xff] }
  0xb1   : > { %2883 = vmatprep.subr.mxu1 %v3021_v0  ;;  %v1358_v20 = vld [vmem:[#allocation2 + $0x258] sm:$0xff]  ;;  %v1288_v23 = vld [vmem:[#allocation2 + $0x28] sm:$0xff]  ;;  %v1285_v29 = vld [vmem:[#allocation2 + $0x10] sm:$0xff] }
  0xb2   : > { %2884 = vmatpush3.msra.mxu1 %v986_v21  ;;  %2893 = vmatpush3.msra.mxu0 %v1103_v26  ;;  %v1289_v21 = vld [vmem:[#allocation2 + $0x30] sm:$0xff]  ;;  %v1355_v26 = vld [vmem:[#allocation2 + $0x240] sm:$0xff] }
  0xb3   : > { %2885 = vmatprep.subr.mxu1 %v3021_v0  ;;  %2894 = vmatprep.subr.mxu0 %v3021_v0 }
  0xb4   : > { %2886 = vmatpush3.msra.mxu1 %v977_v24  ;;  %2895 = vmatpush3.msra.mxu0 %v1092_v25  ;;  %v1356_v24 = vld [vmem:[#allocation2 + $0x248] sm:$0xff]  ;;  %v1287_v25 = vld [vmem:[#allocation2 + $0x20] sm:$0xff] }
  0xb5   : > { %2887 = vmatprep.subr.mxu1 %v3021_v0  ;;  %2896 = vmatprep.subr.mxu0 %v3021_v0 }
  0xb6   : > { %2888 = vmatpush3.msra.mxu1 %v3208_v1  ;;  %2897 = vmatpush3.msra.mxu0 %v1081_v30  ;;  %v1353_v30 = vld [vmem:[#allocation2 + $0x230] sm:$0xff] }
  0xb7   : > { %2890 = vmatmul.mubr.msk.f32.vlgmr.msra.gmra.mxu1 %vm893_vm1, %v2809_v31  ;;  %2903 = vmatprep.subr.mxu1 %v3021_v0  ;;  %v1284_v31 = vld [vmem:[#allocation2 + $0x8] sm:$0xff] }
  0xb8   : > { %2904 = vmatpush3.msra.mxu1 %v1207_v32  ;;  %2898 = vmatprep.subr.mxu0 %v3021_v0  ;;  %v1352_v32 = vld [vmem:[#allocation2 + $0x228] sm:$0xff] }
  0xb9   : > { %2905 = vmatprep.subr.mxu1 %v3021_v0  ;;  %2899 = vmatpush3.msra.mxu0 %v3208_v1 }
  0xba   : > { %2906 = vmatpush3.msra.mxu1 %v1196_v33  ;;  %2901 = vmatmul.mubr.msk.f32.vlgmr.msra.gmra.mxu0 %vm893_vm1, %v2817_v35  ;;  %v1283_v33 = vld [vmem:[#allocation2] sm:$0xff]  ;;  %v1346_v35 = vld [vmem:[#allocation2 + $0x1f8] sm:$0xff] }
  0xbb   : > { %2907 = vmatprep.subr.mxu1 %v3021_v0  ;;  %2911 = vmatprep.mubr.msk.f32.mxu1 %vm3022_vm0, %v3021_v0 }
  0xbc   : > { %2908 = vmatpush3.msra.mxu1 %v1187_v37  ;;  %1417 = vmatprep.subr.mxu0 %v1314_v36  ;;  %v1350_v36 = vld [vmem:[#allocation2 + $0x218] sm:$0xff]  ;;  %v1345_v37 = vld [vmem:[#allocation2 + $0x1f0] sm:$0xff] }
  0xbd   : > { %2909 = vmatprep.subr.mxu1 %v3021_v0  ;;  %1418 = vmatpush1.msra.mxu0 %v1313_v38  ;;  %v1349_v38 = vld [vmem:[#allocation2 + $0x210] sm:$0xff] }
  0xbe   : > { %2910 = vmatpush3.msra.mxu1 %v3208_v1  ;;  %1419 = vmatprep.subr.mxu0 %v1312_v39  ;;  %v1299_v1 = vld [vmem:[#allocation2 + $0x80] sm:$0xff]  ;;  %v1344_v39 = vld [vmem:[#allocation2 + $0x1e8] sm:$0xff] }
  0xbf   : > { %2912 = vmatmul.mubr.msk.f32.vlgmr.msra.gmra.mxu1 %vm893_vm1, %v2825_v40  ;;  %1420 = vmatpush1.msra.mxu0 %v1311_v41  ;;  %v1348_v40 = vld [vmem:[#allocation2 + $0x208] sm:$0xff]  ;;  %v1343_v41 = vld [vmem:[#allocation2 + $0x1e0] sm:$0xff] }
  0xc0   : > { %1421 = vmatprep.subr.mxu0 %v1310_v42  ;;  %1488 = vmatprep.subr.mxu1 %v1378_v43  ;;  %v1347_v42 = vld [vmem:[#allocation2 + $0x200] sm:$0xff]  ;;  %v1342_v43 = vld [vmem:[#allocation2 + $0x1d8] sm:$0xff] }
  0xc1   : > { %1422 = vmatpush1.msra.mxu0 %v1309_v44  ;;  %1489 = vmatpush1.msra.mxu1 %v1377_v45  ;;  %v1410_v44 = vld [vmem:[#allocation2 + $0x3f8] sm:$0xff]  ;;  %v1341_v45 = vld [vmem:[#allocation2 + $0x1d0] sm:$0xff] }
  0xc2   : > { %1423 = vmatprep.subr.mxu0 %v1308_v46  ;;  %1490 = vmatprep.subr.mxu1 %v1376_v47  ;;  %v1409_v46 = vld [vmem:[#allocation2 + $0x3f0] sm:$0xff]  ;;  %v1340_v47 = vld [vmem:[#allocation2 + $0x1c8] sm:$0xff] }
  0xc3   : > { %1424 = vmatpush1.msra.mxu0 %v1307_v48  ;;  %1491 = vmatpush1.msra.mxu1 %v1375_v49  ;;  %v1408_v48 = vld [vmem:[#allocation2 + $0x3e8] sm:$0xff]  ;;  %v1339_v49 = vld [vmem:[#allocation2 + $0x1c0] sm:$0xff] }
  0xc4   : > { %1425 = vmatprep.subr.mxu0 %v1306_v50  ;;  %1492 = vmatprep.subr.mxu1 %v1374_v51  ;;  %v1407_v50 = vld [vmem:[#allocation2 + $0x3e0] sm:$0xff]  ;;  %v1338_v51 = vld [vmem:[#allocation2 + $0x1b8] sm:$0xff] }
  0xc5   : > { %1426 = vmatpush1.msra.mxu0 %v1305_v52  ;;  %1493 = vmatpush1.msra.mxu1 %v1373_v53  ;;  %v1406_v52 = vld [vmem:[#allocation2 + $0x3d8] sm:$0xff]  ;;  %v1337_v53 = vld [vmem:[#allocation2 + $0x1b0] sm:$0xff] }
  0xc6   : > { %1427 = vmatprep.subr.mxu0 %v1304_v54  ;;  %1494 = vmatprep.subr.mxu1 %v1372_v55  ;;  %v1405_v54 = vld [vmem:[#allocation2 + $0x3d0] sm:$0xff]  ;;  %v1336_v55 = vld [vmem:[#allocation2 + $0x1a8] sm:$0xff] }
  0xc7   : > { %1428 = vmatpush1.msra.mxu0 %v1303_v56  ;;  %1495 = vmatpush1.msra.mxu1 %v1371_v57  ;;  %v1404_v56 = vld [vmem:[#allocation2 + $0x3c8] sm:$0xff]  ;;  %v1335_v57 = vld [vmem:[#allocation2 + $0x1a0] sm:$0xff] }
  0xc8   : > { %1429 = vmatprep.subr.mxu0 %v1302_v58  ;;  %1496 = vmatprep.subr.mxu1 %v1370_v59  ;;  %v1403_v58 = vld [vmem:[#allocation2 + $0x3c0] sm:$0xff]  ;;  %v1334_v59 = vld [vmem:[#allocation2 + $0x198] sm:$0xff] }
  0xc9   : > { %1430 = vmatpush1.msra.mxu0 %v1301_v60  ;;  %1497 = vmatpush1.msra.mxu1 %v1369_v61  ;;  %v1402_v60 = vld [vmem:[#allocation2 + $0x3b8] sm:$0xff]  ;;  %v1333_v61 = vld [vmem:[#allocation2 + $0x190] sm:$0xff] }
  0xca   : > { %1431 = vmatprep.subr.mxu0 %v1300_v62  ;;  %1498 = vmatprep.subr.mxu1 %v1368_v63  ;;  %v1401_v62 = vld [vmem:[#allocation2 + $0x3b0] sm:$0xff]  ;;  %v1332_v63 = vld [vmem:[#allocation2 + $0x188] sm:$0xff] }
  0xcb   : > { %1432 = vmatpush1.msra.mxu0 %v1299_v1  ;;  %1499 = vmatpush1.msra.mxu1 %v1367_v2  ;;  %v1400_v1 = vld [vmem:[#allocation2 + $0x3a8] sm:$0xff]  ;;  %v1331_v2 = vld [vmem:[#allocation2 + $0x180] sm:$0xff] }
  0xcc   : > { %1433 = vmatprep.subr.mxu0 %v1298_v3  ;;  %1500 = vmatprep.subr.mxu1 %v1366_v4  ;;  %v1399_v3 = vld [vmem:[#allocation2 + $0x3a0] sm:$0xff]  ;;  %v1330_v4 = vld [vmem:[#allocation2 + $0x178] sm:$0xff] }
  0xcd   : > { %1434 = vmatpush1.msra.mxu0 %v1297_v5  ;;  %1501 = vmatpush1.msra.mxu1 %v1365_v6  ;;  %v1398_v5 = vld [vmem:[#allocation2 + $0x398] sm:$0xff]  ;;  %v1329_v6 = vld [vmem:[#allocation2 + $0x170] sm:$0xff] }
  0xce   : > { %1435 = vmatprep.subr.mxu0 %v1296_v7  ;;  %1502 = vmatprep.subr.mxu1 %v1364_v8  ;;  %v1397_v7 = vld [vmem:[#allocation2 + $0x390] sm:$0xff]  ;;  %v1328_v8 = vld [vmem:[#allocation2 + $0x168] sm:$0xff] }
  0xcf   : > { %1436 = vmatpush1.msra.mxu0 %v1295_v9  ;;  %1503 = vmatpush1.msra.mxu1 %v1363_v10  ;;  %v1327_v9 = vld [vmem:[#allocation2 + $0x160] sm:$0xff]  ;;  %v1326_v10 = vld [vmem:[#allocation2 + $0x158] sm:$0xff] }
  0xd0   : > { %1437 = vmatprep.subr.mxu0 %v1294_v11  ;;  %1504 = vmatprep.subr.mxu1 %v1362_v12  ;;  %v1325_v11 = vld [vmem:[#allocation2 + $0x150] sm:$0xff]  ;;  %v1396_v12 = vld [vmem:[#allocation2 + $0x388] sm:$0xff] }
  0xd1   : > { %1438 = vmatpush1.msra.mxu0 %v1293_v13  ;;  %1505 = vmatpush1.msra.mxu1 %v1361_v14  ;;  %v1324_v13 = vld [vmem:[#allocation2 + $0x148] sm:$0xff]  ;;  %v1395_v14 = vld [vmem:[#allocation2 + $0x380] sm:$0xff] }
  0xd2   : > { %1439 = vmatprep.subr.mxu0 %v1292_v15  ;;  %1506 = vmatprep.subr.mxu1 %v1360_v16  ;;  %v1323_v15 = vld [vmem:[#allocation2 + $0x140] sm:$0xff]  ;;  %v1394_v16 = vld [vmem:[#allocation2 + $0x378] sm:$0xff] }
  0xd3   : > { %1440 = vmatpush1.msra.mxu0 %v1291_v17  ;;  %1507 = vmatpush1.msra.mxu1 %v1359_v18  ;;  %v1322_v17 = vld [vmem:[#allocation2 + $0x138] sm:$0xff]  ;;  %v1393_v18 = vld [vmem:[#allocation2 + $0x370] sm:$0xff] }
  0xd4   : > { %1441 = vmatprep.subr.mxu0 %v1290_v19  ;;  %1508 = vmatprep.subr.mxu1 %v1358_v20  ;;  %v1321_v19 = vld [vmem:[#allocation2 + $0x130] sm:$0xff]  ;;  %v1392_v20 = vld [vmem:[#allocation2 + $0x368] sm:$0xff] }
  0xd5   : > { %1442 = vmatpush1.msra.mxu0 %v1289_v21  ;;  %1509 = vmatpush1.msra.mxu1 %v1357_v22  ;;  %v1391_v21 = vld [vmem:[#allocation2 + $0x360] sm:$0xff]  ;;  %v1320_v22 = vld [vmem:[#allocation2 + $0x128] sm:$0xff] }
  0xd6   : > { %1443 = vmatprep.subr.mxu0 %v1288_v23  ;;  %1510 = vmatprep.subr.mxu1 %v1356_v24  ;;  %v1390_v23 = vld [vmem:[#allocation2 + $0x358] sm:$0xff]  ;;  %v1319_v24 = vld [vmem:[#allocation2 + $0x120] sm:$0xff] }
  0xd7   : > { %1444 = vmatpush1.msra.mxu0 %v1287_v25  ;;  %1511 = vmatpush1.msra.mxu1 %v1355_v26  ;;  %v1389_v25 = vld [vmem:[#allocation2 + $0x350] sm:$0xff]  ;;  %v1318_v26 = vld [vmem:[#allocation2 + $0x118] sm:$0xff] }
  0xd8   : > { %1445 = vmatprep.subr.mxu0 %v1286_v27  ;;  %1512 = vmatprep.subr.mxu1 %v1354_v28  ;;  %v1317_v27 = vld [vmem:[#allocation2 + $0x110] sm:$0xff]  ;;  %v1388_v28 = vld [vmem:[#allocation2 + $0x348] sm:$0xff] }
  0xd9   : > { %1446 = vmatpush1.msra.mxu0 %v1285_v29  ;;  %1513 = vmatpush1.msra.mxu1 %v1353_v30  ;;  %v1316_v29 = vld [vmem:[#allocation2 + $0x108] sm:$0xff]  ;;  %v1387_v30 = vld [vmem:[#allocation2 + $0x340] sm:$0xff] }
  0xda   : > { %1447 = vmatprep.subr.mxu0 %v1284_v31  ;;  %1514 = vmatprep.subr.mxu1 %v1352_v32  ;;  %v1315_v31 = vld [vmem:[#allocation2 + $0x100] sm:$0xff]  ;;  %v1386_v32 = vld [vmem:[#allocation2 + $0x338] sm:$0xff] }
  0xdb   : > { %1448 = vmatpush1.msra.mxu0 %v1283_v33  ;;  %1515 = vmatpush1.msra.mxu1 %v1351_v34  ;;  %v1385_v33 = vld [vmem:[#allocation2 + $0x330] sm:$0xff]  ;;  %v1384_v34 = vld [vmem:[#allocation2 + $0x328] sm:$0xff] }
  0xdc   : > { %1449 = vmatprep.subr.mxu0 %v1346_v35  ;;  %1516 = vmatprep.subr.mxu1 %v1350_v36  ;;  %v1383_v35 = vld [vmem:[#allocation2 + $0x320] sm:$0xff]  ;;  %v1382_v36 = vld [vmem:[#allocation2 + $0x318] sm:$0xff] }
  0xdd   : > { %1450 = vmatpush2.msra.mxu0 %v1345_v37  ;;  %1517 = vmatpush1.msra.mxu1 %v1349_v38  ;;  %v1381_v37 = vld [vmem:[#allocation2 + $0x310] sm:$0xff]  ;;  %v1380_v38 = vld [vmem:[#allocation2 + $0x308] sm:$0xff] }
  0xde   : > { %1451 = vmatprep.subr.mxu0 %v1344_v39  ;;  %1518 = vmatprep.subr.mxu1 %v1348_v40  ;;  %v1379_v39 = vld [vmem:[#allocation2 + $0x300] sm:$0xff] }
  0xdf   : > { %1452 = vmatpush2.msra.mxu0 %v1343_v41  ;;  %1519 = vmatpush1.msra.mxu1 %v1347_v42  ;;  %v1411_v40 = vld [vmem:[%s3987_s0] sm:$0xff]  ;;  %v3031_v41 = vmov 0   ;;  %s3988_s0 = sld [smem:[#allocation6_spill]] }
  0xe0   : > { %1453 = vmatprep.subr.mxu0 %v1342_v43  ;;  %1520 = vmatprep.subr.mxu1 %v1410_v44 }
  0xe1   : > { %1454 = vmatpush2.msra.mxu0 %v1341_v45  ;;  %1521 = vmatpush2.msra.mxu1 %v1409_v46 }
  0xe2   : > { %1455 = vmatprep.subr.mxu0 %v1340_v47  ;;  %1522 = vmatprep.subr.mxu1 %v1408_v48 }
  0xe3   : > { %1456 = vmatpush2.msra.mxu0 %v1339_v49  ;;  %1523 = vmatpush2.msra.mxu1 %v1407_v50 }
  0xe4   : > { %1457 = vmatprep.subr.mxu0 %v1338_v51  ;;  %1524 = vmatprep.subr.mxu1 %v1406_v52 }
  0xe5   : > { %1458 = vmatpush2.msra.mxu0 %v1337_v53  ;;  %1525 = vmatpush2.msra.mxu1 %v1405_v54 }
  0xe6   : > { %1459 = vmatprep.subr.mxu0 %v1336_v55  ;;  %1526 = vmatprep.subr.mxu1 %v1404_v56 }
  0xe7   : > { %1460 = vmatpush2.msra.mxu0 %v1335_v57  ;;  %1527 = vmatpush2.msra.mxu1 %v1403_v58 }
  0xe8   : > { %1461 = vmatprep.subr.mxu0 %v1334_v59  ;;  %1528 = vmatprep.subr.mxu1 %v1402_v60 }
  0xe9   : > { %1462 = vmatpush2.msra.mxu0 %v1333_v61  ;;  %1529 = vmatpush2.msra.mxu1 %v1401_v62  ;;  %v1560_v61 = vld [vmem:[%s3939_s12] sm:$0xff]  ;;  %v1565_v62 = vlaneseq }
  0xea   : > { %1463 = vmatprep.subr.mxu0 %v1332_v63  ;;  %1530 = vmatprep.subr.mxu1 %v1400_v1 }
  0xeb   : > { %1464 = vmatpush2.msra.mxu0 %v1331_v2  ;;  %1531 = vmatpush2.msra.mxu1 %v1399_v3  ;;  %v1573_v63 = vshrl.u32 %v1565_v62, 7  ;;  %v3381_v1 = vand.u32 127, %v1565_v62 }
  0xec   : > { %1465 = vmatprep.subr.mxu0 %v1330_v4  ;;  %1532 = vmatprep.subr.mxu1 %v1398_v5  ;;  %v2833_v4 = vld [vmem:[%s3942_s15 + $0x10] sm:$0x3] }
  0xed   : > { %1466 = vmatpush2.msra.mxu0 %v1329_v6  ;;  %1533 = vmatpush2.msra.mxu1 %v1397_v7  ;;  %v3383_v2 = vsub.s32 0, %v1573_v63  ;;  %v3385_v3 = vsub.s32 1, %v1573_v63  ;;  %vm1720_vm2 = vcmp.lt.s32.totalorder %v3381_v1, 111  ;;  %vm1698_vm3 = vcmp.lt.s32.totalorder %v3381_v1, 112 }
  0xee   : > { %1467 = vmatprep.subr.mxu0 %v1328_v8  ;;  %1534 = vmatprep.subr.mxu1 %v1396_v12  ;;  %vm1676_vm4 = vcmp.lt.s32.totalorder %v3381_v1, 113  ;;  %vm1654_vm5 = vcmp.lt.s32.totalorder %v3381_v1, 127  ;;  %vm1632_vm6 = vcmp.lt.s32.totalorder %v3381_v1, 1  ;;  %vm1610_vm7 = vcmp.lt.s32.totalorder %v3381_v1, 15 }
  0xef   : > { %1468 = vmatpush2.msra.mxu0 %v1327_v9  ;;  %1535 = vmatpush2.msra.mxu1 %v1395_v14  ;;  %v3392_v7 = vrot.slane %v2833_v4, %v3383_v2  ;;  %v3395_v8 = vrot.slane %v2833_v4, %v3385_v3  ;;  %v2832_v9 = vld [vmem:[%s3942_s15 + $0xe] sm:$0x3]  ;;  %vm1588_vm8 = vcmp.lt.s32.totalorder %v3381_v1, 16  ;;  %vm1567_vm9 = vcmp.lt.s32.totalorder %v3381_v1, 17 }
  0xf0   : > { %1469 = vmatprep.subr.mxu0 %v1326_v10  ;;  %1536 = vmatprep.subr.mxu1 %v1394_v16  ;;  %v3408_v16 = vrot.slane %v2832_v9, %v3383_v2 }
  0xf1   : > { %1470 = vmatpush2.msra.mxu0 %v1325_v11  ;;  %1537 = vmatpush2.msra.mxu1 %v1393_v18  ;;  %v2831_v18 = vld [vmem:[%s3942_s15 + $0xc] sm:$0x3] }
  0xf2   : > { %1471 = vmatprep.subr.mxu0 %v1324_v13  ;;  %1538 = vmatprep.subr.mxu1 %v1392_v20 }
  0xf3   : > { %1472 = vmatpush2.msra.mxu0 %v1323_v15  ;;  %1539 = vmatpush2.msra.mxu1 %v1391_v21 }
  0xf4   : > { %1473 = vmatprep.subr.mxu0 %v1322_v17  ;;  %1540 = vmatprep.subr.mxu1 %v1390_v23  ;;  %v3411_v17 = vrot.slane %v2832_v9, %v3385_v3 }
  0xf5   : > { %1474 = vmatpush2.msra.mxu0 %v1321_v19  ;;  %1541 = vmatpush2.msra.mxu1 %v1389_v25  ;;  %v3424_v25 = vrot.slane %v2831_v18, %v3383_v2 }
  0xf6   : > { %1475 = vmatprep.subr.mxu0 %v1320_v22  ;;  %1542 = vmatprep.subr.mxu1 %v1388_v28 }
  0xf7   : > { %1476 = vmatpush2.msra.mxu0 %v1319_v24  ;;  %1543 = vmatpush2.msra.mxu1 %v1387_v30 }
  0xf8   : > { %1477 = vmatprep.subr.mxu0 %v1318_v26  ;;  %1544 = vmatprep.subr.mxu1 %v1386_v32  ;;  %v3427_v26 = vrot.slane %v2831_v18, %v3385_v3 }
  0xf9   : > { %1478 = vmatpush2.msra.mxu0 %v1317_v27  ;;  %1545 = vmatpush2.msra.mxu1 %v1385_v33  ;;  %v2830_v27 = vld [vmem:[%s3942_s15 + $0xa] sm:$0x3] }
  0xfa   : > { %1479 = vmatprep.subr.mxu0 %v1316_v29  ;;  %1546 = vmatprep.subr.mxu1 %v1384_v34  ;;  %v3440_v34 = vrot.slane %v2830_v27, %v3383_v2 }
  0xfb   : > { %1480 = vmatpush2.msra.mxu0 %v1315_v31  ;;  %1547 = vmatpush2.msra.mxu1 %v1383_v35  ;;  %v3443_v35 = vrot.slane %v2830_v27, %v3385_v3 }
  0xfc   : > { %1548 = vmatprep.subr.mxu1 %v1382_v36  ;;  %2964 = vset.pattern.permute.xlu0 %v3031_v41  ;;  %v2829_v36 = vld [vmem:[%s3942_s15 + $0x6] sm:$0x3] }
  0xfd   : > { %1549 = vmatpush2.msra.mxu1 %v1381_v37  ;;  %2965 = vset.pattern.permute.xlu1 %v3031_v41 }
  0xfe   : > { %1550 = vmatprep.subr.mxu1 %v1380_v38  ;;  %1414 = vperm.xlu0 %2964, %v1411_v40  }
  0xff   : > { %1551 = vmatpush2.msra.mxu1 %v1379_v39 }
 0x16f   : > { %v963_v42 = vpop.f32.mrf.mxu1 }
 0x171   : > { %v2880_v43 = vpop.f32.mrf.mxu1 }
 0x172   : > { %v3456_v43 = vrot.slane %v2829_v36, %v3383_v2 }
 0x177   : > { %v1069_v44 = vpop.f32.mrf.mxu1 }
 0x178   : > { %1481 = vmatprep.mubr.f32.mxu0 %v1069_v44  ;;  %v3459_v44 = vrot.slane %v2829_v36, %v3385_v3 }
 0x179   : > { %v2891_v45 = vpop.f32.mrf.mxu1  ;;  %1482 = vmatmul.mubr.f32.vlgmr.msra.gmra.mxu0 %v963_v42  ;;  %v1415_v51 = vpop.permute.xlu0 %1414 }
 0x17a   : > { %v1175_v46 = vpop.f32.mrf.mxu0  ;;  %1811 = vmatprep.mubr.f32.mxu0 %v3021_v0  ;;  %v2828_v45 = vld [vmem:[%s3942_s15 + $0x4] sm:$0x3] }
 0x17c   : > { %v2902_v47 = vpop.f32.mrf.mxu0 }
 0x17f   : > { %v1279_v48 = vpop.f32.mrf.mxu1 }
 0x180   : > { %1552 = vmatprep.mubr.f32.mxu1 %v1279_v48 }
 0x181   : > { %v2913_v49 = vpop.f32.mrf.mxu1  ;;  %1553 = vmatmul.mubr.f32.vlgmr.msra.gmra.mxu1 %v1175_v46 }
 0x182   : > { %2006 = vmatprep.mubr.f32.mxu1 %v3021_v0 }
 0x239   : > { %v1483_v50 = vpop.f32.mrf.mxu0 }
 0x23a   : > { %v1484_v52 = vadd.f32 %v1483_v50, %v1415_v51 }
 0x23b   : > { %v1485_v53 = vpop.f32.mrf.mxu0 }
 0x23c   : > { %v1486_v57 = vadd.f32 %v1485_v53, %v1415_v51  ;;  %v3476_v53 = vrot.slane %v2828_v45, %v3385_v3 }
 0x241   : > { %v1554_v54 = vpop.f32.mrf.mxu1 }
 0x242   : > { %v3299_v55 = vadd.f32 %v1554_v54, %v1484_v52  ;;  %v3473_v52 = vrot.slane %v2828_v45, %v3383_v2  ;;  %v2827_v54 = vld [vmem:[%s3942_s15 + $0x2] sm:$0x3] }
 0x243   : > { %v1556_v56 = vpop.f32.mrf.mxu1  ;;  %v3490_v63 = vrot.slane %v2827_v54, %v3383_v2  ;;  %v3493_v4 = vrot.slane %v2827_v54, %v3385_v3 }
 0x244   : > { %1694 = vrot.lane.b32.xlu0 %v3299_v55, %s3955_s7  ;;  %1716 = vrot.lane.b32.xlu1 %v3299_v55, %s3967_s30  ;;  %v3305_v58 = vadd.f32 %v1556_v56, %v1486_v57 }
 0x248   : > { %1672 = vrot.lane.b32.xlu0 %v3299_v55, %s3953_s25  ;;  %1718 = vrot.lane.b32.xlu1 %v3305_v58, %s3967_s30 }
 0x24c   : > { %1650 = vrot.lane.b32.xlu0 %v3299_v55, %s3965_s29  ;;  %1696 = vrot.lane.b32.xlu1 %v3305_v58, %s3955_s7  ;;  %s3959_s7 = smov 17  }
 0x250   : > { %1628 = vrot.lane.b32.xlu0 %v3299_v55, %s3963_s28  ;;  %1674 = vrot.lane.b32.xlu1 %v3305_v58, %s3953_s25  ;;  %s831_s25 = scalar_lea.vmem %s3988_s0, %s3324_s1 }
 0x251   : > { %v3338_v59 = vld [vmem:[%s831_s25] sm:$0xff]  ;;  %v3348_v60 = vld [vmem:[%s831_s25 + $0x8] sm:$0xff]  ;;  %s3994_s25 = smov 127  }
 0x254   : > { %1606 = vrot.lane.b32.xlu0 %v3299_v55, %s3957_s8  ;;  %1652 = vrot.lane.b32.xlu1 %v3305_v58, %s3965_s29 }
 0x258   : > { %1584 = vrot.lane.b32.xlu0 %v3299_v55, %s3961_s27  ;;  %1630 = vrot.lane.b32.xlu1 %v3305_v58, %s3963_s28 }
 0x25c   : > { %1561 = vrot.lane.b32.xlu0 %v3299_v55, %s3959_s7  ;;  %1608 = vrot.lane.b32.xlu1 %v3305_v58, %s3957_s8 }
 0x260   : > { %1926 = vrot.lane.b32.xlu0 %v3338_v59, %s3967_s30  ;;  %1586 = vrot.lane.b32.xlu1 %v3305_v58, %s3961_s27 }
 0x264   : > { %1918 = vrot.lane.b32.xlu0 %v3338_v59, %s3989_s26  ;;  %1563 = vrot.lane.b32.xlu1 %v3305_v58, %s3959_s7 }
 0x268   : > { %1910 = vrot.lane.b32.xlu0 %v3338_v59, %s3990_s6  ;;  %1928 = vrot.lane.b32.xlu1 %v3348_v60, %s3967_s30 }
 0x26c   : > { %1902 = vrot.lane.b32.xlu0 %v3338_v59, %s3965_s29  ;;  %1920 = vrot.lane.b32.xlu1 %v3348_v60, %s3989_s26 }
 0x270   : > { %1894 = vrot.lane.b32.xlu0 %v3338_v59, %s3963_s28  ;;  %1912 = vrot.lane.b32.xlu1 %v3348_v60, %s3990_s6 }
 0x274   : > { %1886 = vrot.lane.b32.xlu0 %v3338_v59, %s3957_s8  ;;  %1904 = vrot.lane.b32.xlu1 %v3348_v60, %s3965_s29 }
 0x278   : > { %1878 = vrot.lane.b32.xlu0 %v3338_v59, %s3961_s27  ;;  %1896 = vrot.lane.b32.xlu1 %v3348_v60, %s3963_s28  ;;  %s3998_s28 = smov 17  }
 0x27c   : > { %1870 = vrot.lane.b32.xlu0 %v3338_v59, %s3959_s7  ;;  %1888 = vrot.lane.b32.xlu1 %v3348_v60, %s3957_s8  ;;  %s3993_s8 = sld [smem:[#allocation8_spill]] }
 0x280   : > { %1740 = vperm.xlu0 %2964, %v1560_v61   ;;  %1880 = vrot.lane.b32.xlu1 %v3348_v60, %s3961_s27 }
 0x282   : > { %s840_s0 = scalar_lea.vmem %s3993_s8, %s3198_s3 }
 0x284   : > { %1872 = vrot.lane.b32.xlu1 %v3348_v60, %s3959_s7  ;;  %s3992_s7 = sld [smem:[#allocation9_spill]] }
 0x28a   : > { %s844_s27 = scalar_lea.vmem %s3992_s7, %s3198_s3 }
 0x2b6   : > { %v1695_v5 = vpop.permute.xlu0 %1694  ;;  %v1717_v6 = vpop.permute.xlu1 %1716 }
 0x2ba   : > { %v1673_v10 = vpop.permute.xlu0 %1672  ;;  %v1719_v11 = vpop.permute.xlu1 %1718 }
 0x2bb   : > { %v1721_v12 = vsel %vm1720_vm2, %v1717_v6, %v1719_v11  ;;  %v1722_v13 = vsel %vm1720_vm2, %v1719_v11, %v1717_v6 }
 0x2bc   : > { %v1736_v14 = vmul.f32 %v3392_v7, %v1721_v12  ;;  %v1737_v15 = vmul.f32 %v3395_v8, %v1722_v13 }
 0x2be   : > { %v1651_v19 = vpop.permute.xlu0 %1650  ;;  %1761 = vmatprep.subr.mxu0 %v1737_v15  ;;  %v1697_v20 = vpop.permute.xlu1 %1696 }
 0x2bf   : > { %v1699_v21 = vsel %vm1698_vm3, %v1695_v5, %v1697_v20  ;;  %v1700_v22 = vsel %vm1698_vm3, %v1697_v20, %v1695_v5  ;;  %1762 = vmatpush1.msra.mxu0 %v1736_v14  ;;  %v1570_v5 = vld [vmem:[%s3942_s15] sm:$0x3] }
 0x2c0   : > { %v1714_v23 = vmul.f32 %v3408_v16, %v1699_v21  ;;  %v1715_v24 = vmul.f32 %v3411_v17, %v1700_v22  ;;  %v3506_v14 = vrot.slane %v1570_v5, %v3383_v2  ;;  %v3509_v15 = vrot.slane %v1570_v5, %v3385_v3  ;;  %v1559_v2 = vld [vmem:[%s3991_s11] sm:$0xff] }
 0x2c2   : > { %v1629_v28 = vpop.permute.xlu0 %1628  ;;  %1763 = vmatprep.subr.mxu0 %v1715_v24  ;;  %v1675_v29 = vpop.permute.xlu1 %1674 }
 0x2c3   : > { %v1677_v30 = vsel %vm1676_vm4, %v1673_v10, %v1675_v29  ;;  %v1678_v31 = vsel %vm1676_vm4, %v1675_v29, %v1673_v10  ;;  %1764 = vmatpush1.msra.mxu0 %v1714_v23 }
 0x2c4   : > { %v1692_v32 = vmul.f32 %v3424_v25, %v1677_v30  ;;  %v1693_v33 = vmul.f32 %v3427_v26, %v1678_v31 }
 0x2c6   : > { %v1607_v37 = vpop.permute.xlu0 %1606  ;;  %1765 = vmatprep.subr.mxu0 %v1693_v33  ;;  %v1653_v38 = vpop.permute.xlu1 %1652 }
 0x2c7   : > { %v1655_v39 = vsel %vm1654_vm5, %v1651_v19, %v1653_v38  ;;  %v1656_v40 = vsel %vm1654_vm5, %v1653_v38, %v1651_v19  ;;  %1766 = vmatpush1.msra.mxu0 %v1692_v32 }
 0x2c8   : > { %v1670_v41 = vmul.f32 %v3440_v34, %v1655_v39  ;;  %v1671_v42 = vmul.f32 %v3443_v35, %v1656_v40 }
 0x2ca   : > { %v1585_v46 = vpop.permute.xlu0 %1584  ;;  %1767 = vmatprep.subr.mxu0 %v1671_v42  ;;  %v1631_v47 = vpop.permute.xlu1 %1630 }
 0x2cb   : > { %v1633_v48 = vsel %vm1632_vm6, %v1629_v28, %v1631_v47  ;;  %v1634_v49 = vsel %vm1632_vm6, %v1631_v47, %v1629_v28  ;;  %1768 = vmatpush1.msra.mxu0 %v1670_v41 }
 0x2cc   : > { %v1648_v50 = vmul.f32 %v3456_v43, %v1634_v49  ;;  %v1649_v51 = vmul.f32 %v3459_v44, %v1633_v48  ;;  %1769 = vmatprep.subr.mxu0 %v3305_v58 }
 0x2cd   : > { %1770 = vmatpush1.msra.mxu0 %v3299_v55 }
 0x2ce   : > { %v1562_v56 = vpop.permute.xlu0 %1561  ;;  %1771 = vmatprep.subr.mxu0 %v1649_v51  ;;  %v1609_v57 = vpop.permute.xlu1 %1608 }
 0x2cf   : > { %v1611_v61 = vsel %vm1610_vm7, %v1607_v37, %v1609_v57  ;;  %v1612_v58 = vsel %vm1610_vm7, %v1609_v57, %v1607_v37  ;;  %1772 = vmatpush1.msra.mxu0 %v1648_v50 }
 0x2d0   : > { %v1626_v62 = vmul.f32 %v3473_v52, %v1612_v58  ;;  %v1627_v55 = vmul.f32 %v3476_v53, %v1611_v61 }
 0x2d2   : > { %1773 = vmatprep.subr.mxu0 %v1627_v55  ;;  %v1587_v6 = vpop.permute.xlu1 %1586  ;;  %v1927_v9 = vpop.permute.xlu0 %1926 }
 0x2d3   : > { %v1589_v10 = vsel %vm1588_vm8, %v1585_v46, %v1587_v6  ;;  %v1590_v11 = vsel %vm1588_vm8, %v1587_v6, %v1585_v46  ;;  %1774 = vmatpush1.msra.mxu0 %v1626_v62 }
 0x2d4   : > { %v1604_v12 = vmul.f32 %v3490_v63, %v1590_v11  ;;  %v1605_v13 = vmul.f32 %v3493_v4, %v1589_v10 }
 0x2d6   : > { %1775 = vmatprep.subr.mxu0 %v1605_v13  ;;  %v1564_v18 = vpop.permute.xlu1 %1563  ;;  %v1919_v19 = vpop.permute.xlu0 %1918 }
 0x2d7   : > { %v1568_v20 = vsel %vm1567_vm9, %v1562_v56, %v1564_v18  ;;  %v1569_v21 = vsel %vm1567_vm9, %v1564_v18, %v1562_v56  ;;  %1776 = vmatpush1.msra.mxu0 %v1604_v12 }
 0x2d8   : > { %v1582_v22 = vmul.f32 %v3506_v14, %v1569_v21  ;;  %v1583_v23 = vmul.f32 %v3509_v15, %v1568_v20 }
 0x2da   : > { %1777 = vmatprep.subr.mxu0 %v1583_v23  ;;  %v1911_v3 = vpop.permute.xlu0 %1910  ;;  %v1929_v24 = vpop.permute.xlu1 %1928 }
 0x2db   : > { %1778 = vmatpush1.msra.mxu0 %v1582_v22  ;;  %v1930_v27 = vsel %vm1720_vm2, %v1927_v9, %v1929_v24  ;;  %v1931_v28 = vsel %vm1720_vm2, %v1929_v24, %v1927_v9 }
 0x2dc   : > { %2834 = vmatmul.mubr.msk.f32.vlgmr.msra.gmra.mxu0 %vm1743_vm10, %v1559_v2  ;;  %v1932_v29 = vmul.f32 %v1930_v27, %v3392_v7  ;;  %v1933_v30 = vmul.f32 %v1931_v28, %v3395_v8 }
 0x2dd   : > { %2193 = vmatprep.mubr.f32.mxu0 %v3021_v0 }
 0x2de   : > { %v1903_v31 = vpop.permute.xlu0 %1902  ;;  %v1921_v32 = vpop.permute.xlu1 %1920  ;;  %1956 = vmatprep.subr.mxu1 %v1933_v30 }
 0x2df   : > { %v1922_v33 = vsel %vm1698_vm3, %v1919_v19, %v1921_v32  ;;  %v1923_v36 = vsel %vm1698_vm3, %v1921_v32, %v1919_v19  ;;  %1957 = vmatpush1.msra.mxu1 %v1932_v29 }
 0x2e0   : > { %v1924_v37 = vmul.f32 %v1922_v33, %v3408_v16  ;;  %v1925_v38 = vmul.f32 %v1923_v36, %v3411_v17 }
 0x2e2   : > { %v1913_v39 = vpop.permute.xlu1 %1912  ;;  %1958 = vmatprep.subr.mxu1 %v1925_v38  ;;  %v1895_v42 = vpop.permute.xlu0 %1894  ;;  %v2016_v38 = vld [vmem:[%s844_s27] sm:$0xff] }
 0x2e3   : > { %v1914_v40 = vsel %vm1676_vm4, %v1911_v3, %v1913_v39  ;;  %v1915_v41 = vsel %vm1676_vm4, %v1913_v39, %v1911_v3  ;;  %1959 = vmatpush1.msra.mxu1 %v1924_v37  ;;  %v1868_v3 = vld [vmem:[%s3943_s16] sm:$0xff] }
 0x2e4   : > { %v1916_v45 = vmul.f32 %v1914_v40, %v3424_v25  ;;  %v1917_v46 = vmul.f32 %v1915_v41, %v3427_v26  ;;  %v1869_v37 = vld [vmem:[%s3944_s17] sm:$0xff] }
 0x2e6   : > { %v1905_v47 = vpop.permute.xlu1 %1904  ;;  %1960 = vmatprep.subr.mxu1 %v1917_v46  ;;  %v1887_v54 = vpop.permute.xlu0 %1886 }
 0x2e7   : > { %v1906_v48 = vsel %vm1654_vm5, %v1903_v31, %v1905_v47  ;;  %v1907_v49 = vsel %vm1654_vm5, %v1905_v47, %v1903_v31  ;;  %1961 = vmatpush1.msra.mxu1 %v1916_v45 }
 0x2e8   : > { %v1908_v50 = vmul.f32 %v1906_v48, %v3440_v34  ;;  %v1909_v51 = vmul.f32 %v1907_v49, %v3443_v35 }
 0x2ea   : > { %v1897_v56 = vpop.permute.xlu1 %1896  ;;  %1962 = vmatprep.subr.mxu1 %v1909_v51  ;;  %v1879_v9 = vpop.permute.xlu0 %1878 }
 0x2eb   : > { %v1898_v57 = vsel %vm1632_vm6, %v1895_v42, %v1897_v56  ;;  %v1899_v61 = vsel %vm1632_vm6, %v1897_v56, %v1895_v42  ;;  %1963 = vmatpush1.msra.mxu1 %v1908_v50 }
 0x2ec   : > { %v1900_v58 = vmul.f32 %v1899_v61, %v3456_v43  ;;  %v1901_v62 = vmul.f32 %v1898_v57, %v3459_v44  ;;  %1964 = vmatprep.subr.mxu1 %v3348_v60 }
 0x2ed   : > { %1965 = vmatpush1.msra.mxu1 %v3338_v59 }
 0x2ee   : > { %v1889_v55 = vpop.permute.xlu1 %1888  ;;  %1966 = vmatprep.subr.mxu1 %v1901_v62  ;;  %v1871_v19 = vpop.permute.xlu0 %1870 }
 0x2ef   : > { %v1890_v5 = vsel %vm1610_vm7, %v1887_v54, %v1889_v55  ;;  %v1891_v6 = vsel %vm1610_vm7, %v1889_v55, %v1887_v54  ;;  %1967 = vmatpush1.msra.mxu1 %v1900_v58 }
 0x2f0   : > { %v1892_v10 = vmul.f32 %v1891_v6, %v3473_v52  ;;  %v1893_v11 = vmul.f32 %v1890_v5, %v3476_v53 }
 0x2f2   : > { %v1881_v12 = vpop.permute.xlu1 %1880  ;;  %1968 = vmatprep.subr.mxu1 %v1893_v11 }
 0x2f3   : > { %v1882_v60 = vsel %vm1588_vm8, %v1879_v9, %v1881_v12  ;;  %v1883_v59 = vsel %vm1588_vm8, %v1881_v12, %v1879_v9  ;;  %1969 = vmatpush1.msra.mxu1 %v1892_v10 }
 0x2f4   : > { %v1884_v13 = vmul.f32 %v1883_v59, %v3490_v63  ;;  %v1885_v18 = vmul.f32 %v1882_v60, %v3493_v4  ;;  %v1818_v60 = vld [vmem:[%s3940_s13] sm:$0xff]  ;;  %v1819_v59 = vld [vmem:[%s3940_s13 + $0x8] sm:$0xff] }
 0x2f6   : > { %v1873_v20 = vpop.permute.xlu1 %1872  ;;  %1970 = vmatprep.subr.mxu1 %v1885_v18 }
 0x2f7   : > { %v1874_v21 = vsel %vm1567_vm9, %v1871_v19, %v1873_v20  ;;  %v1875_v22 = vsel %vm1567_vm9, %v1873_v20, %v1871_v19  ;;  %1971 = vmatpush1.msra.mxu1 %v1884_v13  ;;  %v1820_v20 = vld [vmem:[%s3941_s14] sm:$0xff] }
 0x2f8   : > { %v1876_v23 = vmul.f32 %v1875_v22, %v3506_v14  ;;  %v1877_v2 = vmul.f32 %v1874_v21, %v3509_v15  ;;  %v1821_v21 = vld [vmem:[%s3941_s14 + $0x8] sm:$0xff] }
 0x2fa   : > { %1972 = vmatprep.subr.mxu1 %v1877_v2 }
 0x2fb   : > { %1973 = vmatpush1.msra.mxu1 %v1876_v23  ;;  %v1741_v24 = vpop.permute.xlu0 %1740 }
 0x2fc   : > { %2835 = vmatmul.mubr.msk.f32.vlgmr.msra.gmra.mxu1 %vm1743_vm10, %v1868_v3 }
 0x2fd   : > { %2390 = vmatprep.mubr.f32.mxu1 %v3021_v0 }
 0x39c   : > { %v1813_v27 = vpop.f32.mrf.mxu0 }
 0x39d   : > { %v1814_v28 = vadd.f32 %v1813_v27, %v1741_v24 }
 0x39e   : > { %v1815_v29 = vpop.f32.mrf.mxu0 }
 0x39f   : > { %v1816_v30 = vadd.f32 %v1815_v29, %v1741_v24  ;;  %v1833_v32 = vmul.f32 %v1814_v28, %v1814_v28 }
 0x3a1   : > { %v1822_v31 = vadd.f32 %v1816_v30, %v1814_v28  ;;  %v1834_v33 = vmul.f32 %v1816_v30, %v1816_v30 }
 0x3a3   : > { %1823 = vadd.xlane.f32.xlu1 %v1822_v31  ;;  %v1835_v36 = vadd.f32 %v1834_v33, %v1833_v32 }
 0x3a5   : > { %1836 = vadd.xlane.f32.xlu0 %v1835_v36 }
 0x3bb   : > { %1936 = vperm.xlu0 %2964, %v1869_v37  }
 0x3bc   : > { %v2008_v13 = vpop.f32.mrf.mxu1 }
 0x3be   : > { %v2010_v3 = vpop.f32.mrf.mxu1 }
 0x3bf   : > { %2050 = vperm.xlu0 %2964, %v2016_v38  }
 0x42c   : > { %v1824_v39 = vpop.xlane.xlu1 %1823 }
 0x42d   : > { %v1825_v40 = vrot.slane %v1824_v39, 4 }
 0x42e   : > { %v1837_v41 = vpop.xlane.xlu0 %1836 }
 0x42f   : > { %v1826_v42 = vadd.f32 %v1825_v40, %v1824_v39  ;;  %v1838_v45 = vrot.slane %v1837_v41, 4 }
 0x431   : > { %v1827_v46 = vrot.slane %v1826_v42, 2  ;;  %v1839_v47 = vadd.f32 %v1838_v45, %v1837_v41 }
 0x433   : > { %v1840_v48 = vrot.slane %v1839_v47, 2  ;;  %v1828_v49 = vadd.f32 %v1827_v46, %v1826_v42 }
 0x435   : > { %v1829_v50 = vrot.slane %v1828_v49, 1  ;;  %v1841_v51 = vadd.f32 %v1840_v48, %v1839_v47  ;;  %v2015_v48 = vld [vmem:[%s840_s0] sm:$0xff] }
 0x436   : > { %v1937_v2 = vpop.permute.xlu0 %1936 }
 0x437   : > { %v1830_v54 = vadd.f32 %v1829_v50, %v1828_v49  ;;  %v1842_v56 = vrot.slane %v1841_v51, 1  ;;  %v2011_v31 = vadd.f32 %v2010_v3, %v1937_v2 }
 0x439   : > { %2914 = vpush %v1830_v54  ;;  %v1843_v57 = vadd.f32 %v1842_v56, %v1841_v51 }
 0x43b   : > { %2916 = vpush %v1843_v57 }
 0x46a   : > { %s2915_s7 = spop %2914 }
 0x46b   : > { %v1832_v61 = vstv %s2915_s7  ;;  %s3996_s7 = smov 15  }
 0x46c   : > { %v1846_v58 = vmul.f32 0.0009765625, %v1832_v61  ;;  %s2917_s27 = spop %2916 }
 0x46d   : > { %v1845_v62 = vstv %s2917_s27  ;;  %s3997_s27 = smov 16  }
 0x46e   : > { %v1847_v55 = vmul.f32 0.0009765625, %v1845_v62  ;;  %v1848_v5 = vmul.f32 %v1846_v58, %v1846_v58  ;;  %v1850_v10 = vsub.f32 %v1814_v28, %v1846_v58  ;;  %v1851_v11 = vsub.f32 %v1816_v30, %v1846_v58 }
 0x46f   : > { %v2009_v30 = vadd.f32 %v2008_v13, %v1937_v2 }
 0x470   : > { %v1849_v6 = vsub.f32 %v1847_v55, %v1848_v5 }
 0x472   : > { %v1852_v9 = vadd.f32 1e-05, %v1849_v6 }
 0x474   : > { %2966 = vrsqrt.f32 %v1852_v9 }
 0x481   : > { %v2967_v12 = vpop.eup %2966 }
 0x482   : > { %v1854_v18 = vmul.f32 %v2967_v12, %v1850_v10  ;;  %v1855_v19 = vmul.f32 %v2967_v12, %v1851_v11  ;;  %v2051_v11 = vpop.permute.xlu0 %2050 }
 0x484   : > { %v1856_v22 = vmul.f32 %v1854_v18, %v1818_v60  ;;  %v1857_v23 = vmul.f32 %v1855_v19, %v1819_v59  ;;  %v2056_v59 = vld [vmem:[%s3948_s21] sm:$0xff] }
 0x486   : > { %v1858_v24 = vadd.f32 %v1856_v22, %v1820_v20  ;;  %v1859_v27 = vadd.f32 %v1857_v23, %v1821_v21 }
 0x488   : > { %vm1860_vm11 = vcmp.ge.f32.partialorder %v1858_v24, 0.0  ;;  %vm1861_vm12 = vcmp.ge.f32.partialorder %v1859_v27, 0.0  ;;  %v1862_v28 = vmul.f32 0.01, %v1858_v24  ;;  %v1863_v29 = vmul.f32 0.01, %v1859_v27 }
 0x48a   : > { %v1864_v32 = vsel %vm1860_vm11, %v1858_v24, %v1862_v28  ;;  %v1865_v33 = vsel %vm1861_vm12, %v1859_v27, %v1863_v29 }
 0x48b   : > { %v2013_v36 = vadd.f32 %v2009_v30, %v1864_v32  ;;  %v2014_v37 = vadd.f32 %v2011_v31, %v1865_v33 }
 0x48d   : > { %v2017_v38 = vadd.f32 %v2014_v37, %v2013_v36 }
 0x48f   : > { %2018 = vadd.xlane.f32.xlu1 %v2017_v38 }
 0x518   : > { %v2019_v39 = vpop.xlane.xlu1 %2018 }
 0x519   : > { %v2021_v40 = vmul.f32 0.00390625, %v2019_v39 }
 0x51b   : > { %v2022_v41 = vsub.f32 %v2013_v36, %v2021_v40  ;;  %v2023_v42 = vsub.f32 %v2014_v37, %v2021_v40 }
 0x51d   : > { %v2024_v45 = vmul.f32 %v2022_v41, %v2022_v41  ;;  %v2025_v46 = vmul.f32 %v2023_v42, %v2023_v42 }
 0x51f   : > { %v2026_v47 = vadd.f32 %v2025_v46, %v2024_v45 }
 0x521   : > { %2027 = vadd.xlane.f32.xlu1 %v2026_v47 }
 0x532   : > { %2043 = vperm.xlu1 %2965, %v2015_v48  }
 0x5aa   : > { %v2028_v49 = vpop.xlane.xlu1 %2027 }
 0x5ab   : > { %v2029_v50 = vmul.f32 0.003921569, %v2028_v49 }
 0x5ad   : > { %2968 = vrsqrt.f32 %v2029_v50  ;;  %vm2032_vm13 = vcmp.eq.f32.partialorder %v2029_v50, inf  ;;  %v2035_v56 = vand.u32 2147483648, %v2029_v50  ;;  %vm2034_vm14 = vcmp.eq.f32.partialorder %v2029_v50, 0.0 }
 0x5ae   : > { %v2044_v55 = vpop.permute.xlu1 %2043 }
 0x5ba   : > { %v2969_v51 = vpop.eup %2968 }
 0x5bb   : > { %v2031_v54 = vmul.f32 %v2969_v51, %v2029_v50 }
 0x5bd   : > { %v2033_v57 = vsel %vm2032_vm13, %v2029_v50, %v2031_v54 }
 0x5be   : > { %v2036_v61 = vsel %vm2034_vm14, %v2035_v56, %v2033_v57 }
 0x5bf   : > { %v2037_v58 = vadd.f32 1e-09, %v2036_v61 }
 0x5c1   : > { %2970 = vrcp.f32 %v2037_v58 }
 0x5ce   : > { %v2971_v62 = vpop.eup %2970 }
 0x5cf   : > { %v2039_v5 = vmul.f32 %v2971_v62, %v2022_v41  ;;  %v2040_v6 = vmul.f32 %v2971_v62, %v2023_v42 }
 0x5d1   : > { %v2046_v9 = vmul.f32 %v2044_v55, %v2039_v5  ;;  %v2047_v10 = vmul.f32 %v2044_v55, %v2040_v6 }
 0x5d3   : > { %v3600_v12 = vadd.f32 %v2051_v11, %v2046_v9  ;;  %v3602_v60 = vadd.f32 %v2051_v11, %v2047_v10 }
 0x5d5   : > { %2115 = vrot.lane.b32.xlu1 %v3602_v60, %s3967_s30  ;;  %2113 = vrot.lane.b32.xlu0 %v3600_v12, %s3967_s30  ;;  %s836_s30 = scalar_lea.vmem %s4000_s4, %s3324_s1 }
 0x5d9   : > { %2107 = vrot.lane.b32.xlu1 %v3602_v60, %s3989_s26  ;;  %2105 = vrot.lane.b32.xlu0 %v3600_v12, %s3989_s26 }
 0x5dd   : > { %2099 = vrot.lane.b32.xlu1 %v3602_v60, %s3990_s6  ;;  %2097 = vrot.lane.b32.xlu0 %v3600_v12, %s3990_s6 }
 0x5e1   : > { %2091 = vrot.lane.b32.xlu1 %v3602_v60, %s3994_s25  ;;  %2089 = vrot.lane.b32.xlu0 %v3600_v12, %s3994_s25 }
 0x5e5   : > { %2083 = vrot.lane.b32.xlu1 %v3602_v60, %s3995_s2  ;;  %2081 = vrot.lane.b32.xlu0 %v3600_v12, %s3995_s2 }
 0x5e9   : > { %2075 = vrot.lane.b32.xlu1 %v3602_v60, %s3996_s7  ;;  %2073 = vrot.lane.b32.xlu0 %v3600_v12, %s3996_s7 }
 0x5ed   : > { %2067 = vrot.lane.b32.xlu1 %v3602_v60, %s3997_s27  ;;  %2065 = vrot.lane.b32.xlu0 %v3600_v12, %s3997_s27 }
 0x5f1   : > { %2059 = vrot.lane.b32.xlu1 %v3602_v60, %s3998_s28  ;;  %2057 = vrot.lane.b32.xlu0 %v3600_v12, %s3998_s28 }
 0x5f5   : > { %2123 = vperm.xlu0 %2964, %v2056_v59  }
 0x647   : > { %v2116_v13 = vpop.permute.xlu1 %2115  ;;  %v2114_v18 = vpop.permute.xlu0 %2113 }
 0x648   : > { %v2117_v19 = vsel %vm1720_vm2, %v2114_v18, %v2116_v13  ;;  %v2118_v20 = vsel %vm1720_vm2, %v2116_v13, %v2114_v18 }
 0x649   : > { %v2119_v21 = vmul.f32 %v2117_v19, %v3392_v7  ;;  %v2120_v22 = vmul.f32 %v2118_v20, %v3395_v8 }
 0x64b   : > { %v2108_v23 = vpop.permute.xlu1 %2107  ;;  %2143 = vmatprep.subr.mxu0 %v2120_v22  ;;  %v2106_v2 = vpop.permute.xlu0 %2105 }
 0x64c   : > { %v2109_v3 = vsel %vm1698_vm3, %v2106_v2, %v2108_v23  ;;  %v2110_v24 = vsel %vm1698_vm3, %v2108_v23, %v2106_v2  ;;  %2144 = vmatpush1.msra.mxu0 %v2119_v21  ;;  %v2055_v21 = vld [vmem:[%s3947_s20] sm:$0xff] }
 0x64d   : > { %v2111_v27 = vmul.f32 %v2109_v3, %v3408_v16  ;;  %v2112_v28 = vmul.f32 %v2110_v24, %v3411_v17 }
 0x64f   : > { %v2100_v29 = vpop.permute.xlu1 %2099  ;;  %2145 = vmatprep.subr.mxu0 %v2112_v28  ;;  %v2098_v30 = vpop.permute.xlu0 %2097 }
 0x650   : > { %v2101_v31 = vsel %vm1676_vm4, %v2098_v30, %v2100_v29  ;;  %v2102_v32 = vsel %vm1676_vm4, %v2100_v29, %v2098_v30  ;;  %2146 = vmatpush1.msra.mxu0 %v2111_v27 }
 0x651   : > { %v2103_v33 = vmul.f32 %v2101_v31, %v3424_v25  ;;  %v2104_v36 = vmul.f32 %v2102_v32, %v3427_v26 }
 0x653   : > { %v2092_v37 = vpop.permute.xlu1 %2091  ;;  %2147 = vmatprep.subr.mxu0 %v2104_v36  ;;  %v2090_v38 = vpop.permute.xlu0 %2089 }
 0x654   : > { %v2093_v39 = vsel %vm1654_vm5, %v2090_v38, %v2092_v37  ;;  %v2094_v40 = vsel %vm1654_vm5, %v2092_v37, %v2090_v38  ;;  %2148 = vmatpush1.msra.mxu0 %v2103_v33 }
 0x655   : > { %v2095_v41 = vmul.f32 %v2093_v39, %v3440_v34  ;;  %v2096_v42 = vmul.f32 %v2094_v40, %v3443_v35 }
 0x657   : > { %v2084_v45 = vpop.permute.xlu1 %2083  ;;  %2149 = vmatprep.subr.mxu0 %v2096_v42  ;;  %v2082_v46 = vpop.permute.xlu0 %2081 }
 0x658   : > { %v2085_v47 = vsel %vm1632_vm6, %v2082_v46, %v2084_v45  ;;  %v2086_v48 = vsel %vm1632_vm6, %v2084_v45, %v2082_v46  ;;  %2150 = vmatpush1.msra.mxu0 %v2095_v41 }
 0x659   : > { %v2087_v49 = vmul.f32 %v2086_v48, %v3456_v43  ;;  %v2088_v50 = vmul.f32 %v2085_v47, %v3459_v44  ;;  %2151 = vmatprep.subr.mxu0 %v3602_v60 }
 0x65a   : > { %2152 = vmatpush1.msra.mxu0 %v3600_v12 }
 0x65b   : > { %v2076_v51 = vpop.permute.xlu1 %2075  ;;  %2153 = vmatprep.subr.mxu0 %v2088_v50  ;;  %v2074_v54 = vpop.permute.xlu0 %2073 }
 0x65c   : > { %v2077_v56 = vsel %vm1610_vm7, %v2074_v54, %v2076_v51  ;;  %v2078_v57 = vsel %vm1610_vm7, %v2076_v51, %v2074_v54  ;;  %2154 = vmatpush1.msra.mxu0 %v2087_v49 }
 0x65d   : > { %v2079_v61 = vmul.f32 %v2078_v57, %v3473_v52  ;;  %v2080_v58 = vmul.f32 %v2077_v56, %v3476_v53 }
 0x65f   : > { %v2068_v62 = vpop.permute.xlu1 %2067  ;;  %2155 = vmatprep.subr.mxu0 %v2080_v58  ;;  %v2066_v55 = vpop.permute.xlu0 %2065 }
 0x660   : > { %v2069_v5 = vsel %vm1588_vm8, %v2066_v55, %v2068_v62  ;;  %v2070_v6 = vsel %vm1588_vm8, %v2068_v62, %v2066_v55  ;;  %2156 = vmatpush1.msra.mxu0 %v2079_v61  ;;  %v2200_v55 = vld [vmem:[%s3949_s22] sm:$0xff] }
 0x661   : > { %v2071_v9 = vmul.f32 %v2070_v6, %v3490_v63  ;;  %v2072_v10 = vmul.f32 %v2069_v5, %v3493_v4  ;;  %v2201_v5 = vld [vmem:[%s3949_s22 + $0x8] sm:$0xff] }
 0x663   : > { %v2060_v11 = vpop.permute.xlu1 %2059  ;;  %2157 = vmatprep.subr.mxu0 %v2072_v10  ;;  %v2058_v59 = vpop.permute.xlu0 %2057  ;;  %v2202_v10 = vld [vmem:[%s3950_s23] sm:$0xff] }
 0x664   : > { %v2061_v13 = vsel %vm1567_vm9, %v2058_v59, %v2060_v11  ;;  %v2062_v18 = vsel %vm1567_vm9, %v2060_v11, %v2058_v59  ;;  %2158 = vmatpush1.msra.mxu0 %v2071_v9  ;;  %v2203_v11 = vld [vmem:[%s3950_s23 + $0x8] sm:$0xff] }
 0x665   : > { %v2063_v19 = vmul.f32 %v2062_v18, %v3506_v14  ;;  %v2064_v20 = vmul.f32 %v2061_v13, %v3509_v15 }
 0x667   : > { %2159 = vmatprep.subr.mxu0 %v2064_v20 }
 0x668   : > { %2160 = vmatpush1.msra.mxu0 %v2063_v19 }
 0x669   : > { %2836 = vmatmul.mubr.msk.f32.vlgmr.msra.gmra.mxu0 %vm1743_vm10, %v2055_v21 }
 0x66a   : > { %2589 = vmatprep.mubr.f32.mxu0 %v3021_v0 }
 0x670   : > { %v2124_v22 = vpop.permute.xlu0 %2123 }
 0x729   : > { %v2195_v23 = vpop.f32.mrf.mxu0 }
 0x72a   : > { %v2196_v2 = vadd.f32 %v2195_v23, %v2124_v22 }
 0x72b   : > { %v2197_v3 = vpop.f32.mrf.mxu0 }
 0x72c   : > { %v2198_v24 = vadd.f32 %v2197_v3, %v2124_v22  ;;  %v2215_v28 = vmul.f32 %v2196_v2, %v2196_v2 }
 0x72e   : > { %v2204_v27 = vadd.f32 %v2198_v24, %v2196_v2  ;;  %v2216_v29 = vmul.f32 %v2198_v24, %v2198_v24 }
 0x730   : > { %2205 = vadd.xlane.f32.xlu1 %v2204_v27  ;;  %v2217_v30 = vadd.f32 %v2216_v29, %v2215_v28 }
 0x732   : > { %2218 = vadd.xlane.f32.xlu0 %v2217_v30 }
 0x7b9   : > { %v2206_v31 = vpop.xlane.xlu1 %2205 }
 0x7ba   : > { %v2207_v32 = vrot.slane %v2206_v31, 4 }
 0x7bb   : > { %v2219_v33 = vpop.xlane.xlu0 %2218 }
 0x7bc   : > { %v2208_v36 = vadd.f32 %v2207_v32, %v2206_v31  ;;  %v2220_v37 = vrot.slane %v2219_v33, 4 }
 0x7be   : > { %v2209_v38 = vrot.slane %v2208_v36, 2  ;;  %v2221_v39 = vadd.f32 %v2220_v37, %v2219_v33 }
 0x7c0   : > { %v2222_v40 = vrot.slane %v2221_v39, 2  ;;  %v2210_v0 = vadd.f32 %v2209_v38, %v2208_v36 }
 0x7c2   : > { %v2211_v41 = vrot.slane %v2210_v0, 1  ;;  %v2223_v42 = vadd.f32 %v2222_v40, %v2221_v39 }
 0x7c4   : > { %v2212_v45 = vadd.f32 %v2211_v41, %v2210_v0  ;;  %v2224_v46 = vrot.slane %v2223_v42, 1 }
 0x7c6   : > { %2918 = vpush %v2212_v45  ;;  %v2225_v47 = vadd.f32 %v2224_v46, %v2223_v42 }
 0x7c8   : > { %2920 = vpush %v2225_v47 }
 0x7f7   : > { %s2919_s8 = spop %2918 }
 0x7f8   : > { %v2214_v48 = vstv %s2919_s8 }
 0x7f9   : > { %v2228_v49 = vmul.f32 0.0009765625, %v2214_v48  ;;  %s2921_s0 = spop %2920 }
 0x7fa   : > { %v2227_v50 = vstv %s2921_s0  ;;  %s4002_s0 = sld [smem:[#allocation10_spill]] }
 0x7fb   : > { %v2229_v51 = vmul.f32 0.0009765625, %v2227_v50  ;;  %v2230_v54 = vmul.f32 %v2228_v49, %v2228_v49  ;;  %v2232_v61 = vsub.f32 %v2196_v2, %v2228_v49  ;;  %v2233_v58 = vsub.f32 %v2198_v24, %v2228_v49  ;;  %v2838_v24 = vld [vmem:[%s3948_s21 + $0x8] sm:$0xff] }
 0x7fd   : > { %v2231_v56 = vsub.f32 %v2229_v51, %v2230_v54 }
 0x7ff   : > { %v2234_v57 = vadd.f32 1e-05, %v2231_v56 }
 0x801   : > { %2972 = vrsqrt.f32 %v2234_v57 }
 0x80e   : > { %v2973_v62 = vpop.eup %2972 }
 0x80f   : > { %v2236_v6 = vmul.f32 %v2973_v62, %v2232_v61  ;;  %v2237_v9 = vmul.f32 %v2973_v62, %v2233_v58 }
 0x811   : > { %v2238_v59 = vmul.f32 %v2236_v6, %v2200_v55  ;;  %v2239_v13 = vmul.f32 %v2237_v9, %v2201_v5 }
 0x813   : > { %v2240_v18 = vadd.f32 %v2238_v59, %v2202_v10  ;;  %v2241_v19 = vadd.f32 %v2239_v13, %v2203_v11 }
 0x815   : > { %vm2242_vm15 = vcmp.ge.f32.partialorder %v2240_v18, 0.0  ;;  %vm2243_vm0 = vcmp.ge.f32.partialorder %v2241_v19, 0.0  ;;  %v2244_v20 = vmul.f32 0.01, %v2240_v18  ;;  %v2245_v21 = vmul.f32 0.01, %v2241_v19 }
 0x817   : > { %v2246_v22 = vsel %vm2242_vm15, %v2240_v18, %v2244_v20  ;;  %v2247_v23 = vsel %vm2243_vm0, %v2241_v19, %v2245_v21 }
 0x818   : > { %v3707_v2 = vadd.f32 %v2246_v22, %v3600_v12  ;;  %v3710_v3 = vadd.f32 %v2247_v23, %v3602_v60  ;;  %v3748_v12 = vld [vmem:[%s836_s30] sm:$0xff]  ;;  %v3750_v60 = vld [vmem:[%s836_s30 + $0x8] sm:$0xff] }
 0x81a   : > { %2312 = vrot.lane.b32.xlu1 %v3710_v3, %s3999_s9  ;;  %2310 = vrot.lane.b32.xlu0 %v3707_v2, %s3999_s9 }
 0x81e   : > { %2302 = vrot.lane.b32.xlu1 %v3707_v2, %s3989_s26  ;;  %2304 = vrot.lane.b32.xlu0 %v3710_v3, %s3989_s26 }
 0x822   : > { %2294 = vrot.lane.b32.xlu1 %v3707_v2, %s3990_s6  ;;  %2296 = vrot.lane.b32.xlu0 %v3710_v3, %s3990_s6 }
 0x826   : > { %2286 = vrot.lane.b32.xlu1 %v3707_v2, %s3994_s25  ;;  %2288 = vrot.lane.b32.xlu0 %v3710_v3, %s3994_s25 }
 0x82a   : > { %2278 = vrot.lane.b32.xlu1 %v3707_v2, %s3995_s2  ;;  %2280 = vrot.lane.b32.xlu0 %v3710_v3, %s3995_s2 }
 0x82e   : > { %2270 = vrot.lane.b32.xlu1 %v3707_v2, %s3996_s7  ;;  %2272 = vrot.lane.b32.xlu0 %v3710_v3, %s3996_s7 }
 0x832   : > { %2262 = vrot.lane.b32.xlu1 %v3707_v2, %s3997_s27  ;;  %2264 = vrot.lane.b32.xlu0 %v3710_v3, %s3997_s27 }
 0x836   : > { %2254 = vrot.lane.b32.xlu1 %v3707_v2, %s3998_s28  ;;  %2256 = vrot.lane.b32.xlu0 %v3710_v3, %s3998_s28 }
 0x83a   : > { %2509 = vrot.lane.b32.xlu1 %v3748_v12, %s3999_s9  ;;  %2511 = vrot.lane.b32.xlu0 %v3750_v60, %s3999_s9  ;;  %s4001_s9 = sld [smem:[#allocation11_spill]] }
 0x83e   : > { %2501 = vrot.lane.b32.xlu1 %v3748_v12, %s3989_s26  ;;  %2503 = vrot.lane.b32.xlu0 %v3750_v60, %s3989_s26 }
 0x840   : > { %s852_s10 = scalar_lea.vmem %s4001_s9, %s3198_s3  ;;  %s848_s9 = scalar_lea.vmem %s4002_s0, %s3198_s3 }
 0x842   : > { %2493 = vrot.lane.b32.xlu1 %v3748_v12, %s3990_s6  ;;  %2495 = vrot.lane.b32.xlu0 %v3750_v60, %s3990_s6 }
 0x846   : > { %2485 = vrot.lane.b32.xlu1 %v3748_v12, %s3994_s25  ;;  %2487 = vrot.lane.b32.xlu0 %v3750_v60, %s3994_s25 }
 0x84a   : > { %2477 = vrot.lane.b32.xlu1 %v3748_v12, %s3995_s2  ;;  %2479 = vrot.lane.b32.xlu0 %v3750_v60, %s3995_s2 }
 0x84e   : > { %2469 = vrot.lane.b32.xlu1 %v3748_v12, %s3996_s7  ;;  %2471 = vrot.lane.b32.xlu0 %v3750_v60, %s3996_s7 }
 0x852   : > { %2461 = vrot.lane.b32.xlu1 %v3748_v12, %s3997_s27  ;;  %2463 = vrot.lane.b32.xlu0 %v3750_v60, %s3997_s27 }
 0x856   : > { %2453 = vrot.lane.b32.xlu1 %v3748_v12, %s3998_s28  ;;  %2455 = vrot.lane.b32.xlu0 %v3750_v60, %s3998_s28 }
 0x85a   : > { %2320 = vperm.xlu1 %2965, %v2838_v24  }
 0x88c   : > { %v2313_v27 = vpop.permute.xlu1 %2312  ;;  %v2311_v28 = vpop.permute.xlu0 %2310 }
 0x88d   : > { %v2314_v29 = vsel %vm1720_vm2, %v2311_v28, %v2313_v27  ;;  %v2315_v30 = vsel %vm1720_vm2, %v2313_v27, %v2311_v28 }
 0x88e   : > { %v2316_v31 = vmul.f32 %v2314_v29, %v3392_v7  ;;  %v2317_v32 = vmul.f32 %v2315_v30, %v3395_v8 }
 0x890   : > { %v2303_v33 = vpop.permute.xlu1 %2302  ;;  %2340 = vmatprep.subr.mxu1 %v2317_v32  ;;  %v2305_v36 = vpop.permute.xlu0 %2304  ;;  %v2837_v32 = vld [vmem:[%s3947_s20 + $0x8] sm:$0xff] }
 0x891   : > { %v2306_v37 = vsel %vm1698_vm3, %v2303_v33, %v2305_v36  ;;  %v2307_v38 = vsel %vm1698_vm3, %v2305_v36, %v2303_v33  ;;  %2341 = vmatpush1.msra.mxu1 %v2316_v31 }
 0x892   : > { %v2308_v39 = vmul.f32 %v2306_v37, %v3408_v16  ;;  %v2309_v40 = vmul.f32 %v2307_v38, %v3411_v17 }
 0x894   : > { %v2295_v0 = vpop.permute.xlu1 %2294  ;;  %2342 = vmatprep.subr.mxu1 %v2309_v40  ;;  %v2297_v41 = vpop.permute.xlu0 %2296 }
 0x895   : > { %v2298_v42 = vsel %vm1676_vm4, %v2295_v0, %v2297_v41  ;;  %v2299_v45 = vsel %vm1676_vm4, %v2297_v41, %v2295_v0  ;;  %2343 = vmatpush1.msra.mxu1 %v2308_v39 }
 0x896   : > { %v2300_v46 = vmul.f32 %v2298_v42, %v3424_v25  ;;  %v2301_v47 = vmul.f32 %v2299_v45, %v3427_v26 }
 0x898   : > { %v2287_v48 = vpop.permute.xlu1 %2286  ;;  %2344 = vmatprep.subr.mxu1 %v2301_v47  ;;  %v2289_v49 = vpop.permute.xlu0 %2288 }
 0x899   : > { %v2290_v50 = vsel %vm1654_vm5, %v2287_v48, %v2289_v49  ;;  %v2291_v51 = vsel %vm1654_vm5, %v2289_v49, %v2287_v48  ;;  %2345 = vmatpush1.msra.mxu1 %v2300_v46 }
 0x89a   : > { %v2292_v54 = vmul.f32 %v2290_v50, %v3440_v34  ;;  %v2293_v56 = vmul.f32 %v2291_v51, %v3443_v35 }
 0x89c   : > { %v2279_v57 = vpop.permute.xlu1 %2278  ;;  %2346 = vmatprep.subr.mxu1 %v2293_v56  ;;  %v2281_v61 = vpop.permute.xlu0 %2280 }
 0x89d   : > { %v2282_v58 = vsel %vm1632_vm6, %v2279_v57, %v2281_v61  ;;  %v2283_v62 = vsel %vm1632_vm6, %v2281_v61, %v2279_v57  ;;  %2347 = vmatpush1.msra.mxu1 %v2292_v54 }
 0x89e   : > { %v2284_v55 = vmul.f32 %v2283_v62, %v3456_v43  ;;  %v2285_v5 = vmul.f32 %v2282_v58, %v3459_v44  ;;  %2348 = vmatprep.subr.mxu1 %v3710_v3 }
 0x89f   : > { %2349 = vmatpush1.msra.mxu1 %v3707_v2 }
 0x8a0   : > { %v2271_v6 = vpop.permute.xlu1 %2270  ;;  %2350 = vmatprep.subr.mxu1 %v2285_v5  ;;  %v2273_v9 = vpop.permute.xlu0 %2272 }
 0x8a1   : > { %v2274_v10 = vsel %vm1610_vm7, %v2271_v6, %v2273_v9  ;;  %v2275_v11 = vsel %vm1610_vm7, %v2273_v9, %v2271_v6  ;;  %2351 = vmatpush1.msra.mxu1 %v2284_v55 }
 0x8a2   : > { %v2276_v59 = vmul.f32 %v2275_v11, %v3473_v52  ;;  %v2277_v13 = vmul.f32 %v2274_v10, %v3476_v53 }
 0x8a4   : > { %v2263_v18 = vpop.permute.xlu1 %2262  ;;  %2352 = vmatprep.subr.mxu1 %v2277_v13  ;;  %v2265_v19 = vpop.permute.xlu0 %2264 }
 0x8a5   : > { %v2266_v20 = vsel %vm1588_vm8, %v2263_v18, %v2265_v19  ;;  %v2267_v21 = vsel %vm1588_vm8, %v2265_v19, %v2263_v18  ;;  %2353 = vmatpush1.msra.mxu1 %v2276_v59 }
 0x8a6   : > { %v2268_v22 = vmul.f32 %v2267_v21, %v3490_v63  ;;  %v2269_v23 = vmul.f32 %v2266_v20, %v3493_v4 }
 0x8a8   : > { %v2255_v24 = vpop.permute.xlu1 %2254  ;;  %2354 = vmatprep.subr.mxu1 %v2269_v23  ;;  %v2257_v27 = vpop.permute.xlu0 %2256 }
 0x8a9   : > { %v2258_v28 = vsel %vm1567_vm9, %v2255_v24, %v2257_v27  ;;  %v2259_v29 = vsel %vm1567_vm9, %v2257_v27, %v2255_v24  ;;  %2355 = vmatpush1.msra.mxu1 %v2268_v22 }
 0x8aa   : > { %v2260_v30 = vmul.f32 %v2259_v29, %v3506_v14  ;;  %v2261_v31 = vmul.f32 %v2258_v28, %v3509_v15 }
 0x8ac   : > { %2356 = vmatprep.subr.mxu1 %v2261_v31  ;;  %v2510_v33 = vpop.permute.xlu1 %2509  ;;  %v2512_v36 = vpop.permute.xlu0 %2511 }
 0x8ad   : > { %2357 = vmatpush1.msra.mxu1 %v2260_v30  ;;  %v2513_v37 = vsel %vm1720_vm2, %v2510_v33, %v2512_v36  ;;  %v2514_v38 = vsel %vm1720_vm2, %v2512_v36, %v2510_v33  ;;  %v2599_v30 = vld [vmem:[%s852_s10] sm:$0xff] }
 0x8ae   : > { %2839 = vmatmul.mubr.msk.f32.vlgmr.msra.gmra.mxu1 %vm1743_vm10, %v2837_v32  ;;  %v2515_v39 = vmul.f32 %v2513_v37, %v3392_v7  ;;  %v2516_v40 = vmul.f32 %v2514_v38, %v3395_v8 }
 0x8b0   : > { %v2502_v0 = vpop.permute.xlu1 %2501  ;;  %v2504_v41 = vpop.permute.xlu0 %2503  ;;  %2539 = vmatprep.subr.mxu0 %v2516_v40 }
 0x8b1   : > { %v2505_v42 = vsel %vm1698_vm3, %v2502_v0, %v2504_v41  ;;  %v2506_v45 = vsel %vm1698_vm3, %v2504_v41, %v2502_v0  ;;  %2540 = vmatpush1.msra.mxu0 %v2515_v39 }
 0x8b2   : > { %v2507_v46 = vmul.f32 %v2505_v42, %v3408_v16  ;;  %v2508_v47 = vmul.f32 %v2506_v45, %v3411_v17 }
 0x8b4   : > { %v2494_v48 = vpop.permute.xlu1 %2493  ;;  %v2496_v49 = vpop.permute.xlu0 %2495  ;;  %2541 = vmatprep.subr.mxu0 %v2508_v47 }
 0x8b5   : > { %v2497_v7 = vsel %vm1676_vm4, %v2494_v48, %v2496_v49  ;;  %v2498_v8 = vsel %vm1676_vm4, %v2496_v49, %v2494_v48  ;;  %2542 = vmatpush1.msra.mxu0 %v2507_v46 }
 0x8b6   : > { %v2499_v50 = vmul.f32 %v2497_v7, %v3424_v25  ;;  %v2500_v51 = vmul.f32 %v2498_v8, %v3427_v26 }
 0x8b8   : > { %v2486_v54 = vpop.permute.xlu1 %2485  ;;  %v2488_v56 = vpop.permute.xlu0 %2487  ;;  %2543 = vmatprep.subr.mxu0 %v2500_v51 }
 0x8b9   : > { %v2489_v16 = vsel %vm1654_vm5, %v2486_v54, %v2488_v56  ;;  %v2490_v17 = vsel %vm1654_vm5, %v2488_v56, %v2486_v54  ;;  %2544 = vmatpush1.msra.mxu0 %v2499_v50 }
 0x8ba   : > { %v2491_v57 = vmul.f32 %v2489_v16, %v3440_v34  ;;  %v2492_v61 = vmul.f32 %v2490_v17, %v3443_v35 }
 0x8bc   : > { %v2478_v58 = vpop.permute.xlu1 %2477  ;;  %v2480_v62 = vpop.permute.xlu0 %2479  ;;  %2545 = vmatprep.subr.mxu0 %v2492_v61  ;;  %v2841_v61 = vld [vmem:[%s3949_s22 + $0x18] sm:$0xff] }
 0x8bd   : > { %v2481_v25 = vsel %vm1632_vm6, %v2478_v58, %v2480_v62  ;;  %v2482_v26 = vsel %vm1632_vm6, %v2480_v62, %v2478_v58  ;;  %2546 = vmatpush1.msra.mxu0 %v2491_v57  ;;  %v2840_v57 = vld [vmem:[%s3949_s22 + $0x10] sm:$0xff] }
 0x8be   : > { %v2483_v55 = vmul.f32 %v2482_v26, %v3456_v43  ;;  %v2484_v5 = vmul.f32 %v2481_v25, %v3459_v44  ;;  %2547 = vmatprep.subr.mxu0 %v3750_v60  ;;  %v2842_v25 = vld [vmem:[%s3950_s23 + $0x10] sm:$0xff]  ;;  %v2843_v26 = vld [vmem:[%s3950_s23 + $0x18] sm:$0xff] }
 0x8bf   : > { %2548 = vmatpush1.msra.mxu0 %v3748_v12 }
 0x8c0   : > { %v2470_v34 = vpop.permute.xlu1 %2469  ;;  %v2472_v35 = vpop.permute.xlu0 %2471  ;;  %2549 = vmatprep.subr.mxu0 %v2484_v5 }
 0x8c1   : > { %v2473_v6 = vsel %vm1610_vm7, %v2470_v34, %v2472_v35  ;;  %v2474_v9 = vsel %vm1610_vm7, %v2472_v35, %v2470_v34  ;;  %2550 = vmatpush1.msra.mxu0 %v2483_v55 }
 0x8c2   : > { %v2475_v10 = vmul.f32 %v2474_v9, %v3473_v52  ;;  %v2476_v43 = vmul.f32 %v2473_v6, %v3476_v53 }
 0x8c4   : > { %v2462_v11 = vpop.permute.xlu1 %2461  ;;  %v2464_v44 = vpop.permute.xlu0 %2463  ;;  %2551 = vmatprep.subr.mxu0 %v2476_v43 }
 0x8c5   : > { %v2465_v12 = vsel %vm1588_vm8, %v2462_v11, %v2464_v44  ;;  %v2466_v60 = vsel %vm1588_vm8, %v2464_v44, %v2462_v11  ;;  %2552 = vmatpush1.msra.mxu0 %v2475_v10 }
 0x8c6   : > { %v2467_v59 = vmul.f32 %v2466_v60, %v3490_v63  ;;  %v2468_v13 = vmul.f32 %v2465_v12, %v3493_v4  ;;  %v2451_v63 = vld [vmem:[%s3945_s18] sm:$0xff] }
 0x8c8   : > { %v2454_v18 = vpop.permute.xlu1 %2453  ;;  %v2456_v19 = vpop.permute.xlu0 %2455  ;;  %2553 = vmatprep.subr.mxu0 %v2468_v13 }
 0x8c9   : > { %v2457_v52 = vsel %vm1567_vm9, %v2454_v18, %v2456_v19  ;;  %v2458_v53 = vsel %vm1567_vm9, %v2456_v19, %v2454_v18  ;;  %2554 = vmatpush1.msra.mxu0 %v2467_v59 }
 0x8ca   : > { %v2459_v20 = vmul.f32 %v2458_v53, %v3506_v14  ;;  %v2460_v21 = vmul.f32 %v2457_v52, %v3509_v15  ;;  %v2452_v15 = vld [vmem:[%s3946_s19] sm:$0xff] }
 0x8cc   : > { %2555 = vmatprep.subr.mxu0 %v2460_v21 }
 0x8cd   : > { %2556 = vmatpush1.msra.mxu0 %v2459_v20 }
 0x8ce   : > { %2844 = vmatmul.mubr.msk.f32.vlgmr.msra.gmra.mxu0 %vm1743_vm10, %v2451_v63 }
 0x8d5   : > { %v2321_v4 = vpop.permute.xlu1 %2320 }
 0x96e   : > { %v2392_v22 = vpop.f32.mrf.mxu1 }
 0x96f   : > { %v2393_v23 = vadd.f32 %v2392_v22, %v2321_v4 }
 0x970   : > { %v2394_v24 = vpop.f32.mrf.mxu1 }
 0x971   : > { %v2395_v1 = vadd.f32 %v2394_v24, %v2321_v4  ;;  %v2414_v27 = vmul.f32 %v2393_v23, %v2393_v23 }
 0x973   : > { %v2415_v28 = vmul.f32 %v2395_v1, %v2395_v1  ;;  %v2403_v29 = vadd.f32 %v2395_v1, %v2393_v23 }
 0x975   : > { %2404 = vadd.xlane.f32.xlu0 %v2403_v29  ;;  %v2416_v14 = vadd.f32 %v2415_v28, %v2414_v27 }
 0x977   : > { %2417 = vadd.xlane.f32.xlu1 %v2416_v14 }
 0x98b   : > { %2519 = vperm.xlu0 %2964, %v2452_v15  }
 0x98e   : > { %v2591_v55 = vpop.f32.mrf.mxu0 }
 0x98f   : > { %2632 = vperm.xlu0 %2964, %v2599_v30  }
 0x990   : > { %v2593_v9 = vpop.f32.mrf.mxu0 }
 0x9fe   : > { %v2405_v31 = vpop.xlane.xlu0 %2404 }
 0x9ff   : > { %v2406_v32 = vrot.slane %v2405_v31, 4 }
 0xa00   : > { %v2418_v33 = vpop.xlane.xlu1 %2417 }
 0xa01   : > { %v2407_v36 = vadd.f32 %v2406_v32, %v2405_v31  ;;  %v2419_v37 = vrot.slane %v2418_v33, 4 }
 0xa03   : > { %v2408_v38 = vrot.slane %v2407_v36, 2  ;;  %v2420_v39 = vadd.f32 %v2419_v37, %v2418_v33 }
 0xa05   : > { %v2421_v40 = vrot.slane %v2420_v39, 2  ;;  %v2409_v0 = vadd.f32 %v2408_v38, %v2407_v36 }
 0xa06   : > { %v2520_v10 = vpop.permute.xlu0 %2519 }
 0xa07   : > { %v2410_v41 = vrot.slane %v2409_v0, 1  ;;  %v2422_v42 = vadd.f32 %v2421_v40, %v2420_v39  ;;  %v2592_v60 = vadd.f32 %v2591_v55, %v2520_v10  ;;  %v2594_v59 = vadd.f32 %v2593_v9, %v2520_v10 }
 0xa09   : > { %v2411_v45 = vadd.f32 %v2410_v41, %v2409_v0  ;;  %v2423_v46 = vrot.slane %v2422_v42, 1 }
 0xa0a   : > { %v2633_v39 = vpop.permute.xlu0 %2632 }
 0xa0b   : > { %2922 = vpush %v2411_v45  ;;  %v2424_v47 = vadd.f32 %v2423_v46, %v2422_v42 }
 0xa0d   : > { %2924 = vpush %v2424_v47 }
 0xa3c   : > { %s2923_s11 = spop %2922 }
 0xa3d   : > { %v2413_v48 = vstv %s2923_s11  ;;  %s857_s11 = scalar_lea.vmem %s3951_s24, %s3324_s1 }
 0xa3e   : > { %v2427_v49 = vmul.f32 0.0009765625, %v2413_v48  ;;  %s2925_s4 = spop %2924 }
 0xa3f   : > { %v2426_v7 = vstv %s2925_s4 }
 0xa40   : > { %v2428_v8 = vmul.f32 0.0009765625, %v2426_v7  ;;  %v2429_v50 = vmul.f32 %v2427_v49, %v2427_v49  ;;  %v2431_v56 = vsub.f32 %v2393_v23, %v2427_v49  ;;  %v2432_v16 = vsub.f32 %v2395_v1, %v2427_v49  ;;  %v2598_v1 = vld [vmem:[%s848_s9] sm:$0xff] }
 0xa42   : > { %v2430_v51 = vsub.f32 %v2428_v8, %v2429_v50 }
 0xa44   : > { %v2433_v54 = vadd.f32 1e-05, %v2430_v51 }
 0xa46   : > { %2974 = vrsqrt.f32 %v2433_v54 }
 0xa53   : > { %v2975_v17 = vpop.eup %2974 }
 0xa54   : > { %v2435_v58 = vmul.f32 %v2975_v17, %v2431_v56  ;;  %v2436_v62 = vmul.f32 %v2975_v17, %v2432_v16 }
 0xa56   : > { %v2437_v5 = vmul.f32 %v2840_v57, %v2435_v58  ;;  %v2438_v34 = vmul.f32 %v2841_v61, %v2436_v62 }
 0xa58   : > { %v2439_v35 = vadd.f32 %v2842_v25, %v2437_v5  ;;  %v2440_v6 = vadd.f32 %v2843_v26, %v2438_v34 }
 0xa5a   : > { %vm2441_vm1 = vcmp.ge.f32.partialorder %v2439_v35, 0.0  ;;  %vm2442_vm2 = vcmp.ge.f32.partialorder %v2440_v6, 0.0  ;;  %v2443_v43 = vmul.f32 0.01, %v2439_v35  ;;  %v2444_v11 = vmul.f32 0.01, %v2440_v6 }
 0xa5c   : > { %v2445_v44 = vsel %vm2441_vm1, %v2439_v35, %v2443_v43  ;;  %v2446_v12 = vsel %vm2442_vm2, %v2440_v6, %v2444_v11 }
 0xa5d   : > { %v2447_v13 = vadd.f32 %v2445_v44, %v3707_v2  ;;  %v2448_v18 = vadd.f32 %v2446_v12, %v3710_v3 }
 0xa5f   : > { %v2596_v19 = vadd.f32 %v2592_v60, %v2447_v13  ;;  %v2597_v52 = vadd.f32 %v2594_v59, %v2448_v18 }
 0xa61   : > { %v2600_v53 = vadd.f32 %v2597_v52, %v2596_v19 }
 0xa63   : > { %2601 = vadd.xlane.f32.xlu1 %v2600_v53 }
 0xaec   : > { %v2602_v20 = vpop.xlane.xlu1 %2601 }
 0xaed   : > { %v2603_v21 = vmul.f32 0.00390625, %v2602_v20 }
 0xaef   : > { %v2604_v63 = vsub.f32 %v2596_v19, %v2603_v21  ;;  %v2605_v4 = vsub.f32 %v2597_v52, %v2603_v21 }
 0xaf1   : > { %v2606_v22 = vmul.f32 %v2604_v63, %v2604_v63  ;;  %v2607_v23 = vmul.f32 %v2605_v4, %v2605_v4 }
 0xaf3   : > { %v2608_v24 = vadd.f32 %v2607_v23, %v2606_v22 }
 0xaf5   : > { %2609 = vadd.xlane.f32.xlu1 %v2608_v24 }
 0xb06   : > { %2625 = vperm.xlu1 %2965, %v2598_v1  }
 0xb7e   : > { %v2610_v2 = vpop.xlane.xlu1 %2609 }
 0xb7f   : > { %v2611_v3 = vmul.f32 0.003921569, %v2610_v2 }
 0xb81   : > { %2976 = vrsqrt.f32 %v2611_v3  ;;  %vm2614_vm3 = vcmp.eq.f32.partialorder %v2611_v3, inf  ;;  %v2617_v29 = vand.u32 2147483648, %v2611_v3  ;;  %vm2616_vm4 = vcmp.eq.f32.partialorder %v2611_v3, 0.0 }
 0xb82   : > { %v2626_v36 = vpop.permute.xlu1 %2625 }
 0xb8e   : > { %v2977_v27 = vpop.eup %2976 }
 0xb8f   : > { %v2613_v28 = vmul.f32 %v2977_v27, %v2611_v3 }
 0xb91   : > { %v2615_v14 = vsel %vm2614_vm3, %v2611_v3, %v2613_v28 }
 0xb92   : > { %v2618_v15 = vsel %vm2616_vm4, %v2617_v29, %v2615_v14 }
 0xb93   : > { %v2619_v30 = vadd.f32 1e-09, %v2618_v15 }
 0xb95   : > { %2978 = vrcp.f32 %v2619_v30 }
 0xba2   : > { %v2979_v31 = vpop.eup %2978 }
 0xba3   : > { %v2621_v32 = vmul.f32 %v2979_v31, %v2604_v63  ;;  %v2622_v33 = vmul.f32 %v2979_v31, %v2605_v4 }
 0xba5   : > { %v2628_v37 = vmul.f32 %v2626_v36, %v2621_v32  ;;  %v2629_v38 = vmul.f32 %v2626_v36, %v2622_v33 }
 0xba7   : > { %v2635_v40 = vadd.f32 %v2633_v39, %v2628_v37  ;;  %v2636_v0 = vadd.f32 %v2633_v39, %v2629_v38 }
 0xba9   : > { %2637 = vst [vmem:[%s857_s11] sm:$0xff] %v2635_v40  ;;  %2638 = vst [vmem:[%s857_s11 + $0x8] sm:$0xff] %v2636_v0 }
 0xbaa PF: > { %s35_s5 = sadd.s32 1, %s3016_s5  }
 0xbab   : > { %p32_p1 = scmp.ge.s32.totalorder %s35_s5, 4  }
 0xbad   :  { %34 = sbr.rel (!%p32_p1) target bundleno = 14 (0xe), region = 195 }
 0xbb2   :  { %2660 = vsyncpa [#allocation3], 1 }
 0xbb3   :  { %2662 = vsyncpa [#allocation3 + $0x1], 1 }

</bundles_post_ra>
